<compile_context>
chip_gen: v7x
topology: tpu7x:2x2x1
jax: 0.10.0
libtpu: 0.0.40
codegen_flags: <defaults>
</compile_context>

<pallas_src>
import functools

import jax
import jax.numpy as jnp
from jax.experimental import pallas as pl
from jax.experimental.pallas import tpu as pltpu

OPEN_IMAGE_NORMALIZATION = 255.0   # config.open_image_normalization
SIGMA = 1.0                        # soft-quantizer temperature
BLOCK_SIZE = 8                     # SiFinder block size


# ----------------------------------------------------------------------------
# Small helpers
# ----------------------------------------------------------------------------
def _nsplit(n):
    # Keep a size-2 'parallel' leading grid axis when possible (keeps both v7x
    # TensorCores busy) while folding the rest of the batch into the matmul M.
    return 2 if (n % 2 == 0 and n >= 2) else 1


def _conv_geom(H, W):
    Hp, Wp = H + 2, W + 2
    Mrow = H * Wp                      # per-image output grid (2 garbage cols/row)
    Lflat = (Hp + 1) * Wp              # >= Hp*Wp + 2 so the last tap slice is in-bounds
    return Hp, Wp, Mrow, Lflat


def _valid_col_mask(H, W, Wp):
    # (1, H*Wp) f32: 1 on the W valid columns of each padded-width row, else 0.
    col = (jnp.arange(Wp) < W).astype(jnp.float32)
    return jnp.broadcast_to(col, (H, Wp)).reshape(1, H * Wp)


def _flatten_padded(imgs, Hp, Wp, Lflat):
    # (N, C, H, W) -> zero-halo padded, row-flattened (N, C, Lflat).  One cheap
    # XLA pad per kernel call (hoisted out of any per-conv loop).
    N, C = imgs.shape[0], imgs.shape[1]
    xp = jnp.pad(imgs, ((0, 0), (0, 0), (1, 1), (1, 1)))
    xflat = xp.reshape(N, C, Hp * Wp)
    return jnp.pad(xflat, ((0, 0), (0, 0), (0, Lflat - Hp * Wp)))


def _unflatten(t, H, W, Wp):
    # (N, C, H*Wp) -> (N, C, H, W): free reshape + one slice dropping pad cols.
    N, C = t.shape[0], t.shape[1]
    return t.reshape(N, C, H, Wp)[:, :, :, :W]


# ----------------------------------------------------------------------------
# In-kernel im2col builders (shifted lane-slice copies into a VMEM scratch)
# ----------------------------------------------------------------------------
def _fill_col_from_ref(col_scr, flat_ref, b, cin, Wp, Mrow):
    """col[k*cin:(k+1)*cin, b*Mrow:(b+1)*Mrow] = padded image b shifted by tap k."""
    for k in range(9):
        dy, dx = divmod(k, 3)
        off = dy * Wp + dx
        col_scr[k * cin:(k + 1) * cin, b * Mrow:(b + 1) * Mrow] = (
            flat_ref[b, :, off:off + Mrow])


def _fill_col_from_pad(col_scr, pad_scr, b, cmid, Wp, Mrow):
    """Same, but the source is the in-kernel re-padded intermediate (Cmid, Lflat)."""
    for k in range(9):
        dy, dx = divmod(k, 3)
        off = dy * Wp + dx
        col_scr[k * cmid:(k + 1) * cmid, b * Mrow:(b + 1) * Mrow] = (
            pad_scr[:, off:off + Mrow])


# ----------------------------------------------------------------------------
# Pallas kernels
# ----------------------------------------------------------------------------
def _ae_kernel(xflat_ref, mask_ref, enc_w_ref, enc_b_ref, centers_ref,
               dec_w_ref, dec_b_ref,
               dec_ref, imp_ref, soft_ref, idx_ref,
               col_a, pad_f, col_b, *, H, Wp, L, sigma):
    """Fused: enc conv -> importance map -> soft quantizer -> dec conv.

    xflat_ref : (Bper, Cin, Lflat) f32   zero-halo padded, row-flattened images
    mask_ref  : (1, Mrow) f32            valid-column mask
    enc_w_ref : (F, 9*Cin) bf16 ; enc_b_ref: (F, 1) f32
    centers_ref: (L,) f32 in SMEM
    dec_w_ref : (Cout, 9*F) bf16 ; dec_b_ref: (Cout, 1) f32
    dec/imp/soft/idx refs: (Bper, ·, Mrow) lane-dense NC(HWp) blocks
    col_a: (9*Cin, Bper*Mrow) f32 ; pad_f: (F, Lflat) f32 ; col_b: (9*F, Bper*Mrow) f32
    """
    Bper = xflat_ref.shape[0]
    Cin = xflat_ref.shape[1]
    F = enc_w_ref.shape[0]
    Mrow = H * Wp
    mask = mask_ref[...]                                     # (1, Mrow)

    # -- encoder conv: one K=9*Cin MXU matmul over M = Bper * H * Wp ----------
    for b in range(Bper):
        _fill_col_from_ref(col_a, xflat_ref, b, Cin, Wp, Mrow)
    feat = jnp.dot(enc_w_ref[...], col_a[...].astype(jnp.bfloat16),
                   preferred_element_type=jnp.float32) + enc_b_ref[...]   # (F, M)

    # -- importance map: sigmoid of channel 0 scales all channels -------------
    # TODO(synk): mirror the reference DSIN importance-map head exactly if it
    # differs (separate head / bit-plane masking); the baseline AE is synthetic.
    imp = jax.nn.sigmoid(feat[0:1, :])                       # (1, M)
    post = feat * imp                                        # (F, M)

    # -- soft quantizer, pass 1: running min / argmin (VPU only, no EUP) ------
    best_d = (post - centers_ref[0]) ** 2
    best_i = jnp.zeros(post.shape, jnp.int32)
    for l in range(1, L):
        d = (post - centers_ref[l]) ** 2
        best_i = jnp.where(d < best_d, jnp.int32(l), best_i)
        best_d = jnp.minimum(best_d, d)
    # -- pass 2: one EUP exp per center; exponents are <= 0 by construction ---
    num = jnp.zeros_like(post)
    den = jnp.zeros_like(post)
    for l in range(L):
        c = centers_ref[l]
        w = jnp.exp(-sigma * ((post - c) ** 2 - best_d))
        num = num + w * c
        den = den + w
    soft = num * pl.reciprocal(den, approx=True)             # (F, M)

    # -- write outputs + decoder conv (soft code never leaves VMEM) -----------
    pad_f[...] = jnp.zeros_like(pad_f)
    off0 = Wp + 1                                            # halo re-pad offset
    for b in range(Bper):
        msl = slice(b * Mrow, (b + 1) * Mrow)
        imp_ref[b] = imp[:, msl]
        soft_ref[b] = soft[:, msl]
        idx_ref[b] = best_i[:, msl]                          # int32 directly
        pad_f[:, off0:off0 + Mrow] = soft[:, msl] * mask     # garbage cols -> 0 halo
        _fill_col_from_pad(col_b, pad_f, b, F, Wp, Mrow)
    dec = jnp.dot(dec_w_ref[...], col_b[...].astype(jnp.bfloat16),
                  preferred_element_type=jnp.float32) + dec_b_ref[...]
    dec = jax.nn.sigmoid(dec)
    for b in range(Bper):
        dec_ref[b] = dec[:, b * Mrow:(b + 1) * Mrow]


def _sinet_kernel(xflat_ref, mask_ref, w1_ref, b1_ref, w2_ref, b2_ref,
                  w3_ref, b3_ref, out_ref, col1, pad_h, col2, *, H, Wp):
    """Fused SiNet: conv3x3(6->HID, relu) -> conv3x3(HID->HID, relu) -> conv3x3(HID->3).

    Intermediates stay in VMEM; the 1-pixel halo is re-padded in-kernel.
    """
    Bper = xflat_ref.shape[0]
    Cin = xflat_ref.shape[1]
    HID = w1_ref.shape[0]
    Mrow = H * Wp
    mask = mask_ref[...]
    off0 = Wp + 1

    # conv1
    for b in range(Bper):
        _fill_col_from_ref(col1, xflat_ref, b, Cin, Wp, Mrow)
    h = jnp.dot(w1_ref[...], col1[...].astype(jnp.bfloat16),
                preferred_element_type=jnp.float32) + b1_ref[...]
    h = jnp.maximum(h, 0.0)

    # conv2 (re-pad h in VMEM)
    pad_h[...] = jnp.zeros_like(pad_h)
    for b in range(Bper):
        pad_h[:, off0:off0 + Mrow] = h[:, b * Mrow:(b + 1) * Mrow] * mask
        _fill_col_from_pad(col2, pad_h, b, HID, Wp, Mrow)
    h = jnp.dot(w2_ref[...], col2[...].astype(jnp.bfloat16),
                preferred_element_type=jnp.float32) + b2_ref[...]
    h = jnp.maximum(h, 0.0)

    # conv3 (reuse pad_h / col2 scratches)
    for b in range(Bper):
        pad_h[:, off0:off0 + Mrow] = h[:, b * Mrow:(b + 1) * Mrow] * mask
        _fill_col_from_pad(col2, pad_h, b, HID, Wp, Mrow)
    out = jnp.dot(w3_ref[...], col2[...].astype(jnp.bfloat16),
                  preferred_element_type=jnp.float32) + b3_ref[...]
    for b in range(Bper):
        out_ref[b] = out[:, b * Mrow:(b + 1) * Mrow]


def _blockmatch_kernel(yb_ref, xb_ref, idx_ref):
    """For each x block (column), index of the best-matching y block (row).

    sim[j, i] = <y_block_j, x_block_i> via dot_general contracting the D axes of
    both operands (no host / in-kernel transpose); argmax runs in-kernel so only
    (B, 1, Nb) int32 indices hit HBM.
    """
    Bper, Nb, _ = yb_ref.shape
    for b in range(Bper):
        sim = jax.lax.dot_general(yb_ref[b], xb_ref[b],
                                  (((1,), (1,)), ((), ())),
                                  preferred_element_type=jnp.float32)   # (Nb, Nb)
        m = jnp.max(sim, axis=0, keepdims=True)                         # (1, Nb)
        row = jax.lax.broadcasted_iota(jnp.int32, sim.shape, 0)
        idx_ref[b] = jnp.min(jnp.where(sim == m, row, jnp.int32(Nb)),
                             axis=0, keepdims=True)


# ----------------------------------------------------------------------------
# Pallas wrappers
# ----------------------------------------------------------------------------
_VMEM_LIMIT = 64 * 1024 * 1024   # explicit; re-derive strip sizes for v7x (64 MiB VMEM)


def ae_forward(params, imgs):
    """Fused baseline-AE pass (enc -> importance -> quantizer -> dec), NCHW in/out."""
    N, C, H, W = imgs.shape
    Hp, Wp, Mrow, Lflat = _conv_geom(H, W)
    F = params["enc_w"].shape[0]
    L = params["centers"].shape[0]
    ns = _nsplit(N)
    bper = N // ns

    xflat = _flatten_padded(imgs, Hp, Wp, Lflat)
    mask = _valid_col_mask(H, W, Wp)
    enc_w = params["enc_w"].astype(jnp.bfloat16)            # cast once per call
    dec_w = params["dec_w"].astype(jnp.bfloat16)
    enc_b = params["enc_b"].reshape(F, 1)
    dec_b = params["dec_b"].reshape(C, 1)

    dec_f, imp_f, soft_f, idx_f = pl.pallas_call(
        functools.partial(_ae_kernel, H=H, Wp=Wp, L=L, sigma=SIGMA),
        out_shape=(
            jax.ShapeDtypeStruct((N, C, Mrow), jnp.float32),
            jax.ShapeDtypeStruct((N, 1, Mrow), jnp.float32),
            jax.ShapeDtypeStruct((N, F, Mrow), jnp.float32),
            jax.ShapeDtypeStruct((N, F, Mrow), jnp.int32),
        ),
        grid=(ns,),
        in_specs=[
            pl.BlockSpec((bper, C, Lflat), lambda s: (s, 0, 0)),
            pl.BlockSpec((1, Mrow), lambda s: (0, 0)),
            pl.BlockSpec((F, 9 * C), lambda s: (0, 0)),
            pl.BlockSpec((F, 1), lambda s: (0, 0)),
            pl.BlockSpec(memory_space=pltpu.MemorySpace.SMEM),
            pl.BlockSpec((C, 9 * F), lambda s: (0, 0)),
            pl.BlockSpec((C, 1), lambda s: (0, 0)),
        ],
        out_specs=(
            pl.BlockSpec((bper, C, Mrow), lambda s: (s, 0, 0)),
            pl.BlockSpec((bper, 1, Mrow), lambda s: (s, 0, 0)),
            pl.BlockSpec((bper, F, Mrow), lambda s: (s, 0, 0)),
            pl.BlockSpec((bper, F, Mrow), lambda s: (s, 0, 0)),
        ),
        scratch_shapes=[
            pltpu.VMEM((9 * C, bper * Mrow), jnp.float32),
            pltpu.VMEM((F, Lflat), jnp.float32),
            pltpu.VMEM((9 * F, bper * Mrow), jnp.float32),
        ],
        compiler_params=pltpu.CompilerParams(
            dimension_semantics=("parallel",),
            vmem_limit_bytes=_VMEM_LIMIT),
    )(xflat, mask, enc_w, enc_b, params["centers"], dec_w, dec_b)

    return (_unflatten(dec_f, H, W, Wp), _unflatten(imp_f, H, W, Wp),
            _unflatten(soft_f, H, W, Wp), _unflatten(idx_f, H, W, Wp))


def si_net_forward(params, sin_in):
    """Fused 3-conv SiNet, NCHW in/out."""
    B, Cin, H, W = sin_in.shape
    Hp, Wp, Mrow, Lflat = _conv_geom(H, W)
    HID = params["si_w1"].shape[0]
    Cout = params["si_w3"].shape[0]
    ns = _nsplit(B)
    bper = B // ns

    xflat = _flatten_padded(sin_in, Hp, Wp, Lflat)
    mask = _valid_col_mask(H, W, Wp)
    w1 = params["si_w1"].astype(jnp.bfloat16)
    w2 = params["si_w2"].astype(jnp.bfloat16)
    w3 = params["si_w3"].astype(jnp.bfloat16)
    b1 = params["si_b1"].reshape(HID, 1)
    b2 = params["si_b2"].reshape(HID, 1)
    b3 = params["si_b3"].reshape(Cout, 1)

    out_f = pl.pallas_call(
        functools.partial(_sinet_kernel, H=H, Wp=Wp),
        out_shape=jax.ShapeDtypeStruct((B, Cout, Mrow), jnp.float32),
        grid=(ns,),
        in_specs=[
            pl.BlockSpec((bper, Cin, Lflat), lambda s: (s, 0, 0)),
            pl.BlockSpec((1, Mrow), lambda s: (0, 0)),
            pl.BlockSpec((HID, 9 * Cin), lambda s: (0, 0)),
            pl.BlockSpec((HID, 1), lambda s: (0, 0)),
            pl.BlockSpec((HID, 9 * HID), lambda s: (0, 0)),
            pl.BlockSpec((HID, 1), lambda s: (0, 0)),
            pl.BlockSpec((Cout, 9 * HID), lambda s: (0, 0)),
            pl.BlockSpec((Cout, 1), lambda s: (0, 0)),
        ],
        out_specs=pl.BlockSpec((bper, Cout, Mrow), lambda s: (s, 0, 0)),
        scratch_shapes=[
            pltpu.VMEM((9 * Cin, bper * Mrow), jnp.float32),
            pltpu.VMEM((HID, Lflat), jnp.float32),
            pltpu.VMEM((9 * HID, bper * Mrow), jnp.float32),
        ],
        compiler_params=pltpu.CompilerParams(
            dimension_semantics=("parallel",),
            vmem_limit_bytes=_VMEM_LIMIT),
    )(xflat, mask, w1, b1, w2, b2, w3, b3)
    return _unflatten(out_f, H, W, Wp)


def block_match_argmax(x_blocks, y_blocks_n):
    """For each x block, index of the best-matching (normalized) y block."""
    B, Nb, D = x_blocks.shape
    ns = _nsplit(B)
    bper = B // ns
    idx3 = pl.pallas_call(
        _blockmatch_kernel,
        out_shape=jax.ShapeDtypeStruct((B, 1, Nb), jnp.int32),
        grid=(ns,),
        in_specs=[
            pl.BlockSpec((bper, Nb, D), lambda s: (s, 0, 0)),
            pl.BlockSpec((bper, Nb, D), lambda s: (s, 0, 0)),
        ],
        out_specs=pl.BlockSpec((bper, 1, Nb), lambda s: (s, 0, 0)),
        compiler_params=pltpu.CompilerParams(dimension_semantics=("parallel",)),
    )(y_blocks_n, x_blocks)
    return idx3[:, 0, :]                                     # (B, Nb)


# ----------------------------------------------------------------------------
# Module glue (plain XLA: split, block gather/reassembly, concat, l2)
# ----------------------------------------------------------------------------
def normalize(t):
    # ae.noramlize: map [0, 255] -> [-1, 1]
    return (t - 0.5 * OPEN_IMAGE_NORMALIZATION) / (0.5 * OPEN_IMAGE_NORMALIZATION)


def to_blocks_nchw(img, bs):
    B, C, H, W = img.shape
    nh, nw = H // bs, W // bs
    b = img.reshape(B, C, nh, bs, nw, bs)
    b = jnp.transpose(b, (0, 2, 4, 1, 3, 5))
    return b.reshape(B, nh * nw, C * bs * bs)


def from_blocks_nchw(blocks, B, C, H, W, bs):
    nh, nw = H // bs, W // bs
    b = blocks.reshape(B, nh, nw, C, bs, bs)
    b = jnp.transpose(b, (0, 3, 1, 4, 2, 5))
    return b.reshape(B, C, H, W)


def si_finder_create_y_syn(x_dec, y_dec, y, bs=BLOCK_SIZE):
    # TODO(synk): real DSIN SiFinder uses dense sliding-window NCC search;
    # simplified here to non-overlapping block matching (same dataflow).
    B, C, H, W = x_dec.shape
    xb = to_blocks_nchw(x_dec, bs)
    yb = to_blocks_nchw(y_dec, bs)
    # Only y-block normalization affects the argmax (x normalization is a
    # positive per-row scale), so x blocks are fed unnormalized.
    ybn = yb * jax.lax.rsqrt(jnp.sum(yb * yb, axis=-1, keepdims=True) + 1e-12)
    idx = block_match_argmax(xb, ybn)                        # (B, Nb) int32
    y_blocks = to_blocks_nchw(y, bs)
    y_syn_blocks = jax.vmap(lambda blk, i: blk[i])(y_blocks, idx)
    return from_blocks_nchw(y_syn_blocks, B, C, H, W, bs)


def side_information_autoencoder_forward(params, combined):
    """Forward of SideInformationAutoEncoder. Returns (x_reconstructed, my_tuple)."""
    C = 3
    B = combined.shape[0]
    x = combined[:, :C]                                      # image, NCHW
    y = combined[:, C:]                                      # side-information image
    y_scaled = y * OPEN_IMAGE_NORMALIZATION

    # Batch the x path and the (no_grad) y path through the shared AE in one pass.
    enc_in = jnp.concatenate([x, y_scaled], axis=0)          # (2B, C, H, W)
    dec_all, imp_all, soft_all, idx_all = ae_forward(params, enc_in)
    x_dec, y_dec = dec_all[:B], dec_all[B:]
    imp_map = imp_all[:B]                                    # (B, 1, H, W)
    x_pc = soft_all[:B]                                      # (B, F, H, W)
    x_idx = idx_all[:B]                                      # (B, F, H, W) int32

    # calc_y_syn (torch.no_grad() — forward-only here)
    y_syn = si_finder_create_y_syn(x_dec=x_dec, y_dec=y_dec, y=y_scaled)
    normalized_y_syn = normalize(y_syn)

    sin_in = jnp.concatenate(
        [normalize(x_dec * OPEN_IMAGE_NORMALIZATION), normalized_y_syn], axis=1)
    x_rec = si_net_forward(params, sin_in)                   # fused 3-conv SiNet

    # L2 penalty: plain fused XLA reduction (a Pallas kernel is pure overhead).
    l2_weights = sum(
        jnp.sum(params[k].astype(jnp.float32) ** 2)
        for k in ("enc_w", "enc_b", "dec_w", "dec_b", "centers",
                  "si_w1", "si_b1", "si_w2", "si_b2", "si_w3", "si_b3"))

    my_tuple = (y_syn, normalized_y_syn, x_rec, x_dec, x_pc, imp_map,
                x_idx, x, y, l2_weights)
    return x_rec, my_tuple


# ----------------------------------------------------------------------------
# Deterministic parameter construction (synthetic baseline AE / SiNet)
# ----------------------------------------------------------------------------
def make_params():
    C, F, L, HID = 3, 8, 6, 16
    ks = jax.random.split(jax.random.PRNGKey(0), 8)

    def w2d(key, cout, cin, scale=0.05):
        # 3x3 conv weight in matmul layout (Cout, 9*Cin), tap order (dy*3+dx, Cin).
        # A torch (Cout, Cin, 3, 3) weight ports as w.permute(0, 2, 3, 1).reshape(Cout, 9*Cin).
        return scale * jax.random.normal(key, (cout, 9 * cin), jnp.float32)

    return dict(
        enc_w=w2d(ks[0], F, C), enc_b=jnp.zeros((F,), jnp.float32),
        centers=jnp.linspace(-2.0, 2.0, L).astype(jnp.float32),
        dec_w=w2d(ks[1], C, F), dec_b=jnp.zeros((C,), jnp.float32),
        si_w1=w2d(ks[2], HID, 2 * C), si_b1=jnp.zeros((HID,), jnp.float32),
        si_w2=w2d(ks[3], HID, HID), si_b2=jnp.zeros((HID,), jnp.float32),
        si_w3=w2d(ks[4], C, HID), si_b3=jnp.zeros((C,), jnp.float32),
    )


if __name__ == "__main__":
    B, C, H, W = 2, 3, 16, 16
    params = make_params()
    # combined_img_si_img: image channels [:3], side-info image channels [3:]
    combined = jax.random.uniform(jax.random.PRNGKey(0), (B, 2 * C, H, W),
                                  dtype=jnp.float32)

    fwd = jax.jit(side_information_autoencoder_forward)
    x_reconstructed, my_tuple = fwd(params, combined)
    jax.block_until_ready(x_reconstructed)
    jax.block_until_ready(my_tuple[-1])  # l2_weights

    assert x_reconstructed.shape == (B, C, H, W)
    assert my_tuple[6].dtype == jnp.int32
    assert bool(jnp.all(jnp.isfinite(x_reconstructed)))
    print("KERNEL_OK")
</pallas_src>

<mosaic_0001>
module attributes {stable_mosaic.version = 11 : i64} {
  func.func @_ae_kernel(%arg0: i32, %arg1: memref<2x3x342xf32, #tpu.memory_space<vmem>>, %arg2: memref<1x288xf32, #tpu.memory_space<vmem>>, %arg3: memref<8x27xbf16, #tpu.memory_space<vmem>>, %arg4: memref<8x1xf32, #tpu.memory_space<vmem>>, %arg5: memref<6xf32, #tpu.memory_space<smem>>, %arg6: memref<3x72xbf16, #tpu.memory_space<vmem>>, %arg7: memref<3x1xf32, #tpu.memory_space<vmem>>, %arg8: memref<2x3x288xf32, #tpu.memory_space<vmem>>, %arg9: memref<2x1x288xf32, #tpu.memory_space<vmem>>, %arg10: memref<2x8x288xf32, #tpu.memory_space<vmem>>, %arg11: memref<2x8x288xi32, #tpu.memory_space<vmem>>, %arg12: memref<27x576xf32, #tpu.memory_space<vmem>>, %arg13: memref<8x342xf32, #tpu.memory_space<vmem>>, %arg14: memref<72x576xf32, #tpu.memory_space<vmem>>) attributes {dimension_semantics = [#tpu.dimension_semantics<parallel>], iteration_bounds = array<i64: 2>, scalar_prefetch = 0 : i64, scratch_operands = 3 : i64, tpu.core_type = #tpu.core_type<tc>, window_params = [{transform_indices = @transform_0, window_bounds = array<i64: 2, 3, 342>}, {pipeline_mode = #tpu.pipeline_mode<synchronous>, transform_indices = @transform_1, window_bounds = array<i64: 1, 288>}, {pipeline_mode = #tpu.pipeline_mode<synchronous>, transform_indices = @transform_2, window_bounds = array<i64: 8, 27>}, {pipeline_mode = #tpu.pipeline_mode<synchronous>, transform_indices = @transform_3, window_bounds = array<i64: 8, 1>}, {transform_indices = @transform_4, window_bounds = array<i64: 6>}, {pipeline_mode = #tpu.pipeline_mode<synchronous>, transform_indices = @transform_5, window_bounds = array<i64: 3, 72>}, {pipeline_mode = #tpu.pipeline_mode<synchronous>, transform_indices = @transform_6, window_bounds = array<i64: 3, 1>}, {transform_indices = @transform_7, window_bounds = array<i64: 2, 3, 288>}, {transform_indices = @transform_8, window_bounds = array<i64: 2, 1, 288>}, {transform_indices = @transform_9, window_bounds = array<i64: 2, 8, 288>}, {transform_indices = @transform_10, window_bounds = array<i64: 2, 8, 288>}]} {
    %c0 = arith.constant 0 : index
    %c0_0 = arith.constant 0 : index
    %0 = vector.load %arg2[%c0, %c0_0] : memref<1x288xf32, #tpu.memory_space<vmem>>, vector<1x288xf32>
    %c0_1 = arith.constant 0 : index
    %c0_2 = arith.constant 0 : index
    %c0_3 = arith.constant 0 : index
    %1 = vector.load %arg1[%c0_1, %c0_2, %c0_3] : memref<2x3x342xf32, #tpu.memory_space<vmem>>, vector<1x3x288xf32>
    %2 = vector.shape_cast %1 : vector<1x3x288xf32> to vector<3x288xf32>
    %c0_4 = arith.constant 0 : index
    %c0_5 = arith.constant 0 : index
    %3 = vector.load %arg12[%c0_4, %c0_5] : memref<27x576xf32, #tpu.memory_space<vmem>>, vector<3x288xf32>
    tpu.vector_store %arg12[%c0_4, %c0_5], %2 {strides = array<i32>} : memref<27x576xf32, #tpu.memory_space<vmem>>, vector<3x288xf32>,
    %c0_6 = arith.constant 0 : index
    %c0_7 = arith.constant 0 : index
    %c1 = arith.constant 1 : index
    %4 = vector.load %arg1[%c0_6, %c0_7, %c1] : memref<2x3x342xf32, #tpu.memory_space<vmem>>, vector<1x3x288xf32>
    %5 = vector.shape_cast %4 : vector<1x3x288xf32> to vector<3x288xf32>
    %c3 = arith.constant 3 : index
    %c0_8 = arith.constant 0 : index
    %6 = vector.load %arg12[%c3, %c0_8] : memref<27x576xf32, #tpu.memory_space<vmem>>, vector<3x288xf32>
    tpu.vector_store %arg12[%c3, %c0_8], %5 {strides = array<i32>} : memref<27x576xf32, #tpu.memory_space<vmem>>, vector<3x288xf32>,
    %c0_9 = arith.constant 0 : index
    %c0_10 = arith.constant 0 : index
    %c2 = arith.constant 2 : index
    %7 = vector.load %arg1[%c0_9, %c0_10, %c2] : memref<2x3x342xf32, #tpu.memory_space<vmem>>, vector<1x3x288xf32>
    %8 = vector.shape_cast %7 : vector<1x3x288xf32> to vector<3x288xf32>
    %c6 = arith.constant 6 : index
    %c0_11 = arith.constant 0 : index
    %9 = vector.load %arg12[%c6, %c0_11] : memref<27x576xf32, #tpu.memory_space<vmem>>, vector<3x288xf32>
    tpu.vector_store %arg12[%c6, %c0_11], %8 {strides = array<i32>} : memref<27x576xf32, #tpu.memory_space<vmem>>, vector<3x288xf32>,
    %c0_12 = arith.constant 0 : index
    %c0_13 = arith.constant 0 : index
    %c18 = arith.constant 18 : index
    %10 = vector.load %arg1[%c0_12, %c0_13, %c18] : memref<2x3x342xf32, #tpu.memory_space<vmem>>, vector<1x3x288xf32>
    %11 = vector.shape_cast %10 : vector<1x3x288xf32> to vector<3x288xf32>
    %c9 = arith.constant 9 : index
    %c0_14 = arith.constant 0 : index
    %12 = vector.load %arg12[%c9, %c0_14] : memref<27x576xf32, #tpu.memory_space<vmem>>, vector<3x288xf32>
    tpu.vector_store %arg12[%c9, %c0_14], %11 {strides = array<i32>} : memref<27x576xf32, #tpu.memory_space<vmem>>, vector<3x288xf32>,
    %c0_15 = arith.constant 0 : index
    %c0_16 = arith.constant 0 : index
    %c19 = arith.constant 19 : index
    %13 = vector.load %arg1[%c0_15, %c0_16, %c19] : memref<2x3x342xf32, #tpu.memory_space<vmem>>, vector<1x3x288xf32>
    %14 = vector.shape_cast %13 : vector<1x3x288xf32> to vector<3x288xf32>
    %c12 = arith.constant 12 : index
    %c0_17 = arith.constant 0 : index
    %15 = vector.load %arg12[%c12, %c0_17] : memref<27x576xf32, #tpu.memory_space<vmem>>, vector<3x288xf32>
    tpu.vector_store %arg12[%c12, %c0_17], %14 {strides = array<i32>} : memref<27x576xf32, #tpu.memory_space<vmem>>, vector<3x288xf32>,
    %c0_18 = arith.constant 0 : index
    %c0_19 = arith.constant 0 : index
    %c20 = arith.constant 20 : index
    %16 = vector.load %arg1[%c0_18, %c0_19, %c20] : memref<2x3x342xf32, #tpu.memory_space<vmem>>, vector<1x3x288xf32>
    %17 = vector.shape_cast %16 : vector<1x3x288xf32> to vector<3x288xf32>
    %c15 = arith.constant 15 : index
    %c0_20 = arith.constant 0 : index
    %18 = vector.load %arg12[%c15, %c0_20] : memref<27x576xf32, #tpu.memory_space<vmem>>, vector<3x288xf32>
    tpu.vector_store %arg12[%c15, %c0_20], %17 {strides = array<i32>} : memref<27x576xf32, #tpu.memory_space<vmem>>, vector<3x288xf32>,
    %c0_21 = arith.constant 0 : index
    %c0_22 = arith.constant 0 : index
    %c36 = arith.constant 36 : index
    %19 = vector.load %arg1[%c0_21, %c0_22, %c36] : memref<2x3x342xf32, #tpu.memory_space<vmem>>, vector<1x3x288xf32>
    %20 = vector.shape_cast %19 : vector<1x3x288xf32> to vector<3x288xf32>
    %c18_23 = arith.constant 18 : index
    %c0_24 = arith.constant 0 : index
    %21 = vector.load %arg12[%c18_23, %c0_24] : memref<27x576xf32, #tpu.memory_space<vmem>>, vector<3x288xf32>
    tpu.vector_store %arg12[%c18_23, %c0_24], %20 {strides = array<i32>} : memref<27x576xf32, #tpu.memory_space<vmem>>, vector<3x288xf32>,
    %c0_25 = arith.constant 0 : index
    %c0_26 = arith.constant 0 : index
    %c37 = arith.constant 37 : index
    %22 = vector.load %arg1[%c0_25, %c0_26, %c37] : memref<2x3x342xf32, #tpu.memory_space<vmem>>, vector<1x3x288xf32>
    %23 = vector.shape_cast %22 : vector<1x3x288xf32> to vector<3x288xf32>
    %c21 = arith.constant 21 : index
    %c0_27 = arith.constant 0 : index
    %24 = vector.load %arg12[%c21, %c0_27] : memref<27x576xf32, #tpu.memory_space<vmem>>, vector<3x288xf32>
    tpu.vector_store %arg12[%c21, %c0_27], %23 {strides = array<i32>} : memref<27x576xf32, #tpu.memory_space<vmem>>, vector<3x288xf32>,
    %c0_28 = arith.constant 0 : index
    %c0_29 = arith.constant 0 : index
    %c38 = arith.constant 38 : index
    %25 = vector.load %arg1[%c0_28, %c0_29, %c38] : memref<2x3x342xf32, #tpu.memory_space<vmem>>, vector<1x3x288xf32>
    %26 = vector.shape_cast %25 : vector<1x3x288xf32> to vector<3x288xf32>
    %c24 = arith.constant 24 : index
    %c0_30 = arith.constant 0 : index
    %27 = vector.load %arg12[%c24, %c0_30] : memref<27x576xf32, #tpu.memory_space<vmem>>, vector<3x288xf32>
    tpu.vector_store %arg12[%c24, %c0_30], %26 {strides = array<i32>} : memref<27x576xf32, #tpu.memory_space<vmem>>, vector<3x288xf32>,
    %c1_31 = arith.constant 1 : index
    %c0_32 = arith.constant 0 : index
    %c0_33 = arith.constant 0 : index
    %28 = vector.load %arg1[%c1_31, %c0_32, %c0_33] : memref<2x3x342xf32, #tpu.memory_space<vmem>>, vector<1x3x288xf32>
    %29 = vector.shape_cast %28 : vector<1x3x288xf32> to vector<3x288xf32>
    %c0_34 = arith.constant 0 : index
    %c288 = arith.constant 288 : index
    %30 = vector.load %arg12[%c0_34, %c288] : memref<27x576xf32, #tpu.memory_space<vmem>>, vector<3x288xf32>
    tpu.vector_store %arg12[%c0_34, %c288], %29 {strides = array<i32>} : memref<27x576xf32, #tpu.memory_space<vmem>>, vector<3x288xf32>,
    %c1_35 = arith.constant 1 : index
    %c0_36 = arith.constant 0 : index
    %c1_37 = arith.constant 1 : index
    %31 = vector.load %arg1[%c1_35, %c0_36, %c1_37] : memref<2x3x342xf32, #tpu.memory_space<vmem>>, vector<1x3x288xf32>
    %32 = vector.shape_cast %31 : vector<1x3x288xf32> to vector<3x288xf32>
    %c3_38 = arith.constant 3 : index
    %c288_39 = arith.constant 288 : index
    %33 = vector.load %arg12[%c3_38, %c288_39] : memref<27x576xf32, #tpu.memory_space<vmem>>, vector<3x288xf32>
    tpu.vector_store %arg12[%c3_38, %c288_39], %32 {strides = array<i32>} : memref<27x576xf32, #tpu.memory_space<vmem>>, vector<3x288xf32>,
    %c1_40 = arith.constant 1 : index
    %c0_41 = arith.constant 0 : index
    %c2_42 = arith.constant 2 : index
    %34 = vector.load %arg1[%c1_40, %c0_41, %c2_42] : memref<2x3x342xf32, #tpu.memory_space<vmem>>, vector<1x3x288xf32>
    %35 = vector.shape_cast %34 : vector<1x3x288xf32> to vector<3x288xf32>
    %c6_43 = arith.constant 6 : index
    %c288_44 = arith.constant 288 : index
    %36 = vector.load %arg12[%c6_43, %c288_44] : memref<27x576xf32, #tpu.memory_space<vmem>>, vector<3x288xf32>
    tpu.vector_store %arg12[%c6_43, %c288_44], %35 {strides = array<i32>} : memref<27x576xf32, #tpu.memory_space<vmem>>, vector<3x288xf32>,
    %c1_45 = arith.constant 1 : index
    %c0_46 = arith.constant 0 : index
    %c18_47 = arith.constant 18 : index
    %37 = vector.load %arg1[%c1_45, %c0_46, %c18_47] : memref<2x3x342xf32, #tpu.memory_space<vmem>>, vector<1x3x288xf32>
    %38 = vector.shape_cast %37 : vector<1x3x288xf32> to vector<3x288xf32>
    %c9_48 = arith.constant 9 : index
    %c288_49 = arith.constant 288 : index
    %39 = vector.load %arg12[%c9_48, %c288_49] : memref<27x576xf32, #tpu.memory_space<vmem>>, vector<3x288xf32>
    tpu.vector_store %arg12[%c9_48, %c288_49], %38 {strides = array<i32>} : memref<27x576xf32, #tpu.memory_space<vmem>>, vector<3x288xf32>,
    %c1_50 = arith.constant 1 : index
    %c0_51 = arith.constant 0 : index
    %c19_52 = arith.constant 19 : index
    %40 = vector.load %arg1[%c1_50, %c0_51, %c19_52] : memref<2x3x342xf32, #tpu.memory_space<vmem>>, vector<1x3x288xf32>
    %41 = vector.shape_cast %40 : vector<1x3x288xf32> to vector<3x288xf32>
    %c12_53 = arith.constant 12 : index
    %c288_54 = arith.constant 288 : index
    %42 = vector.load %arg12[%c12_53, %c288_54] : memref<27x576xf32, #tpu.memory_space<vmem>>, vector<3x288xf32>
    tpu.vector_store %arg12[%c12_53, %c288_54], %41 {strides = array<i32>} : memref<27x576xf32, #tpu.memory_space<vmem>>, vector<3x288xf32>,
    %c1_55 = arith.constant 1 : index
    %c0_56 = arith.constant 0 : index
    %c20_57 = arith.constant 20 : index
    %43 = vector.load %arg1[%c1_55, %c0_56, %c20_57] : memref<2x3x342xf32, #tpu.memory_space<vmem>>, vector<1x3x288xf32>
    %44 = vector.shape_cast %43 : vector<1x3x288xf32> to vector<3x288xf32>
    %c15_58 = arith.constant 15 : index
    %c288_59 = arith.constant 288 : index
    %45 = vector.load %arg12[%c15_58, %c288_59] : memref<27x576xf32, #tpu.memory_space<vmem>>, vector<3x288xf32>
    tpu.vector_store %arg12[%c15_58, %c288_59], %44 {strides = array<i32>} : memref<27x576xf32, #tpu.memory_space<vmem>>, vector<3x288xf32>,
    %c1_60 = arith.constant 1 : index
    %c0_61 = arith.constant 0 : index
    %c36_62 = arith.constant 36 : index
    %46 = vector.load %arg1[%c1_60, %c0_61, %c36_62] : memref<2x3x342xf32, #tpu.memory_space<vmem>>, vector<1x3x288xf32>
    %47 = vector.shape_cast %46 : vector<1x3x288xf32> to vector<3x288xf32>
    %c18_63 = arith.constant 18 : index
    %c288_64 = arith.constant 288 : index
    %48 = vector.load %arg12[%c18_63, %c288_64] : memref<27x576xf32, #tpu.memory_space<vmem>>, vector<3x288xf32>
    tpu.vector_store %arg12[%c18_63, %c288_64], %47 {strides = array<i32>} : memref<27x576xf32, #tpu.memory_space<vmem>>, vector<3x288xf32>,
    %c1_65 = arith.constant 1 : index
    %c0_66 = arith.constant 0 : index
    %c37_67 = arith.constant 37 : index
    %49 = vector.load %arg1[%c1_65, %c0_66, %c37_67] : memref<2x3x342xf32, #tpu.memory_space<vmem>>, vector<1x3x288xf32>
    %50 = vector.shape_cast %49 : vector<1x3x288xf32> to vector<3x288xf32>
    %c21_68 = arith.constant 21 : index
    %c288_69 = arith.constant 288 : index
    %51 = vector.load %arg12[%c21_68, %c288_69] : memref<27x576xf32, #tpu.memory_space<vmem>>, vector<3x288xf32>
    tpu.vector_store %arg12[%c21_68, %c288_69], %50 {strides = array<i32>} : memref<27x576xf32, #tpu.memory_space<vmem>>, vector<3x288xf32>,
    %c1_70 = arith.constant 1 : index
    %c0_71 = arith.constant 0 : index
    %c38_72 = arith.constant 38 : index
    %52 = vector.load %arg1[%c1_70, %c0_71, %c38_72] : memref<2x3x342xf32, #tpu.memory_space<vmem>>, vector<1x3x288xf32>
    %53 = vector.shape_cast %52 : vector<1x3x288xf32> to vector<3x288xf32>
    %c24_73 = arith.constant 24 : index
    %c288_74 = arith.constant 288 : index
    %54 = vector.load %arg12[%c24_73, %c288_74] : memref<27x576xf32, #tpu.memory_space<vmem>>, vector<3x288xf32>
    tpu.vector_store %arg12[%c24_73, %c288_74], %53 {strides = array<i32>} : memref<27x576xf32, #tpu.memory_space<vmem>>, vector<3x288xf32>,
    %c0_75 = arith.constant 0 : index
    %c0_76 = arith.constant 0 : index
    %55 = vector.load %arg3[%c0_75, %c0_76] : memref<8x27xbf16, #tpu.memory_space<vmem>>, vector<8x27xbf16>
    %c0_77 = arith.constant 0 : index
    %c0_78 = arith.constant 0 : index
    %56 = vector.load %arg12[%c0_77, %c0_78] : memref<27x576xf32, #tpu.memory_space<vmem>>, vector<27x576xf32>
    %57 = arith.truncf %56 : vector<27x576xf32> to vector<27x576xbf16>
    %cst = arith.constant dense<0.000000e+00> : vector<8x576xf32>
    %58 = tpu.matmul %55, %57, %cst {dimension_numbers = #tpu.dot_dimension_numbers<[1], [0], [0], [1], [0, 0, 1, 1], [], []>} : vector<8x27xbf16>, vector<27x576xbf16>, vector<8x576xf32> -> vector<8x576xf32>
    %c0_79 = arith.constant 0 : index
    %c0_80 = arith.constant 0 : index
    %59 = vector.load %arg4[%c0_79, %c0_80] : memref<8x1xf32, #tpu.memory_space<vmem>>, vector<8x1xf32>
    %60 = vector.broadcast %59 : vector<8x1xf32> to vector<8x576xf32>
    %61 = arith.addf %58, %60 : vector<8x576xf32>
    %62 = vector.extract_strided_slice %61 {offsets = [0, 0], sizes = [1, 576], strides = [1, 1]} : vector<8x576xf32> to vector<1x576xf32>
    %63 = arith.negf %62 : vector<1x576xf32>
    %64 = math.exp %63 : vector<1x576xf32>
    %cst_81 = arith.constant 1.000000e+00 : f32
    %65 = vector.broadcast %cst_81 : f32 to vector<1x576xf32>
    %66 = arith.addf %65, %64 : vector<1x576xf32>
    %67 = arith.divf %65, %66 : vector<1x576xf32>
    %68 = vector.broadcast %67 : vector<1x576xf32> to vector<8x576xf32>
    %69 = arith.mulf %61, %68 : vector<8x576xf32>
    %c0_82 = arith.constant 0 : index
    %70 = memref.load %arg5[%c0_82] : memref<6xf32, #tpu.memory_space<smem>>
    %71 = vector.broadcast %70 : f32 to vector<8x576xf32>
    %72 = arith.subf %69, %71 : vector<8x576xf32>
    %73 = arith.mulf %72, %72 : vector<8x576xf32>
    %c0_i32 = arith.constant 0 : i32
    %74 = vector.broadcast %c0_i32 : i32 to vector<8x576xi32>
    %c1_83 = arith.constant 1 : index
    %75 = memref.load %arg5[%c1_83] : memref<6xf32, #tpu.memory_space<smem>>
    %76 = vector.broadcast %75 : f32 to vector<8x576xf32>
    %77 = arith.subf %69, %76 : vector<8x576xf32>
    %78 = arith.mulf %77, %77 : vector<8x576xf32>
    %79 = arith.cmpf olt, %78, %73 : vector<8x576xf32>
    %c1_i32 = arith.constant 1 : i32
    %80 = vector.broadcast %c1_i32 : i32 to vector<8x576xi32>
    %81 = arith.select %79, %80, %74 : vector<8x576xi1>, vector<8x576xi32>
    %82 = arith.minimumf %73, %78 : vector<8x576xf32>
    %c2_84 = arith.constant 2 : index
    %83 = memref.load %arg5[%c2_84] : memref<6xf32, #tpu.memory_space<smem>>
    %84 = vector.broadcast %83 : f32 to vector<8x576xf32>
    %85 = arith.subf %69, %84 : vector<8x576xf32>
    %86 = arith.mulf %85, %85 : vector<8x576xf32>
    %87 = arith.cmpf olt, %86, %82 : vector<8x576xf32>
    %c2_i32 = arith.constant 2 : i32
    %88 = vector.broadcast %c2_i32 : i32 to vector<8x576xi32>
    %89 = arith.select %87, %88, %81 : vector<8x576xi1>, vector<8x576xi32>
    %90 = arith.minimumf %82, %86 : vector<8x576xf32>
    %c3_85 = arith.constant 3 : index
    %91 = memref.load %arg5[%c3_85] : memref<6xf32, #tpu.memory_space<smem>>
    %92 = vector.broadcast %91 : f32 to vector<8x576xf32>
    %93 = arith.subf %69, %92 : vector<8x576xf32>
    %94 = arith.mulf %93, %93 : vector<8x576xf32>
    %95 = arith.cmpf olt, %94, %90 : vector<8x576xf32>
    %c3_i32 = arith.constant 3 : i32
    %96 = vector.broadcast %c3_i32 : i32 to vector<8x576xi32>
    %97 = arith.select %95, %96, %89 : vector<8x576xi1>, vector<8x576xi32>
    %98 = arith.minimumf %90, %94 : vector<8x576xf32>
    %c4 = arith.constant 4 : index
    %99 = memref.load %arg5[%c4] : memref<6xf32, #tpu.memory_space<smem>>
    %100 = vector.broadcast %99 : f32 to vector<8x576xf32>
    %101 = arith.subf %69, %100 : vector<8x576xf32>
    %102 = arith.mulf %101, %101 : vector<8x576xf32>
    %103 = arith.cmpf olt, %102, %98 : vector<8x576xf32>
    %c4_i32 = arith.constant 4 : i32
    %104 = vector.broadcast %c4_i32 : i32 to vector<8x576xi32>
    %105 = arith.select %103, %104, %97 : vector<8x576xi1>, vector<8x576xi32>
    %106 = arith.minimumf %98, %102 : vector<8x576xf32>
    %c5 = arith.constant 5 : index
    %107 = memref.load %arg5[%c5] : memref<6xf32, #tpu.memory_space<smem>>
    %108 = vector.broadcast %107 : f32 to vector<8x576xf32>
    %109 = arith.subf %69, %108 : vector<8x576xf32>
    %110 = arith.mulf %109, %109 : vector<8x576xf32>
    %111 = arith.cmpf olt, %110, %106 : vector<8x576xf32>
    %c5_i32 = arith.constant 5 : i32
    %112 = vector.broadcast %c5_i32 : i32 to vector<8x576xi32>
    %113 = arith.select %111, %112, %105 : vector<8x576xi1>, vector<8x576xi32>
    %114 = arith.minimumf %106, %110 : vector<8x576xf32>
    %cst_86 = arith.constant 0.000000e+00 : f32
    %115 = vector.broadcast %cst_86 : f32 to vector<8x576xf32>
    %cst_87 = arith.constant 0.000000e+00 : f32
    %116 = vector.broadcast %cst_87 : f32 to vector<8x576xf32>
    %c0_88 = arith.constant 0 : index
    %117 = memref.load %arg5[%c0_88] : memref<6xf32, #tpu.memory_space<smem>>
    %118 = vector.broadcast %117 : f32 to vector<8x576xf32>
    %119 = arith.subf %69, %118 : vector<8x576xf32>
    %120 = arith.mulf %119, %119 : vector<8x576xf32>
    %121 = arith.subf %120, %114 : vector<8x576xf32>
    %cst_89 = arith.constant -1.000000e+00 : f32
    %122 = vector.broadcast %cst_89 : f32 to vector<8x576xf32>
    %123 = arith.mulf %122, %121 : vector<8x576xf32>
    %124 = math.exp %123 : vector<8x576xf32>
    %125 = vector.broadcast %117 : f32 to vector<8x576xf32>
    %126 = arith.mulf %124, %125 : vector<8x576xf32>
    %127 = arith.addf %115, %126 : vector<8x576xf32>
    %128 = arith.addf %116, %124 : vector<8x576xf32>
    %c1_90 = arith.constant 1 : index
    %129 = memref.load %arg5[%c1_90] : memref<6xf32, #tpu.memory_space<smem>>
    %130 = vector.broadcast %129 : f32 to vector<8x576xf32>
    %131 = arith.subf %69, %130 : vector<8x576xf32>
    %132 = arith.mulf %131, %131 : vector<8x576xf32>
    %133 = arith.subf %132, %114 : vector<8x576xf32>
    %cst_91 = arith.constant -1.000000e+00 : f32
    %134 = vector.broadcast %cst_91 : f32 to vector<8x576xf32>
    %135 = arith.mulf %134, %133 : vector<8x576xf32>
    %136 = math.exp %135 : vector<8x576xf32>
    %137 = vector.broadcast %129 : f32 to vector<8x576xf32>
    %138 = arith.mulf %136, %137 : vector<8x576xf32>
    %139 = arith.addf %127, %138 : vector<8x576xf32>
    %140 = arith.addf %128, %136 : vector<8x576xf32>
    %c2_92 = arith.constant 2 : index
    %141 = memref.load %arg5[%c2_92] : memref<6xf32, #tpu.memory_space<smem>>
    %142 = vector.broadcast %141 : f32 to vector<8x576xf32>
    %143 = arith.subf %69, %142 : vector<8x576xf32>
    %144 = arith.mulf %143, %143 : vector<8x576xf32>
    %145 = arith.subf %144, %114 : vector<8x576xf32>
    %cst_93 = arith.constant -1.000000e+00 : f32
    %146 = vector.broadcast %cst_93 : f32 to vector<8x576xf32>
    %147 = arith.mulf %146, %145 : vector<8x576xf32>
    %148 = math.exp %147 : vector<8x576xf32>
    %149 = vector.broadcast %141 : f32 to vector<8x576xf32>
    %150 = arith.mulf %148, %149 : vector<8x576xf32>
    %151 = arith.addf %139, %150 : vector<8x576xf32>
    %152 = arith.addf %140, %148 : vector<8x576xf32>
    %c3_94 = arith.constant 3 : index
    %153 = memref.load %arg5[%c3_94] : memref<6xf32, #tpu.memory_space<smem>>
    %154 = vector.broadcast %153 : f32 to vector<8x576xf32>
    %155 = arith.subf %69, %154 : vector<8x576xf32>
    %156 = arith.mulf %155, %155 : vector<8x576xf32>
    %157 = arith.subf %156, %114 : vector<8x576xf32>
    %cst_95 = arith.constant -1.000000e+00 : f32
    %158 = vector.broadcast %cst_95 : f32 to vector<8x576xf32>
    %159 = arith.mulf %158, %157 : vector<8x576xf32>
    %160 = math.exp %159 : vector<8x576xf32>
    %161 = vector.broadcast %153 : f32 to vector<8x576xf32>
    %162 = arith.mulf %160, %161 : vector<8x576xf32>
    %163 = arith.addf %151, %162 : vector<8x576xf32>
    %164 = arith.addf %152, %160 : vector<8x576xf32>
    %c4_96 = arith.constant 4 : index
    %165 = memref.load %arg5[%c4_96] : memref<6xf32, #tpu.memory_space<smem>>
    %166 = vector.broadcast %165 : f32 to vector<8x576xf32>
    %167 = arith.subf %69, %166 : vector<8x576xf32>
    %168 = arith.mulf %167, %167 : vector<8x576xf32>
    %169 = arith.subf %168, %114 : vector<8x576xf32>
    %cst_97 = arith.constant -1.000000e+00 : f32
    %170 = vector.broadcast %cst_97 : f32 to vector<8x576xf32>
    %171 = arith.mulf %170, %169 : vector<8x576xf32>
    %172 = math.exp %171 : vector<8x576xf32>
    %173 = vector.broadcast %165 : f32 to vector<8x576xf32>
    %174 = arith.mulf %172, %173 : vector<8x576xf32>
    %175 = arith.addf %163, %174 : vector<8x576xf32>
    %176 = arith.addf %164, %172 : vector<8x576xf32>
    %c5_98 = arith.constant 5 : index
    %177 = memref.load %arg5[%c5_98] : memref<6xf32, #tpu.memory_space<smem>>
    %178 = vector.broadcast %177 : f32 to vector<8x576xf32>
    %179 = arith.subf %69, %178 : vector<8x576xf32>
    %180 = arith.mulf %179, %179 : vector<8x576xf32>
    %181 = arith.subf %180, %114 : vector<8x576xf32>
    %cst_99 = arith.constant -1.000000e+00 : f32
    %182 = vector.broadcast %cst_99 : f32 to vector<8x576xf32>
    %183 = arith.mulf %182, %181 : vector<8x576xf32>
    %184 = math.exp %183 : vector<8x576xf32>
    %185 = vector.broadcast %177 : f32 to vector<8x576xf32>
    %186 = arith.mulf %184, %185 : vector<8x576xf32>
    %187 = arith.addf %175, %186 : vector<8x576xf32>
    %188 = arith.addf %176, %184 : vector<8x576xf32>
    %189 = tpu.reciprocal %188 {approx = true} : vector<8x576xf32> -> vector<8x576xf32>
    %190 = arith.mulf %187, %189 : vector<8x576xf32>
    %cst_100 = arith.constant 0.000000e+00 : f32
    %191 = vector.broadcast %cst_100 : f32 to vector<8x342xf32>
    %c0_101 = arith.constant 0 : index
    %c0_102 = arith.constant 0 : index
    %192 = vector.load %arg13[%c0_101, %c0_102] : memref<8x342xf32, #tpu.memory_space<vmem>>, vector<8x342xf32>
    tpu.vector_store %arg13[%c0_101, %c0_102], %191 {strides = array<i32>} : memref<8x342xf32, #tpu.memory_space<vmem>>, vector<8x342xf32>,
    %193 = vector.extract_strided_slice %67 {offsets = [0, 0], sizes = [1, 288], strides = [1, 1]} : vector<1x576xf32> to vector<1x288xf32>
    %c0_103 = arith.constant 0 : index
    %c0_104 = arith.constant 0 : index
    %c0_105 = arith.constant 0 : index
    %194 = vector.load %arg9[%c0_103, %c0_104, %c0_105] : memref<2x1x288xf32, #tpu.memory_space<vmem>>, vector<1x1x288xf32>
    %195 = vector.shape_cast %194 : vector<1x1x288xf32> to vector<1x288xf32>
    %196 = vector.shape_cast %193 : vector<1x288xf32> to vector<1x1x288xf32>
    tpu.vector_store %arg9[%c0_103, %c0_104, %c0_105], %196 {strides = array<i32>} : memref<2x1x288xf32, #tpu.memory_space<vmem>>, vector<1x1x288xf32>,
    %197 = vector.extract_strided_slice %190 {offsets = [0, 0], sizes = [8, 288], strides = [1, 1]} : vector<8x576xf32> to vector<8x288xf32>
    %c0_106 = arith.constant 0 : index
    %c0_107 = arith.constant 0 : index
    %c0_108 = arith.constant 0 : index
    %198 = vector.load %arg10[%c0_106, %c0_107, %c0_108] : memref<2x8x288xf32, #tpu.memory_space<vmem>>, vector<1x8x288xf32>
    %199 = vector.shape_cast %198 : vector<1x8x288xf32> to vector<8x288xf32>
    %200 = vector.shape_cast %197 : vector<8x288xf32> to vector<1x8x288xf32>
    tpu.vector_store %arg10[%c0_106, %c0_107, %c0_108], %200 {strides = array<i32>} : memref<2x8x288xf32, #tpu.memory_space<vmem>>, vector<1x8x288xf32>,
    %201 = vector.extract_strided_slice %113 {offsets = [0, 0], sizes = [8, 288], strides = [1, 1]} : vector<8x576xi32> to vector<8x288xi32>
    %c0_109 = arith.constant 0 : index
    %c0_110 = arith.constant 0 : index
    %c0_111 = arith.constant 0 : index
    %202 = vector.load %arg11[%c0_109, %c0_110, %c0_111] : memref<2x8x288xi32, #tpu.memory_space<vmem>>, vector<1x8x288xi32>
    %203 = vector.shape_cast %202 : vector<1x8x288xi32> to vector<8x288xi32>
    %204 = vector.shape_cast %201 : vector<8x288xi32> to vector<1x8x288xi32>
    tpu.vector_store %arg11[%c0_109, %c0_110, %c0_111], %204 {strides = array<i32>} : memref<2x8x288xi32, #tpu.memory_space<vmem>>, vector<1x8x288xi32>,
    %205 = vector.extract_strided_slice %190 {offsets = [0, 0], sizes = [8, 288], strides = [1, 1]} : vector<8x576xf32> to vector<8x288xf32>
    %206 = vector.broadcast %0 : vector<1x288xf32> to vector<8x288xf32>
    %207 = arith.mulf %205, %206 : vector<8x288xf32>
    %c0_112 = arith.constant 0 : index
    %c19_113 = arith.constant 19 : index
    %208 = vector.load %arg13[%c0_112, %c19_113] : memref<8x342xf32, #tpu.memory_space<vmem>>, vector<8x288xf32>
    tpu.vector_store %arg13[%c0_112, %c19_113], %207 {strides = array<i32>} : memref<8x342xf32, #tpu.memory_space<vmem>>, vector<8x288xf32>,
    %c0_114 = arith.constant 0 : index
    %c0_115 = arith.constant 0 : index
    %209 = vector.load %arg13[%c0_114, %c0_115] : memref<8x342xf32, #tpu.memory_space<vmem>>, vector<8x288xf32>
    %c0_116 = arith.constant 0 : index
    %c0_117 = arith.constant 0 : index
    %210 = vector.load %arg14[%c0_116, %c0_117] : memref<72x576xf32, #tpu.memory_space<vmem>>, vector<8x288xf32>
    tpu.vector_store %arg14[%c0_116, %c0_117], %209 {strides = array<i32>} : memref<72x576xf32, #tpu.memory_space<vmem>>, vector<8x288xf32>,
    %c0_118 = arith.constant 0 : index
    %c1_119 = arith.constant 1 : index
    %211 = vector.load %arg13[%c0_118, %c1_119] : memref<8x342xf32, #tpu.memory_space<vmem>>, vector<8x288xf32>
    %c8 = arith.constant 8 : index
    %c0_120 = arith.constant 0 : index
    %212 = vector.load %arg14[%c8, %c0_120] : memref<72x576xf32, #tpu.memory_space<vmem>>, vector<8x288xf32>
    tpu.vector_store %arg14[%c8, %c0_120], %211 {strides = array<i32>} : memref<72x576xf32, #tpu.memory_space<vmem>>, vector<8x288xf32>,
    %c0_121 = arith.constant 0 : index
    %c2_122 = arith.constant 2 : index
    %213 = vector.load %arg13[%c0_121, %c2_122] : memref<8x342xf32, #tpu.memory_space<vmem>>, vector<8x288xf32>
    %c16 = arith.constant 16 : index
    %c0_123 = arith.constant 0 : index
    %214 = vector.load %arg14[%c16, %c0_123] : memref<72x576xf32, #tpu.memory_space<vmem>>, vector<8x288xf32>
    tpu.vector_store %arg14[%c16, %c0_123], %213 {strides = array<i32>} : memref<72x576xf32, #tpu.memory_space<vmem>>, vector<8x288xf32>,
    %c0_124 = arith.constant 0 : index
    %c18_125 = arith.constant 18 : index
    %215 = vector.load %arg13[%c0_124, %c18_125] : memref<8x342xf32, #tpu.memory_space<vmem>>, vector<8x288xf32>
    %c24_126 = arith.constant 24 : index
    %c0_127 = arith.constant 0 : index
    %216 = vector.load %arg14[%c24_126, %c0_127] : memref<72x576xf32, #tpu.memory_space<vmem>>, vector<8x288xf32>
    tpu.vector_store %arg14[%c24_126, %c0_127], %215 {strides = array<i32>} : memref<72x576xf32, #tpu.memory_space<vmem>>, vector<8x288xf32>,
    %c0_128 = arith.constant 0 : index
    %c19_129 = arith.constant 19 : index
    %217 = vector.load %arg13[%c0_128, %c19_129] : memref<8x342xf32, #tpu.memory_space<vmem>>, vector<8x288xf32>
    %c32 = arith.constant 32 : index
    %c0_130 = arith.constant 0 : index
    %218 = vector.load %arg14[%c32, %c0_130] : memref<72x576xf32, #tpu.memory_space<vmem>>, vector<8x288xf32>
    tpu.vector_store %arg14[%c32, %c0_130], %217 {strides = array<i32>} : memref<72x576xf32, #tpu.memory_space<vmem>>, vector<8x288xf32>,
    %c0_131 = arith.constant 0 : index
    %c20_132 = arith.constant 20 : index
    %219 = vector.load %arg13[%c0_131, %c20_132] : memref<8x342xf32, #tpu.memory_space<vmem>>, vector<8x288xf32>
    %c40 = arith.constant 40 : index
    %c0_133 = arith.constant 0 : index
    %220 = vector.load %arg14[%c40, %c0_133] : memref<72x576xf32, #tpu.memory_space<vmem>>, vector<8x288xf32>
    tpu.vector_store %arg14[%c40, %c0_133], %219 {strides = array<i32>} : memref<72x576xf32, #tpu.memory_space<vmem>>, vector<8x288xf32>,
    %c0_134 = arith.constant 0 : index
    %c36_135 = arith.constant 36 : index
    %221 = vector.load %arg13[%c0_134, %c36_135] : memref<8x342xf32, #tpu.memory_space<vmem>>, vector<8x288xf32>
    %c48 = arith.constant 48 : index
    %c0_136 = arith.constant 0 : index
    %222 = vector.load %arg14[%c48, %c0_136] : memref<72x576xf32, #tpu.memory_space<vmem>>, vector<8x288xf32>
    tpu.vector_store %arg14[%c48, %c0_136], %221 {strides = array<i32>} : memref<72x576xf32, #tpu.memory_space<vmem>>, vector<8x288xf32>,
    %c0_137 = arith.constant 0 : index
    %c37_138 = arith.constant 37 : index
    %223 = vector.load %arg13[%c0_137, %c37_138] : memref<8x342xf32, #tpu.memory_space<vmem>>, vector<8x288xf32>
    %c56 = arith.constant 56 : index
    %c0_139 = arith.constant 0 : index
    %224 = vector.load %arg14[%c56, %c0_139] : memref<72x576xf32, #tpu.memory_space<vmem>>, vector<8x288xf32>
    tpu.vector_store %arg14[%c56, %c0_139], %223 {strides = array<i32>} : memref<72x576xf32, #tpu.memory_space<vmem>>, vector<8x288xf32>,
    %c0_140 = arith.constant 0 : index
    %c38_141 = arith.constant 38 : index
    %225 = vector.load %arg13[%c0_140, %c38_141] : memref<8x342xf32, #tpu.memory_space<vmem>>, vector<8x288xf32>
    %c64 = arith.constant 64 : index
    %c0_142 = arith.constant 0 : index
    %226 = vector.load %arg14[%c64, %c0_142] : memref<72x576xf32, #tpu.memory_space<vmem>>, vector<8x288xf32>
    tpu.vector_store %arg14[%c64, %c0_142], %225 {strides = array<i32>} : memref<72x576xf32, #tpu.memory_space<vmem>>, vector<8x288xf32>,
    %227 = vector.extract_strided_slice %67 {offsets = [0, 288], sizes = [1, 288], strides = [1, 1]} : vector<1x576xf32> to vector<1x288xf32>
    %c1_143 = arith.constant 1 : index
    %c0_144 = arith.constant 0 : index
    %c0_145 = arith.constant 0 : index
    %228 = vector.load %arg9[%c1_143, %c0_144, %c0_145] : memref<2x1x288xf32, #tpu.memory_space<vmem>>, vector<1x1x288xf32>
    %229 = vector.shape_cast %228 : vector<1x1x288xf32> to vector<1x288xf32>
    %230 = vector.shape_cast %227 : vector<1x288xf32> to vector<1x1x288xf32>
    tpu.vector_store %arg9[%c1_143, %c0_144, %c0_145], %230 {strides = array<i32>} : memref<2x1x288xf32, #tpu.memory_space<vmem>>, vector<1x1x288xf32>,
    %231 = vector.extract_strided_slice %190 {offsets = [0, 288], sizes = [8, 288], strides = [1, 1]} : vector<8x576xf32> to vector<8x288xf32>
    %c1_146 = arith.constant 1 : index
    %c0_147 = arith.constant 0 : index
    %c0_148 = arith.constant 0 : index
    %232 = vector.load %arg10[%c1_146, %c0_147, %c0_148] : memref<2x8x288xf32, #tpu.memory_space<vmem>>, vector<1x8x288xf32>
    %233 = vector.shape_cast %232 : vector<1x8x288xf32> to vector<8x288xf32>
    %234 = vector.shape_cast %231 : vector<8x288xf32> to vector<1x8x288xf32>
    tpu.vector_store %arg10[%c1_146, %c0_147, %c0_148], %234 {strides = array<i32>} : memref<2x8x288xf32, #tpu.memory_space<vmem>>, vector<1x8x288xf32>,
    %235 = vector.extract_strided_slice %113 {offsets = [0, 288], sizes = [8, 288], strides = [1, 1]} : vector<8x576xi32> to vector<8x288xi32>
    %c1_149 = arith.constant 1 : index
    %c0_150 = arith.constant 0 : index
    %c0_151 = arith.constant 0 : index
    %236 = vector.load %arg11[%c1_149, %c0_150, %c0_151] : memref<2x8x288xi32, #tpu.memory_space<vmem>>, vector<1x8x288xi32>
    %237 = vector.shape_cast %236 : vector<1x8x288xi32> to vector<8x288xi32>
    %238 = vector.shape_cast %235 : vector<8x288xi32> to vector<1x8x288xi32>
    tpu.vector_store %arg11[%c1_149, %c0_150, %c0_151], %238 {strides = array<i32>} : memref<2x8x288xi32, #tpu.memory_space<vmem>>, vector<1x8x288xi32>,
    %239 = vector.extract_strided_slice %190 {offsets = [0, 288], sizes = [8, 288], strides = [1, 1]} : vector<8x576xf32> to vector<8x288xf32>
    %240 = vector.broadcast %0 : vector<1x288xf32> to vector<8x288xf32>
    %241 = arith.mulf %239, %240 : vector<8x288xf32>
    %c0_152 = arith.constant 0 : index
    %c19_153 = arith.constant 19 : index
    %242 = vector.load %arg13[%c0_152, %c19_153] : memref<8x342xf32, #tpu.memory_space<vmem>>, vector<8x288xf32>
    tpu.vector_store %arg13[%c0_152, %c19_153], %241 {strides = array<i32>} : memref<8x342xf32, #tpu.memory_space<vmem>>, vector<8x288xf32>,
    %c0_154 = arith.constant 0 : index
    %c0_155 = arith.constant 0 : index
    %243 = vector.load %arg13[%c0_154, %c0_155] : memref<8x342xf32, #tpu.memory_space<vmem>>, vector<8x288xf32>
    %c0_156 = arith.constant 0 : index
    %c288_157 = arith.constant 288 : index
    %244 = vector.load %arg14[%c0_156, %c288_157] : memref<72x576xf32, #tpu.memory_space<vmem>>, vector<8x288xf32>
    tpu.vector_store %arg14[%c0_156, %c288_157], %243 {strides = array<i32>} : memref<72x576xf32, #tpu.memory_space<vmem>>, vector<8x288xf32>,
    %c0_158 = arith.constant 0 : index
    %c1_159 = arith.constant 1 : index
    %245 = vector.load %arg13[%c0_158, %c1_159] : memref<8x342xf32, #tpu.memory_space<vmem>>, vector<8x288xf32>
    %c8_160 = arith.constant 8 : index
    %c288_161 = arith.constant 288 : index
    %246 = vector.load %arg14[%c8_160, %c288_161] : memref<72x576xf32, #tpu.memory_space<vmem>>, vector<8x288xf32>
    tpu.vector_store %arg14[%c8_160, %c288_161], %245 {strides = array<i32>} : memref<72x576xf32, #tpu.memory_space<vmem>>, vector<8x288xf32>,
    %c0_162 = arith.constant 0 : index
    %c2_163 = arith.constant 2 : index
    %247 = vector.load %arg13[%c0_162, %c2_163] : memref<8x342xf32, #tpu.memory_space<vmem>>, vector<8x288xf32>
    %c16_164 = arith.constant 16 : index
    %c288_165 = arith.constant 288 : index
    %248 = vector.load %arg14[%c16_164, %c288_165] : memref<72x576xf32, #tpu.memory_space<vmem>>, vector<8x288xf32>
    tpu.vector_store %arg14[%c16_164, %c288_165], %247 {strides = array<i32>} : memref<72x576xf32, #tpu.memory_space<vmem>>, vector<8x288xf32>,
    %c0_166 = arith.constant 0 : index
    %c18_167 = arith.constant 18 : index
    %249 = vector.load %arg13[%c0_166, %c18_167] : memref<8x342xf32, #tpu.memory_space<vmem>>, vector<8x288xf32>
    %c24_168 = arith.constant 24 : index
    %c288_169 = arith.constant 288 : index
    %250 = vector.load %arg14[%c24_168, %c288_169] : memref<72x576xf32, #tpu.memory_space<vmem>>, vector<8x288xf32>
    tpu.vector_store %arg14[%c24_168, %c288_169], %249 {strides = array<i32>} : memref<72x576xf32, #tpu.memory_space<vmem>>, vector<8x288xf32>,
    %c0_170 = arith.constant 0 : index
    %c19_171 = arith.constant 19 : index
    %251 = vector.load %arg13[%c0_170, %c19_171] : memref<8x342xf32, #tpu.memory_space<vmem>>, vector<8x288xf32>
    %c32_172 = arith.constant 32 : index
    %c288_173 = arith.constant 288 : index
    %252 = vector.load %arg14[%c32_172, %c288_173] : memref<72x576xf32, #tpu.memory_space<vmem>>, vector<8x288xf32>
    tpu.vector_store %arg14[%c32_172, %c288_173], %251 {strides = array<i32>} : memref<72x576xf32, #tpu.memory_space<vmem>>, vector<8x288xf32>,
    %c0_174 = arith.constant 0 : index
    %c20_175 = arith.constant 20 : index
    %253 = vector.load %arg13[%c0_174, %c20_175] : memref<8x342xf32, #tpu.memory_space<vmem>>, vector<8x288xf32>
    %c40_176 = arith.constant 40 : index
    %c288_177 = arith.constant 288 : index
    %254 = vector.load %arg14[%c40_176, %c288_177] : memref<72x576xf32, #tpu.memory_space<vmem>>, vector<8x288xf32>
    tpu.vector_store %arg14[%c40_176, %c288_177], %253 {strides = array<i32>} : memref<72x576xf32, #tpu.memory_space<vmem>>, vector<8x288xf32>,
    %c0_178 = arith.constant 0 : index
    %c36_179 = arith.constant 36 : index
    %255 = vector.load %arg13[%c0_178, %c36_179] : memref<8x342xf32, #tpu.memory_space<vmem>>, vector<8x288xf32>
    %c48_180 = arith.constant 48 : index
    %c288_181 = arith.constant 288 : index
    %256 = vector.load %arg14[%c48_180, %c288_181] : memref<72x576xf32, #tpu.memory_space<vmem>>, vector<8x288xf32>
    tpu.vector_store %arg14[%c48_180, %c288_181], %255 {strides = array<i32>} : memref<72x576xf32, #tpu.memory_space<vmem>>, vector<8x288xf32>,
    %c0_182 = arith.constant 0 : index
    %c37_183 = arith.constant 37 : index
    %257 = vector.load %arg13[%c0_182, %c37_183] : memref<8x342xf32, #tpu.memory_space<vmem>>, vector<8x288xf32>
    %c56_184 = arith.constant 56 : index
    %c288_185 = arith.constant 288 : index
    %258 = vector.load %arg14[%c56_184, %c288_185] : memref<72x576xf32, #tpu.memory_space<vmem>>, vector<8x288xf32>
    tpu.vector_store %arg14[%c56_184, %c288_185], %257 {strides = array<i32>} : memref<72x576xf32, #tpu.memory_space<vmem>>, vector<8x288xf32>,
    %c0_186 = arith.constant 0 : index
    %c38_187 = arith.constant 38 : index
    %259 = vector.load %arg13[%c0_186, %c38_187] : memref<8x342xf32, #tpu.memory_space<vmem>>, vector<8x288xf32>
    %c64_188 = arith.constant 64 : index
    %c288_189 = arith.constant 288 : index
    %260 = vector.load %arg14[%c64_188, %c288_189] : memref<72x576xf32, #tpu.memory_space<vmem>>, vector<8x288xf32>
    tpu.vector_store %arg14[%c64_188, %c288_189], %259 {strides = array<i32>} : memref<72x576xf32, #tpu.memory_space<vmem>>, vector<8x288xf32>,
    %c0_190 = arith.constant 0 : index
    %c0_191 = arith.constant 0 : index
    %261 = vector.load %arg6[%c0_190, %c0_191] : memref<3x72xbf16, #tpu.memory_space<vmem>>, vector<3x72xbf16>
    %c0_192 = arith.constant 0 : index
    %c0_193 = arith.constant 0 : index
    %262 = vector.load %arg14[%c0_192, %c0_193] : memref<72x576xf32, #tpu.memory_space<vmem>>, vector<72x576xf32>
    %263 = arith.truncf %262 : vector<72x576xf32> to vector<72x576xbf16>
    %cst_194 = arith.constant dense<0.000000e+00> : vector<3x576xf32>
    %264 = tpu.matmul %261, %263, %cst_194 {dimension_numbers = #tpu.dot_dimension_numbers<[1], [0], [0], [1], [0, 0, 1, 1], [], []>} : vector<3x72xbf16>, vector<72x576xbf16>, vector<3x576xf32> -> vector<3x576xf32>
    %c0_195 = arith.constant 0 : index
    %c0_196 = arith.constant 0 : index
    %265 = vector.load %arg7[%c0_195, %c0_196] : memref<3x1xf32, #tpu.memory_space<vmem>>, vector<3x1xf32>
    %266 = vector.broadcast %265 : vector<3x1xf32> to vector<3x576xf32>
    %267 = arith.addf %264, %266 : vector<3x576xf32>
    %268 = arith.negf %267 : vector<3x576xf32>
    %269 = math.exp %268 : vector<3x576xf32>
    %cst_197 = arith.constant 1.000000e+00 : f32
    %270 = vector.broadcast %cst_197 : f32 to vector<3x576xf32>
    %271 = arith.addf %270, %269 : vector<3x576xf32>
    %272 = arith.divf %270, %271 : vector<3x576xf32>
    %273 = vector.extract_strided_slice %272 {offsets = [0, 0], sizes = [3, 288], strides = [1, 1]} : vector<3x576xf32> to vector<3x288xf32>
    %c0_198 = arith.constant 0 : index
    %c0_199 = arith.constant 0 : index
    %c0_200 = arith.constant 0 : index
    %274 = vector.load %arg8[%c0_198, %c0_199, %c0_200] : memref<2x3x288xf32, #tpu.memory_space<vmem>>, vector<1x3x288xf32>
    %275 = vector.shape_cast %274 : vector<1x3x288xf32> to vector<3x288xf32>
    %276 = vector.shape_cast %273 : vector<3x288xf32> to vector<1x3x288xf32>
    tpu.vector_store %arg8[%c0_198, %c0_199, %c0_200], %276 {strides = array<i32>} : memref<2x3x288xf32, #tpu.memory_space<vmem>>, vector<1x3x288xf32>,
    %277 = vector.extract_strided_slice %272 {offsets = [0, 288], sizes = [3, 288], strides = [1, 1]} : vector<3x576xf32> to vector<3x288xf32>
    %c1_201 = arith.constant 1 : index
    %c0_202 = arith.constant 0 : index
    %c0_203 = arith.constant 0 : index
    %278 = vector.load %arg8[%c1_201, %c0_202, %c0_203] : memref<2x3x288xf32, #tpu.memory_space<vmem>>, vector<1x3x288xf32>
    %279 = vector.shape_cast %278 : vector<1x3x288xf32> to vector<3x288xf32>
    %280 = vector.shape_cast %277 : vector<3x288xf32> to vector<1x3x288xf32>
    tpu.vector_store %arg8[%c1_201, %c0_202, %c0_203], %280 {strides = array<i32>} : memref<2x3x288xf32, #tpu.memory_space<vmem>>, vector<1x3x288xf32>,
    return
  }
  func.func @transform_0(%arg0: i32) -> (i32, i32, i32) {
    %c0_i32 = arith.constant 0 : i32
    %c0_i32_0 = arith.constant 0 : i32
    %c0_i32_1 = arith.constant 0 : i32
    return %arg0, %c0_i32, %c0_i32_0 : i32, i32, i32
  }
  func.func @transform_1(%arg0: i32) -> (i32, i32) {
    %c0_i32 = arith.constant 0 : i32
    %c0_i32_0 = arith.constant 0 : i32
    %c0_i32_1 = arith.constant 0 : i32
    return %c0_i32, %c0_i32_0 : i32, i32
  }
  func.func @transform_2(%arg0: i32) -> (i32, i32) {
    %c0_i32 = arith.constant 0 : i32
    %c0_i32_0 = arith.constant 0 : i32
    %c0_i32_1 = arith.constant 0 : i32
    return %c0_i32, %c0_i32_0 : i32, i32
  }
  func.func @transform_3(%arg0: i32) -> (i32, i32) {
    %c0_i32 = arith.constant 0 : i32
    %c0_i32_0 = arith.constant 0 : i32
    %c0_i32_1 = arith.constant 0 : i32
    return %c0_i32, %c0_i32_0 : i32, i32
  }
  func.func @transform_4(%arg0: i32) -> i32 {
    %c0_i32 = arith.constant 0 : i32
    %c0_i32_0 = arith.constant 0 : i32
    return %c0_i32 : i32
  }
  func.func @transform_5(%arg0: i32) -> (i32, i32) {
    %c0_i32 = arith.constant 0 : i32
    %c0_i32_0 = arith.constant 0 : i32
    %c0_i32_1 = arith.constant 0 : i32
    return %c0_i32, %c0_i32_0 : i32, i32
  }
  func.func @transform_6(%arg0: i32) -> (i32, i32) {
    %c0_i32 = arith.constant 0 : i32
    %c0_i32_0 = arith.constant 0 : i32
    %c0_i32_1 = arith.constant 0 : i32
    return %c0_i32, %c0_i32_0 : i32, i32
  }
  func.func @transform_7(%arg0: i32) -> (i32, i32, i32) {
    %c0_i32 = arith.constant 0 : i32
    %c0_i32_0 = arith.constant 0 : i32
    %c0_i32_1 = arith.constant 0 : i32
    return %arg0, %c0_i32, %c0_i32_0 : i32, i32, i32
  }
  func.func @transform_8(%arg0: i32) -> (i32, i32, i32) {
    %c0_i32 = arith.constant 0 : i32
    %c0_i32_0 = arith.constant 0 : i32
    %c0_i32_1 = arith.constant 0 : i32
    return %arg0, %c0_i32, %c0_i32_0 : i32, i32, i32
  }
  func.func @transform_9(%arg0: i32) -> (i32, i32, i32) {
    %c0_i32 = arith.constant 0 : i32
    %c0_i32_0 = arith.constant 0 : i32
    %c0_i32_1 = arith.constant 0 : i32
    return %arg0, %c0_i32, %c0_i32_0 : i32, i32, i32
  }
  func.func @transform_10(%arg0: i32) -> (i32, i32, i32) {
    %c0_i32 = arith.constant 0 : i32
    %c0_i32_0 = arith.constant 0 : i32
    %c0_i32_1 = arith.constant 0 : i32
    return %arg0, %c0_i32, %c0_i32_0 : i32, i32, i32
  }
}

module attributes {stable_mosaic.version = 11 : i64} {
  func.func @_blockmatch_kernel(%arg0: i32, %arg1: memref<1x4x192xf32, #tpu.memory_space<vmem>>, %arg2: memref<1x4x192xf32, #tpu.memory_space<vmem>>, %arg3: memref<1x1x4xi32, #tpu.memory_space<vmem>>) attributes {dimension_semantics = [#tpu.dimension_semantics<parallel>], iteration_bounds = array<i64: 2>, scalar_prefetch = 0 : i64, scratch_operands = 0 : i64, tpu.core_type = #tpu.core_type<tc>, window_params = [{transform_indices = @transform_0, window_bounds = array<i64: 1, 4, 192>}, {transform_indices = @transform_1, window_bounds = array<i64: 1, 4, 192>}, {transform_indices = @transform_2, window_bounds = array<i64: 1, 1, 4>}]} {
    %c0 = arith.constant 0 : index
    %c0_0 = arith.constant 0 : index
    %c0_1 = arith.constant 0 : index
    %0 = vector.load %arg1[%c0, %c0_0, %c0_1] : memref<1x4x192xf32, #tpu.memory_space<vmem>>, vector<1x4x192xf32>
    %1 = vector.shape_cast %0 : vector<1x4x192xf32> to vector<4x192xf32>
    %c0_2 = arith.constant 0 : index
    %c0_3 = arith.constant 0 : index
    %c0_4 = arith.constant 0 : index
    %2 = vector.load %arg2[%c0_2, %c0_3, %c0_4] : memref<1x4x192xf32, #tpu.memory_space<vmem>>, vector<1x4x192xf32>
    %3 = vector.shape_cast %2 : vector<1x4x192xf32> to vector<4x192xf32>
    %cst = arith.constant dense<0.000000e+00> : vector<4x4xf32>
    %4 = tpu.matmul %1, %3, %cst {dimension_numbers = #tpu.dot_dimension_numbers<[1], [1], [0], [0], [0, 0, 1, 0], [], []>} : vector<4x192xf32>, vector<4x192xf32>, vector<4x4xf32> -> vector<4x4xf32>
    %cst_5 = arith.constant dense<0xFF800000> : vector<4xf32>
    %5 = vector.multi_reduction <maximumf>, %4, %cst_5 [0] : vector<4x4xf32> to vector<4xf32>
    %6 = vector.shape_cast %5 : vector<4xf32> to vector<1x4xf32>
    %7 = tpu.iota {dimensions = array<i32: 0>} : vector<4x4xi32>
    %8 = vector.broadcast %6 : vector<1x4xf32> to vector<4x4xf32>
    %9 = arith.cmpf oeq, %4, %8 : vector<4x4xf32>
    %c4_i32 = arith.constant 4 : i32
    %10 = vector.broadcast %c4_i32 : i32 to vector<4x4xi32>
    %11 = arith.select %9, %7, %10 : vector<4x4xi1>, vector<4x4xi32>
    %cst_6 = arith.constant dense<2147483647> : vector<4xi32>
    %12 = vector.multi_reduction <minsi>, %11, %cst_6 [0] : vector<4x4xi32> to vector<4xi32>
    %13 = vector.shape_cast %12 : vector<4xi32> to vector<1x4xi32>
    %c0_7 = arith.constant 0 : index
    %c0_8 = arith.constant 0 : index
    %c0_9 = arith.constant 0 : index
    %14 = vector.load %arg3[%c0_7, %c0_8, %c0_9] : memref<1x1x4xi32, #tpu.memory_space<vmem>>, vector<1x1x4xi32>
    %15 = vector.shape_cast %14 : vector<1x1x4xi32> to vector<1x4xi32>
    %16 = vector.shape_cast %13 : vector<1x4xi32> to vector<1x1x4xi32>
    tpu.vector_store %arg3[%c0_7, %c0_8, %c0_9], %16 {strides = array<i32>} : memref<1x1x4xi32, #tpu.memory_space<vmem>>, vector<1x1x4xi32>,
    return
  }
  func.func @transform_0(%arg0: i32) -> (i32, i32, i32) {
    %c0_i32 = arith.constant 0 : i32
    %c0_i32_0 = arith.constant 0 : i32
    %c0_i32_1 = arith.constant 0 : i32
    return %arg0, %c0_i32, %c0_i32_0 : i32, i32, i32
  }
  func.func @transform_1(%arg0: i32) -> (i32, i32, i32) {
    %c0_i32 = arith.constant 0 : i32
    %c0_i32_0 = arith.constant 0 : i32
    %c0_i32_1 = arith.constant 0 : i32
    return %arg0, %c0_i32, %c0_i32_0 : i32, i32, i32
  }
  func.func @transform_2(%arg0: i32) -> (i32, i32, i32) {
    %c0_i32 = arith.constant 0 : i32
    %c0_i32_0 = arith.constant 0 : i32
    %c0_i32_1 = arith.constant 0 : i32
    return %arg0, %c0_i32, %c0_i32_0 : i32, i32, i32
  }
}

module attributes {stable_mosaic.version = 11 : i64} {
  func.func @_sinet_kernel(%arg0: i32, %arg1: memref<1x6x342xf32, #tpu.memory_space<vmem>>, %arg2: memref<1x288xf32, #tpu.memory_space<vmem>>, %arg3: memref<16x54xbf16, #tpu.memory_space<vmem>>, %arg4: memref<16x1xf32, #tpu.memory_space<vmem>>, %arg5: memref<16x144xbf16, #tpu.memory_space<vmem>>, %arg6: memref<16x1xf32, #tpu.memory_space<vmem>>, %arg7: memref<3x144xbf16, #tpu.memory_space<vmem>>, %arg8: memref<3x1xf32, #tpu.memory_space<vmem>>, %arg9: memref<1x3x288xf32, #tpu.memory_space<vmem>>, %arg10: memref<54x288xf32, #tpu.memory_space<vmem>>, %arg11: memref<16x342xf32, #tpu.memory_space<vmem>>, %arg12: memref<144x288xf32, #tpu.memory_space<vmem>>) attributes {dimension_semantics = [#tpu.dimension_semantics<parallel>], iteration_bounds = array<i64: 2>, scalar_prefetch = 0 : i64, scratch_operands = 3 : i64, tpu.core_type = #tpu.core_type<tc>, window_params = [{transform_indices = @transform_0, window_bounds = array<i64: 1, 6, 342>}, {pipeline_mode = #tpu.pipeline_mode<synchronous>, transform_indices = @transform_1, window_bounds = array<i64: 1, 288>}, {pipeline_mode = #tpu.pipeline_mode<synchronous>, transform_indices = @transform_2, window_bounds = array<i64: 16, 54>}, {pipeline_mode = #tpu.pipeline_mode<synchronous>, transform_indices = @transform_3, window_bounds = array<i64: 16, 1>}, {pipeline_mode = #tpu.pipeline_mode<synchronous>, transform_indices = @transform_4, window_bounds = array<i64: 16, 144>}, {pipeline_mode = #tpu.pipeline_mode<synchronous>, transform_indices = @transform_5, window_bounds = array<i64: 16, 1>}, {pipeline_mode = #tpu.pipeline_mode<synchronous>, transform_indices = @transform_6, window_bounds = array<i64: 3, 144>}, {pipeline_mode = #tpu.pipeline_mode<synchronous>, transform_indices = @transform_7, window_bounds = array<i64: 3, 1>}, {transform_indices = @transform_8, window_bounds = array<i64: 1, 3, 288>}]} {
    %c0 = arith.constant 0 : index
    %c0_0 = arith.constant 0 : index
    %0 = vector.load %arg2[%c0, %c0_0] : memref<1x288xf32, #tpu.memory_space<vmem>>, vector<1x288xf32>
    %c0_1 = arith.constant 0 : index
    %c0_2 = arith.constant 0 : index
    %c0_3 = arith.constant 0 : index
    %1 = vector.load %arg1[%c0_1, %c0_2, %c0_3] : memref<1x6x342xf32, #tpu.memory_space<vmem>>, vector<1x6x288xf32>
    %2 = vector.shape_cast %1 : vector<1x6x288xf32> to vector<6x288xf32>
    %c0_4 = arith.constant 0 : index
    %c0_5 = arith.constant 0 : index
    %3 = vector.load %arg10[%c0_4, %c0_5] : memref<54x288xf32, #tpu.memory_space<vmem>>, vector<6x288xf32>
    tpu.vector_store %arg10[%c0_4, %c0_5], %2 {strides = array<i32>} : memref<54x288xf32, #tpu.memory_space<vmem>>, vector<6x288xf32>,
    %c0_6 = arith.constant 0 : index
    %c0_7 = arith.constant 0 : index
    %c1 = arith.constant 1 : index
    %4 = vector.load %arg1[%c0_6, %c0_7, %c1] : memref<1x6x342xf32, #tpu.memory_space<vmem>>, vector<1x6x288xf32>
    %5 = vector.shape_cast %4 : vector<1x6x288xf32> to vector<6x288xf32>
    %c6 = arith.constant 6 : index
    %c0_8 = arith.constant 0 : index
    %6 = vector.load %arg10[%c6, %c0_8] : memref<54x288xf32, #tpu.memory_space<vmem>>, vector<6x288xf32>
    tpu.vector_store %arg10[%c6, %c0_8], %5 {strides = array<i32>} : memref<54x288xf32, #tpu.memory_space<vmem>>, vector<6x288xf32>,
    %c0_9 = arith.constant 0 : index
    %c0_10 = arith.constant 0 : index
    %c2 = arith.constant 2 : index
    %7 = vector.load %arg1[%c0_9, %c0_10, %c2] : memref<1x6x342xf32, #tpu.memory_space<vmem>>, vector<1x6x288xf32>
    %8 = vector.shape_cast %7 : vector<1x6x288xf32> to vector<6x288xf32>
    %c12 = arith.constant 12 : index
    %c0_11 = arith.constant 0 : index
    %9 = vector.load %arg10[%c12, %c0_11] : memref<54x288xf32, #tpu.memory_space<vmem>>, vector<6x288xf32>
    tpu.vector_store %arg10[%c12, %c0_11], %8 {strides = array<i32>} : memref<54x288xf32, #tpu.memory_space<vmem>>, vector<6x288xf32>,
    %c0_12 = arith.constant 0 : index
    %c0_13 = arith.constant 0 : index
    %c18 = arith.constant 18 : index
    %10 = vector.load %arg1[%c0_12, %c0_13, %c18] : memref<1x6x342xf32, #tpu.memory_space<vmem>>, vector<1x6x288xf32>
    %11 = vector.shape_cast %10 : vector<1x6x288xf32> to vector<6x288xf32>
    %c18_14 = arith.constant 18 : index
    %c0_15 = arith.constant 0 : index
    %12 = vector.load %arg10[%c18_14, %c0_15] : memref<54x288xf32, #tpu.memory_space<vmem>>, vector<6x288xf32>
    tpu.vector_store %arg10[%c18_14, %c0_15], %11 {strides = array<i32>} : memref<54x288xf32, #tpu.memory_space<vmem>>, vector<6x288xf32>,
    %c0_16 = arith.constant 0 : index
    %c0_17 = arith.constant 0 : index
    %c19 = arith.constant 19 : index
    %13 = vector.load %arg1[%c0_16, %c0_17, %c19] : memref<1x6x342xf32, #tpu.memory_space<vmem>>, vector<1x6x288xf32>
    %14 = vector.shape_cast %13 : vector<1x6x288xf32> to vector<6x288xf32>
    %c24 = arith.constant 24 : index
    %c0_18 = arith.constant 0 : index
    %15 = vector.load %arg10[%c24, %c0_18] : memref<54x288xf32, #tpu.memory_space<vmem>>, vector<6x288xf32>
    tpu.vector_store %arg10[%c24, %c0_18], %14 {strides = array<i32>} : memref<54x288xf32, #tpu.memory_space<vmem>>, vector<6x288xf32>,
    %c0_19 = arith.constant 0 : index
    %c0_20 = arith.constant 0 : index
    %c20 = arith.constant 20 : index
    %16 = vector.load %arg1[%c0_19, %c0_20, %c20] : memref<1x6x342xf32, #tpu.memory_space<vmem>>, vector<1x6x288xf32>
    %17 = vector.shape_cast %16 : vector<1x6x288xf32> to vector<6x288xf32>
    %c30 = arith.constant 30 : index
    %c0_21 = arith.constant 0 : index
    %18 = vector.load %arg10[%c30, %c0_21] : memref<54x288xf32, #tpu.memory_space<vmem>>, vector<6x288xf32>
    tpu.vector_store %arg10[%c30, %c0_21], %17 {strides = array<i32>} : memref<54x288xf32, #tpu.memory_space<vmem>>, vector<6x288xf32>,
    %c0_22 = arith.constant 0 : index
    %c0_23 = arith.constant 0 : index
    %c36 = arith.constant 36 : index
    %19 = vector.load %arg1[%c0_22, %c0_23, %c36] : memref<1x6x342xf32, #tpu.memory_space<vmem>>, vector<1x6x288xf32>
    %20 = vector.shape_cast %19 : vector<1x6x288xf32> to vector<6x288xf32>
    %c36_24 = arith.constant 36 : index
    %c0_25 = arith.constant 0 : index
    %21 = vector.load %arg10[%c36_24, %c0_25] : memref<54x288xf32, #tpu.memory_space<vmem>>, vector<6x288xf32>
    tpu.vector_store %arg10[%c36_24, %c0_25], %20 {strides = array<i32>} : memref<54x288xf32, #tpu.memory_space<vmem>>, vector<6x288xf32>,
    %c0_26 = arith.constant 0 : index
    %c0_27 = arith.constant 0 : index
    %c37 = arith.constant 37 : index
    %22 = vector.load %arg1[%c0_26, %c0_27, %c37] : memref<1x6x342xf32, #tpu.memory_space<vmem>>, vector<1x6x288xf32>
    %23 = vector.shape_cast %22 : vector<1x6x288xf32> to vector<6x288xf32>
    %c42 = arith.constant 42 : index
    %c0_28 = arith.constant 0 : index
    %24 = vector.load %arg10[%c42, %c0_28] : memref<54x288xf32, #tpu.memory_space<vmem>>, vector<6x288xf32>
    tpu.vector_store %arg10[%c42, %c0_28], %23 {strides = array<i32>} : memref<54x288xf32, #tpu.memory_space<vmem>>, vector<6x288xf32>,
    %c0_29 = arith.constant 0 : index
    %c0_30 = arith.constant 0 : index
    %c38 = arith.constant 38 : index
    %25 = vector.load %arg1[%c0_29, %c0_30, %c38] : memref<1x6x342xf32, #tpu.memory_space<vmem>>, vector<1x6x288xf32>
    %26 = vector.shape_cast %25 : vector<1x6x288xf32> to vector<6x288xf32>
    %c48 = arith.constant 48 : index
    %c0_31 = arith.constant 0 : index
    %27 = vector.load %arg10[%c48, %c0_31] : memref<54x288xf32, #tpu.memory_space<vmem>>, vector<6x288xf32>
    tpu.vector_store %arg10[%c48, %c0_31], %26 {strides = array<i32>} : memref<54x288xf32, #tpu.memory_space<vmem>>, vector<6x288xf32>,
    %c0_32 = arith.constant 0 : index
    %c0_33 = arith.constant 0 : index
    %28 = vector.load %arg3[%c0_32, %c0_33] : memref<16x54xbf16, #tpu.memory_space<vmem>>, vector<16x54xbf16>
    %c0_34 = arith.constant 0 : index
    %c0_35 = arith.constant 0 : index
    %29 = vector.load %arg10[%c0_34, %c0_35] : memref<54x288xf32, #tpu.memory_space<vmem>>, vector<54x288xf32>
    %30 = arith.truncf %29 : vector<54x288xf32> to vector<54x288xbf16>
    %cst = arith.constant dense<0.000000e+00> : vector<16x288xf32>
    %31 = tpu.matmul %28, %30, %cst {dimension_numbers = #tpu.dot_dimension_numbers<[1], [0], [0], [1], [0, 0, 1, 1], [], []>} : vector<16x54xbf16>, vector<54x288xbf16>, vector<16x288xf32> -> vector<16x288xf32>
    %c0_36 = arith.constant 0 : index
    %c0_37 = arith.constant 0 : index
    %32 = vector.load %arg4[%c0_36, %c0_37] : memref<16x1xf32, #tpu.memory_space<vmem>>, vector<16x1xf32>
    %33 = vector.broadcast %32 : vector<16x1xf32> to vector<16x288xf32>
    %34 = arith.addf %31, %33 : vector<16x288xf32>
    %cst_38 = arith.constant 0.000000e+00 : f32
    %35 = vector.broadcast %cst_38 : f32 to vector<16x288xf32>
    %36 = arith.maximumf %34, %35 : vector<16x288xf32>
    %cst_39 = arith.constant 0.000000e+00 : f32
    %37 = vector.broadcast %cst_39 : f32 to vector<16x342xf32>
    %c0_40 = arith.constant 0 : index
    %c0_41 = arith.constant 0 : index
    %38 = vector.load %arg11[%c0_40, %c0_41] : memref<16x342xf32, #tpu.memory_space<vmem>>, vector<16x342xf32>
    tpu.vector_store %arg11[%c0_40, %c0_41], %37 {strides = array<i32>} : memref<16x342xf32, #tpu.memory_space<vmem>>, vector<16x342xf32>,
    %39 = vector.broadcast %0 : vector<1x288xf32> to vector<16x288xf32>
    %40 = arith.mulf %36, %39 : vector<16x288xf32>
    %c0_42 = arith.constant 0 : index
    %c19_43 = arith.constant 19 : index
    %41 = vector.load %arg11[%c0_42, %c19_43] : memref<16x342xf32, #tpu.memory_space<vmem>>, vector<16x288xf32>
    tpu.vector_store %arg11[%c0_42, %c19_43], %40 {strides = array<i32>} : memref<16x342xf32, #tpu.memory_space<vmem>>, vector<16x288xf32>,
    %c0_44 = arith.constant 0 : index
    %c0_45 = arith.constant 0 : index
    %42 = vector.load %arg11[%c0_44, %c0_45] : memref<16x342xf32, #tpu.memory_space<vmem>>, vector<16x288xf32>
    %c0_46 = arith.constant 0 : index
    %c0_47 = arith.constant 0 : index
    %43 = vector.load %arg12[%c0_46, %c0_47] : memref<144x288xf32, #tpu.memory_space<vmem>>, vector<16x288xf32>
    tpu.vector_store %arg12[%c0_46, %c0_47], %42 {strides = array<i32>} : memref<144x288xf32, #tpu.memory_space<vmem>>, vector<16x288xf32>,
    %c0_48 = arith.constant 0 : index
    %c1_49 = arith.constant 1 : index
    %44 = vector.load %arg11[%c0_48, %c1_49] : memref<16x342xf32, #tpu.memory_space<vmem>>, vector<16x288xf32>
    %c16 = arith.constant 16 : index
    %c0_50 = arith.constant 0 : index
    %45 = vector.load %arg12[%c16, %c0_50] : memref<144x288xf32, #tpu.memory_space<vmem>>, vector<16x288xf32>
    tpu.vector_store %arg12[%c16, %c0_50], %44 {strides = array<i32>} : memref<144x288xf32, #tpu.memory_space<vmem>>, vector<16x288xf32>,
    %c0_51 = arith.constant 0 : index
    %c2_52 = arith.constant 2 : index
    %46 = vector.load %arg11[%c0_51, %c2_52] : memref<16x342xf32, #tpu.memory_space<vmem>>, vector<16x288xf32>
    %c32 = arith.constant 32 : index
    %c0_53 = arith.constant 0 : index
    %47 = vector.load %arg12[%c32, %c0_53] : memref<144x288xf32, #tpu.memory_space<vmem>>, vector<16x288xf32>
    tpu.vector_store %arg12[%c32, %c0_53], %46 {strides = array<i32>} : memref<144x288xf32, #tpu.memory_space<vmem>>, vector<16x288xf32>,
    %c0_54 = arith.constant 0 : index
    %c18_55 = arith.constant 18 : index
    %48 = vector.load %arg11[%c0_54, %c18_55] : memref<16x342xf32, #tpu.memory_space<vmem>>, vector<16x288xf32>
    %c48_56 = arith.constant 48 : index
    %c0_57 = arith.constant 0 : index
    %49 = vector.load %arg12[%c48_56, %c0_57] : memref<144x288xf32, #tpu.memory_space<vmem>>, vector<16x288xf32>
    tpu.vector_store %arg12[%c48_56, %c0_57], %48 {strides = array<i32>} : memref<144x288xf32, #tpu.memory_space<vmem>>, vector<16x288xf32>,
    %c0_58 = arith.constant 0 : index
    %c19_59 = arith.constant 19 : index
    %50 = vector.load %arg11[%c0_58, %c19_59] : memref<16x342xf32, #tpu.memory_space<vmem>>, vector<16x288xf32>
    %c64 = arith.constant 64 : index
    %c0_60 = arith.constant 0 : index
    %51 = vector.load %arg12[%c64, %c0_60] : memref<144x288xf32, #tpu.memory_space<vmem>>, vector<16x288xf32>
    tpu.vector_store %arg12[%c64, %c0_60], %50 {strides = array<i32>} : memref<144x288xf32, #tpu.memory_space<vmem>>, vector<16x288xf32>,
    %c0_61 = arith.constant 0 : index
    %c20_62 = arith.constant 20 : index
    %52 = vector.load %arg11[%c0_61, %c20_62] : memref<16x342xf32, #tpu.memory_space<vmem>>, vector<16x288xf32>
    %c80 = arith.constant 80 : index
    %c0_63 = arith.constant 0 : index
    %53 = vector.load %arg12[%c80, %c0_63] : memref<144x288xf32, #tpu.memory_space<vmem>>, vector<16x288xf32>
    tpu.vector_store %arg12[%c80, %c0_63], %52 {strides = array<i32>} : memref<144x288xf32, #tpu.memory_space<vmem>>, vector<16x288xf32>,
    %c0_64 = arith.constant 0 : index
    %c36_65 = arith.constant 36 : index
    %54 = vector.load %arg11[%c0_64, %c36_65] : memref<16x342xf32, #tpu.memory_space<vmem>>, vector<16x288xf32>
    %c96 = arith.constant 96 : index
    %c0_66 = arith.constant 0 : index
    %55 = vector.load %arg12[%c96, %c0_66] : memref<144x288xf32, #tpu.memory_space<vmem>>, vector<16x288xf32>
    tpu.vector_store %arg12[%c96, %c0_66], %54 {strides = array<i32>} : memref<144x288xf32, #tpu.memory_space<vmem>>, vector<16x288xf32>,
    %c0_67 = arith.constant 0 : index
    %c37_68 = arith.constant 37 : index
    %56 = vector.load %arg11[%c0_67, %c37_68] : memref<16x342xf32, #tpu.memory_space<vmem>>, vector<16x288xf32>
    %c112 = arith.constant 112 : index
    %c0_69 = arith.constant 0 : index
    %57 = vector.load %arg12[%c112, %c0_69] : memref<144x288xf32, #tpu.memory_space<vmem>>, vector<16x288xf32>
    tpu.vector_store %arg12[%c112, %c0_69], %56 {strides = array<i32>} : memref<144x288xf32, #tpu.memory_space<vmem>>, vector<16x288xf32>,
    %c0_70 = arith.constant 0 : index
    %c38_71 = arith.constant 38 : index
    %58 = vector.load %arg11[%c0_70, %c38_71] : memref<16x342xf32, #tpu.memory_space<vmem>>, vector<16x288xf32>
    %c128 = arith.constant 128 : index
    %c0_72 = arith.constant 0 : index
    %59 = vector.load %arg12[%c128, %c0_72] : memref<144x288xf32, #tpu.memory_space<vmem>>, vector<16x288xf32>
    tpu.vector_store %arg12[%c128, %c0_72], %58 {strides = array<i32>} : memref<144x288xf32, #tpu.memory_space<vmem>>, vector<16x288xf32>,
    %c0_73 = arith.constant 0 : index
    %c0_74 = arith.constant 0 : index
    %60 = vector.load %arg5[%c0_73, %c0_74] : memref<16x144xbf16, #tpu.memory_space<vmem>>, vector<16x144xbf16>
    %c0_75 = arith.constant 0 : index
    %c0_76 = arith.constant 0 : index
    %61 = vector.load %arg12[%c0_75, %c0_76] : memref<144x288xf32, #tpu.memory_space<vmem>>, vector<144x288xf32>
    %62 = arith.truncf %61 : vector<144x288xf32> to vector<144x288xbf16>
    %cst_77 = arith.constant dense<0.000000e+00> : vector<16x288xf32>
    %63 = tpu.matmul %60, %62, %cst_77 {dimension_numbers = #tpu.dot_dimension_numbers<[1], [0], [0], [1], [0, 0, 1, 1], [], []>} : vector<16x144xbf16>, vector<144x288xbf16>, vector<16x288xf32> -> vector<16x288xf32>
    %c0_78 = arith.constant 0 : index
    %c0_79 = arith.constant 0 : index
    %64 = vector.load %arg6[%c0_78, %c0_79] : memref<16x1xf32, #tpu.memory_space<vmem>>, vector<16x1xf32>
    %65 = vector.broadcast %64 : vector<16x1xf32> to vector<16x288xf32>
    %66 = arith.addf %63, %65 : vector<16x288xf32>
    %cst_80 = arith.constant 0.000000e+00 : f32
    %67 = vector.broadcast %cst_80 : f32 to vector<16x288xf32>
    %68 = arith.maximumf %66, %67 : vector<16x288xf32>
    %69 = vector.broadcast %0 : vector<1x288xf32> to vector<16x288xf32>
    %70 = arith.mulf %68, %69 : vector<16x288xf32>
    %c0_81 = arith.constant 0 : index
    %c19_82 = arith.constant 19 : index
    %71 = vector.load %arg11[%c0_81, %c19_82] : memref<16x342xf32, #tpu.memory_space<vmem>>, vector<16x288xf32>
    tpu.vector_store %arg11[%c0_81, %c19_82], %70 {strides = array<i32>} : memref<16x342xf32, #tpu.memory_space<vmem>>, vector<16x288xf32>,
    %c0_83 = arith.constant 0 : index
    %c0_84 = arith.constant 0 : index
    %72 = vector.load %arg11[%c0_83, %c0_84] : memref<16x342xf32, #tpu.memory_space<vmem>>, vector<16x288xf32>
    %c0_85 = arith.constant 0 : index
    %c0_86 = arith.constant 0 : index
    %73 = vector.load %arg12[%c0_85, %c0_86] : memref<144x288xf32, #tpu.memory_space<vmem>>, vector<16x288xf32>
    tpu.vector_store %arg12[%c0_85, %c0_86], %72 {strides = array<i32>} : memref<144x288xf32, #tpu.memory_space<vmem>>, vector<16x288xf32>,
    %c0_87 = arith.constant 0 : index
    %c1_88 = arith.constant 1 : index
    %74 = vector.load %arg11[%c0_87, %c1_88] : memref<16x342xf32, #tpu.memory_space<vmem>>, vector<16x288xf32>
    %c16_89 = arith.constant 16 : index
    %c0_90 = arith.constant 0 : index
    %75 = vector.load %arg12[%c16_89, %c0_90] : memref<144x288xf32, #tpu.memory_space<vmem>>, vector<16x288xf32>
    tpu.vector_store %arg12[%c16_89, %c0_90], %74 {strides = array<i32>} : memref<144x288xf32, #tpu.memory_space<vmem>>, vector<16x288xf32>,
    %c0_91 = arith.constant 0 : index
    %c2_92 = arith.constant 2 : index
    %76 = vector.load %arg11[%c0_91, %c2_92] : memref<16x342xf32, #tpu.memory_space<vmem>>, vector<16x288xf32>
    %c32_93 = arith.constant 32 : index
    %c0_94 = arith.constant 0 : index
    %77 = vector.load %arg12[%c32_93, %c0_94] : memref<144x288xf32, #tpu.memory_space<vmem>>, vector<16x288xf32>
    tpu.vector_store %arg12[%c32_93, %c0_94], %76 {strides = array<i32>} : memref<144x288xf32, #tpu.memory_space<vmem>>, vector<16x288xf32>,
    %c0_95 = arith.constant 0 : index
    %c18_96 = arith.constant 18 : index
    %78 = vector.load %arg11[%c0_95, %c18_96] : memref<16x342xf32, #tpu.memory_space<vmem>>, vector<16x288xf32>
    %c48_97 = arith.constant 48 : index
    %c0_98 = arith.constant 0 : index
    %79 = vector.load %arg12[%c48_97, %c0_98] : memref<144x288xf32, #tpu.memory_space<vmem>>, vector<16x288xf32>
    tpu.vector_store %arg12[%c48_97, %c0_98], %78 {strides = array<i32>} : memref<144x288xf32, #tpu.memory_space<vmem>>, vector<16x288xf32>,
    %c0_99 = arith.constant 0 : index
    %c19_100 = arith.constant 19 : index
    %80 = vector.load %arg11[%c0_99, %c19_100] : memref<16x342xf32, #tpu.memory_space<vmem>>, vector<16x288xf32>
    %c64_101 = arith.constant 64 : index
    %c0_102 = arith.constant 0 : index
    %81 = vector.load %arg12[%c64_101, %c0_102] : memref<144x288xf32, #tpu.memory_space<vmem>>, vector<16x288xf32>
    tpu.vector_store %arg12[%c64_101, %c0_102], %80 {strides = array<i32>} : memref<144x288xf32, #tpu.memory_space<vmem>>, vector<16x288xf32>,
    %c0_103 = arith.constant 0 : index
    %c20_104 = arith.constant 20 : index
    %82 = vector.load %arg11[%c0_103, %c20_104] : memref<16x342xf32, #tpu.memory_space<vmem>>, vector<16x288xf32>
    %c80_105 = arith.constant 80 : index
    %c0_106 = arith.constant 0 : index
    %83 = vector.load %arg12[%c80_105, %c0_106] : memref<144x288xf32, #tpu.memory_space<vmem>>, vector<16x288xf32>
    tpu.vector_store %arg12[%c80_105, %c0_106], %82 {strides = array<i32>} : memref<144x288xf32, #tpu.memory_space<vmem>>, vector<16x288xf32>,
    %c0_107 = arith.constant 0 : index
    %c36_108 = arith.constant 36 : index
    %84 = vector.load %arg11[%c0_107, %c36_108] : memref<16x342xf32, #tpu.memory_space<vmem>>, vector<16x288xf32>
    %c96_109 = arith.constant 96 : index
    %c0_110 = arith.constant 0 : index
    %85 = vector.load %arg12[%c96_109, %c0_110] : memref<144x288xf32, #tpu.memory_space<vmem>>, vector<16x288xf32>
    tpu.vector_store %arg12[%c96_109, %c0_110], %84 {strides = array<i32>} : memref<144x288xf32, #tpu.memory_space<vmem>>, vector<16x288xf32>,
    %c0_111 = arith.constant 0 : index
    %c37_112 = arith.constant 37 : index
    %86 = vector.load %arg11[%c0_111, %c37_112] : memref<16x342xf32, #tpu.memory_space<vmem>>, vector<16x288xf32>
    %c112_113 = arith.constant 112 : index
    %c0_114 = arith.constant 0 : index
    %87 = vector.load %arg12[%c112_113, %c0_114] : memref<144x288xf32, #tpu.memory_space<vmem>>, vector<16x288xf32>
    tpu.vector_store %arg12[%c112_113, %c0_114], %86 {strides = array<i32>} : memref<144x288xf32, #tpu.memory_space<vmem>>, vector<16x288xf32>,
    %c0_115 = arith.constant 0 : index
    %c38_116 = arith.constant 38 : index
    %88 = vector.load %arg11[%c0_115, %c38_116] : memref<16x342xf32, #tpu.memory_space<vmem>>, vector<16x288xf32>
    %c128_117 = arith.constant 128 : index
    %c0_118 = arith.constant 0 : index
    %89 = vector.load %arg12[%c128_117, %c0_118] : memref<144x288xf32, #tpu.memory_space<vmem>>, vector<16x288xf32>
    tpu.vector_store %arg12[%c128_117, %c0_118], %88 {strides = array<i32>} : memref<144x288xf32, #tpu.memory_space<vmem>>, vector<16x288xf32>,
    %c0_119 = arith.constant 0 : index
    %c0_120 = arith.constant 0 : index
    %90 = vector.load %arg7[%c0_119, %c0_120] : memref<3x144xbf16, #tpu.memory_space<vmem>>, vector<3x144xbf16>
    %c0_121 = arith.constant 0 : index
    %c0_122 = arith.constant 0 : index
    %91 = vector.load %arg12[%c0_121, %c0_122] : memref<144x288xf32, #tpu.memory_space<vmem>>, vector<144x288xf32>
    %92 = arith.truncf %91 : vector<144x288xf32> to vector<144x288xbf16>
    %cst_123 = arith.constant dense<0.000000e+00> : vector<3x288xf32>
    %93 = tpu.matmul %90, %92, %cst_123 {dimension_numbers = #tpu.dot_dimension_numbers<[1], [0], [0], [1], [0, 0, 1, 1], [], []>} : vector<3x144xbf16>, vector<144x288xbf16>, vector<3x288xf32> -> vector<3x288xf32>
    %c0_124 = arith.constant 0 : index
    %c0_125 = arith.constant 0 : index
    %94 = vector.load %arg8[%c0_124, %c0_125] : memref<3x1xf32, #tpu.memory_space<vmem>>, vector<3x1xf32>
    %95 = vector.broadcast %94 : vector<3x1xf32> to vector<3x288xf32>
    %96 = arith.addf %93, %95 : vector<3x288xf32>
    %c0_126 = arith.constant 0 : index
    %c0_127 = arith.constant 0 : index
    %c0_128 = arith.constant 0 : index
    %97 = vector.load %arg9[%c0_126, %c0_127, %c0_128] : memref<1x3x288xf32, #tpu.memory_space<vmem>>, vector<1x3x288xf32>
    %98 = vector.shape_cast %97 : vector<1x3x288xf32> to vector<3x288xf32>
    %99 = vector.shape_cast %96 : vector<3x288xf32> to vector<1x3x288xf32>
    tpu.vector_store %arg9[%c0_126, %c0_127, %c0_128], %99 {strides = array<i32>} : memref<1x3x288xf32, #tpu.memory_space<vmem>>, vector<1x3x288xf32>,
    return
  }
  func.func @transform_0(%arg0: i32) -> (i32, i32, i32) {
    %c0_i32 = arith.constant 0 : i32
    %c0_i32_0 = arith.constant 0 : i32
    %c0_i32_1 = arith.constant 0 : i32
    return %arg0, %c0_i32, %c0_i32_0 : i32, i32, i32
  }
  func.func @transform_1(%arg0: i32) -> (i32, i32) {
    %c0_i32 = arith.constant 0 : i32
    %c0_i32_0 = arith.constant 0 : i32
    %c0_i32_1 = arith.constant 0 : i32
    return %c0_i32, %c0_i32_0 : i32, i32
  }
  func.func @transform_2(%arg0: i32) -> (i32, i32) {
    %c0_i32 = arith.constant 0 : i32
    %c0_i32_0 = arith.constant 0 : i32
    %c0_i32_1 = arith.constant 0 : i32
    return %c0_i32, %c0_i32_0 : i32, i32
  }
  func.func @transform_3(%arg0: i32) -> (i32, i32) {
    %c0_i32 = arith.constant 0 : i32
    %c0_i32_0 = arith.constant 0 : i32
    %c0_i32_1 = arith.constant 0 : i32
    return %c0_i32, %c0_i32_0 : i32, i32
  }
  func.func @transform_4(%arg0: i32) -> (i32, i32) {
    %c0_i32 = arith.constant 0 : i32
    %c0_i32_0 = arith.constant 0 : i32
    %c0_i32_1 = arith.constant 0 : i32
    return %c0_i32, %c0_i32_0 : i32, i32
  }
  func.func @transform_5(%arg0: i32) -> (i32, i32) {
    %c0_i32 = arith.constant 0 : i32
    %c0_i32_0 = arith.constant 0 : i32
    %c0_i32_1 = arith.constant 0 : i32
    return %c0_i32, %c0_i32_0 : i32, i32
  }
  func.func @transform_6(%arg0: i32) -> (i32, i32) {
    %c0_i32 = arith.constant 0 : i32
    %c0_i32_0 = arith.constant 0 : i32
    %c0_i32_1 = arith.constant 0 : i32
    return %c0_i32, %c0_i32_0 : i32, i32
  }
  func.func @transform_7(%arg0: i32) -> (i32, i32) {
    %c0_i32 = arith.constant 0 : i32
    %c0_i32_0 = arith.constant 0 : i32
    %c0_i32_1 = arith.constant 0 : i32
    return %c0_i32, %c0_i32_0 : i32, i32
  }
  func.func @transform_8(%arg0: i32) -> (i32, i32, i32) {
    %c0_i32 = arith.constant 0 : i32
    %c0_i32_0 = arith.constant 0 : i32
    %c0_i32_1 = arith.constant 0 : i32
    return %arg0, %c0_i32, %c0_i32_0 : i32, i32, i32
  }
}

</mosaic_0001>

<bundles_post_ra>
// kernel: side_information_autoencoder_forward.4
= control target key start
LH: loop header
LB: loop body
LE: loop exit
PB: predicated region body
PF: predicated region fallthrough
CT: control target
= control target key end

     0   :  { %s372_s9 = smov 0   ;;  %s396_s0 = inlined_call_operand.vmem [shape: f32[2,4,192], index: 0, kind: input, shape index: {}]   ;;  %s397_s1 = inlined_call_operand.vmem [shape: f32[2,4,192], index: 1, kind: input, shape index: {}]   ;;  %s398_s2 = inlined_call_operand.vmem [shape: s32[2,1,4], index: 2, kind: output, shape index: {}]  }
   0x1 LB: > { %s324_s10 = sadd.s32 4294967295, %s355_s9   ;;  %p328_p0 = scmp.ge.s32.totalorder %s355_s9, 1  ;;  %s355_s9 = sphi %s372_s9, %s12_s9  }
   0x2   : > { %p122_p1 = scmp.lt.s32.totalorder %s355_s9, 3 }
   0x4   : > { %p123_p2 = pnand %p328_p0, %p122_p1 }
   0x5   : > { %p147_p3 = scmp.lt.s32.totalorder (!%p123_p2), %s324_s10, 1  ;;  %vm166_vm0 = vcmask (!%p123_p2), 523264   ;;  %vm241_vm1 = vcmask (!%p123_p2), 27648   ;;  %v249_v10 = vlaneseq (!%p123_p2)  ;;  %vm263_vm5 = vcmask (!%p123_p2), 24576  }
   0x6   : > { %126 = sbr.rel (%p123_p2) target bundleno = 264 (0x108), region = 28 }
   0x7   : > { %v250_v13 = vshrl.u32 (!%p123_p2), %v249_v10, 7 }
   0xd   : > { %s400_s10 = smov (!%p147_p3, %s324_s10), 1 }
   0xe   : > { %s337_s11 = sshll.u32 %s400_s10, 3  ;;  %s159_s20 = scalar_lea.vmem %s398_s2, %s400_s10 }
   0xf   : > { %s156_s14 = scalar_lea.vmem %s397_s1, %s337_s11  ;;  %s151_s17 = scalar_lea.vmem %s396_s0, %s337_s11 }
  0x10   : > { %v161_v0 = vld [vmem:[%s156_s14] sm:$0xff] }
  0x11   : > { %v160_v1 = vld [vmem:[%s151_s17] sm:$0xff]  ;;  %v165_v2 = vcombine.high %v161_v0, %v161_v0 }
  0x12   : > { %v163_v3 = vcombine.high %v160_v1, %v160_v1 }
  0x13   : > { %333 = vmatprep.subr.msk.mxu0 %vm166_vm0, %v165_v2 }
  0x14   : > { %334 = vmatprep.mubr.msk.f32.mxu0 %vm166_vm0, %v163_v3  ;;  %172 = vmatpush1.xpose.msra.mxu0 %v161_v0 }
  0x17   : > { %236 = vmatmul.mubr.f32.vlgmr.msra.gmra.mrb[0].mxu0 %v160_v1 }
  0xea   : > { %v237_v4 = vpop.f32.mrb[0].mxu0 }
  0xeb   : > { %v242_v5 = vsel %vm241_vm1, %v237_v4, -inf  ;;  %v239_v6 = vpop.f32.mrb[1].mxu0 }
  0xec   : > { %v243_v7 = vrot.slane %v242_v5, 4 }
  0xee   : > { %v244_v8 = vmax.f32 %v242_v5, %v243_v7 }
  0xf0   : > { %v245_v9 = vrot.slane %v244_v8, 2 }
  0xf2   : > { %v246_v11 = vmax.f32 %v244_v8, %v245_v9 }
  0xf4   : > { %v247_v12 = vrot.slane %v246_v11, 1 }
  0xf6   : > { %v248_v14 = vmax.f32 %v246_v11, %v247_v12 }
  0xf8   : > { %vm251_vm2 = vcmp.eq.f32.partialorder %v237_v4, %v248_v14 }
  0xf9   : > { %v252_v15 = vsel %vm251_vm2, %v250_v13, 4 }
  0xfa   : > { %v253_v16 = vsel %vm241_vm1, %v252_v15, 2147483647 }
  0xfb   : > { %v254_v17 = vrot.slane %v253_v16, 4 }
  0xfd   : > { %vm255_vm3 = vcmp.lt.s32.totalorder %v253_v16, %v254_v17 }
  0xfe   : > { %v256_v18 = vsel %vm255_vm3, %v253_v16, %v254_v17 }
  0xff   : > { %v257_v19 = vrot.slane %v256_v18, 2 }
 0x101   : > { %vm258_vm4 = vcmp.lt.s32.totalorder %v256_v18, %v257_v19 }
 0x102   : > { %v259_v20 = vsel %vm258_vm4, %v256_v18, %v257_v19 }
 0x103   : > { %v260_v21 = vrot.slane %v259_v20, 1 }
 0x105   : > { %vm261_vm6 = vcmp.lt.s32.totalorder %v259_v20, %v260_v21 }
 0x106   : > { %v262_v22 = vsel %vm261_vm6, %v259_v20, %v260_v21 }
 0x107   : > { %264 = vst.msk [vmem:[%s159_s20] sm:$0x1] %vm263_vm5, %v262_v22 }
 0x108 PF: > { %s12_s9 = sadd.s32 1, %s355_s9  }
 0x109   : > { %p9_p4 = scmp.ge.s32.totalorder %s12_s9, 4  }
 0x10b   :  { %11 = sbr.rel (!%p9_p4) target bundleno = 1 (0x1), region = 61 }

// kernel: side_information_autoencoder_forward.3
= control target key start
LH: loop header
LB: loop body
LE: loop exit
PB: predicated region body
PF: predicated region fallthrough
CT: control target
= control target key end

     0   :  { %s4750_s0 = inlined_call_operand.hbm [shape: f32[4,3,342], index: 0, kind: input, shape index: {}]   ;;  %s4751_s1 = inlined_call_operand.hbm [shape: f32[1,288], index: 1, kind: input, shape index: {}]   ;;  %s4752_s2 = inlined_call_operand.hbm [shape: bf16[8,27], index: 2, kind: input, shape index: {}]   ;;  %s4753_s3 = inlined_call_operand.hbm [shape: f32[8,1], index: 3, kind: input, shape index: {}]   ;;  %s4754_s4 = inlined_call_operand.hbm [shape: f32[6], index: 4, kind: input, shape index: {}]   ;;  %s4755_s5 = inlined_call_operand.hbm [shape: bf16[3,72], index: 5, kind: input, shape index: {}]   ;;  %s4756_s6 = inlined_call_operand.hbm [shape: f32[3,1], index: 6, kind: input, shape index: {}]   ;;  %s4757_s7 = inlined_call_operand.hbm [shape: f32[4,3,288], index: 7, kind: output, shape index: {0}]   ;;  %s4758_s8 = inlined_call_operand.hbm [shape: f32[4,1,288], index: 8, kind: output, shape index: {1}]   ;;  %s4759_s9 = inlined_call_operand.hbm [shape: f32[4,8,288], index: 9, kind: output, shape index: {2}]   ;;  %s4760_s10 = inlined_call_operand.hbm [shape: s32[4,8,288], index: 10, kind: output, shape index: {3}]  }
   0x1   :  { %4801 = sst [smem:[#allocation33_spill]] %s4750_s0 }
   0x2   :  { %4802 = sst [smem:[#allocation34_spill]] %s4751_s1 }
   0x3   :  { %4803 = sst [smem:[#allocation35_spill]] %s4752_s2 }
   0x4   :  { %4804 = sst [smem:[#allocation36_spill]] %s4753_s3 }
   0x5   :  { %4805 = sst [smem:[#allocation37_spill]] %s4760_s10 }
   0x6   :  { %16 = vsyncpa [#allocation6], 0 }
   0x7   :  { %18 = vsyncpa [#allocation6 + $0x1], 0 }
   0x8   :  { %19 = vsyncpa [#allocation10], 0 }
   0x9   :  { %20 = vsyncpa [#allocation13], 0 }
   0xa   :  { %21 = vsyncpa [#allocation8], 0 }
   0xb   :  { %22 = vsyncpa [#allocation17], 0 }
   0xc   :  { %23 = vsyncpa [#allocation7], 0 }
   0xd   :  { %25 = vsyncpa [#allocation7 + $0x1], 0 }
   0xe   :  { %26 = vsyncpa [#allocation20], 0 }
   0xf   :  { %28 = vsyncpa [#allocation20 + $0x1], 0 }
  0x10   :  { %29 = vsyncpa [#allocation23], 0 }
  0x11   :  { %31 = vsyncpa [#allocation23 + $0x1], 0  ;;  %s3496_s13 = smov 0   ;;  %s3498_s14 = smov 0  }
  0x12   :  { %s3500_s15 = smov 0   ;;  %s3502_s16 = smov 0  }
  0x13 LB: > { %s3398_s17 = smov [#allocation9]   ;;  %s3517_s19 = sadd.s32 4294967295, %s3396_s16   ;;  %s3396_s16 = sphi %s3502_s16, %s4874_s16   ;;  %s3392_s15 = sphi %s3500_s15, %s4873_s15   ;;  %s3388_s14 = sphi %s3498_s14, %s4872_s14   ;;  %s3384_s13 = sphi %s3496_s13, %s4871_s13  }
  0x14   : > { %s311_s18 = sshll.u32 %s3398_s17, 4  ;;  %p2626_p0 = scmp.ge.s32.totalorder %s3396_s16, 1  ;;  %s3522_s18 = int_to_ptr.vmem [resolvable:$true] %s311_s18 }
  0x15   : > { %p4762_p1 = scmp.eq.s32.totalorder %s3517_s19, 0  ;;  %p298_p2 = scmp.lt.s32.totalorder %s3396_s16, 3 }
  0x16   : > { %s3399_s21 = smov [#allocation12]   ;;  %s3400_s23 = smov [#allocation11]  }
  0x17   : > { %p3524_p3 = pnand %p2626_p0, %p298_p2  ;;  %s333_s22 = sshll.u32 %s3399_s21, 4  ;;  %s3531_s22 = int_to_ptr.vmem [resolvable:$true] %s333_s22 }
  0x18   : > { %s322_s24 = sshll.u32 %s3400_s23, 4  ;;  %s3401_s26 = smov [#allocation15]   ;;  %s3539_s24 = int_to_ptr.vmem [resolvable:$true] %s322_s24 }
  0x19   : > { %s4806_s20 = scalar_select %p3524_p3, 1, 0 }
  0x1a   : > { %p2782_p5 = pneg %p3524_p3  ;;  %s3541_s27 = sshll.u32 %s3401_s26, 4  ;;  %s354_s27 = int_to_ptr.vmem [resolvable:$true] %s3541_s27 }
  0x1b   : > { %s4808_s1 = sld [smem:[#allocation34_spill]] }
  0x1c   : > { %p3535_p6 = pnand %p2782_p5, %p4762_p1 }
  0x1e   : > { %p3551_p8 = pneg %p3535_p6 }
  0x21   : > { %s3035_s30 = scalar_lea.hbm %s4808_s1, 48 }
  0x22   : > { %p3036_p7 = scmp.ne.s32.totalorder %s4808_s1, %s3035_s30  ;;  %p3042_p11 = scmp.lt.u32.totalorder %s3035_s30, %s4808_s1 }
  0x24   : > { %p3038_p9 = pnand %p3551_p8, %p3036_p7 }
  0x26   : > { %p3039_p10 = pneg %p3038_p9 }
  0x28   : > { %p3044_p12 = pnand %p3042_p11, %p3039_p10 }
  0x2a   : > { %3047 = shalt.err (!%p3044_p12)
}
  0x2b   : > { %s3048_s26 = scalar_lea.vmem %s3522_s18, 48  ;;  %s3055_s28 = scalar_lea.vmem %s3522_s18, 64 }
  0x2c   : > { %p3049_p13 = scmp.ne.s32.totalorder %s3522_s18, %s3048_s26  ;;  %p3056_p5 = scmp.lt.s32.totalorder %s3522_s18, %s3522_s18 }
  0x2d   : > { %p3057_p7 = scmp.lt.s32.totalorder %s3055_s28, %s3048_s26 }
  0x2e   : > { %p3051_p0 = pnand %p3049_p13, %p3551_p8 }
  0x2f   : > { %p3058_p9 = por %p3057_p7, %p3056_p5 }
  0x30   : > { %p3052_p2 = pneg %p3051_p0 }
  0x32   : > { %p3059_p4 = pnand %p3058_p9, %p3052_p2 }
  0x34   : > { %3062 = shalt.err (!%p3059_p4)
}
  0x35   : > { %2785 = dma.hbm_to_vmem [thread:$0]  (!%p3535_p6), %s4808_s1, 48, %s3522_s18, [#allocation10]  }
  0x36   : > { %s4810_s3 = sld [smem:[#allocation36_spill]] }
  0x3c   : > { %s3063_s21 = scalar_lea.hbm %s4810_s3, 128 }
  0x3d   : > { %p3064_p10 = scmp.ne.s32.totalorder %s4810_s3, %s3063_s21  ;;  %p3070_p4 = scmp.lt.u32.totalorder %s3063_s21, %s4810_s3 }
  0x3f   : > { %p3066_p11 = pnand %p3064_p10, %p3551_p8 }
  0x41   : > { %p3067_p12 = pneg %p3066_p11 }
  0x43   : > { %p3072_p13 = pnand %p3070_p4, %p3067_p12 }
  0x45   : > { %3075 = shalt.err (!%p3072_p13)
}
  0x46   : > { %s3076_s18 = scalar_lea.vmem %s3531_s22, 128  ;;  %p3084_p7 = scmp.lt.s32.totalorder %s3531_s22, %s3531_s22 }
  0x47   : > { %p3077_p0 = scmp.ne.s32.totalorder %s3531_s22, %s3076_s18  ;;  %p3085_p9 = scmp.lt.s32.totalorder %s3076_s18, %s3076_s18 }
  0x49   : > { %p3079_p2 = pnand %p3077_p0, %p3551_p8  ;;  %p3086_p10 = por %p3085_p9, %p3084_p7 }
  0x4b   : > { %p3080_p5 = pneg %p3079_p2 }
  0x4d   : > { %p3087_p11 = pnand %p3086_p10, %p3080_p5 }
  0x4f   : > { %3090 = shalt.err (!%p3087_p11)
}
  0x50   : > { %2791 = dma.hbm_to_vmem [thread:$0]  (!%p3535_p6), %s4810_s3, 128, %s3531_s22, [#allocation13]  }
  0x51   : > { %s4811_s2 = sld [smem:[#allocation35_spill]] }
  0x57   : > { %s3091_s12 = scalar_lea.hbm %s4811_s2, 64 }
  0x58   : > { %p3092_p12 = scmp.ne.s32.totalorder %s4811_s2, %s3091_s12  ;;  %p3098_p0 = scmp.lt.u32.totalorder %s3091_s12, %s4811_s2 }
  0x5a   : > { %p3094_p4 = pnand %p3092_p12, %p3551_p8 }
  0x5c   : > { %p3095_p13 = pneg %p3094_p4 }
  0x5e   : > { %p3100_p2 = pnand %p3098_p0, %p3095_p13 }
  0x60   : > { %3103 = shalt.err (!%p3100_p2)
}
  0x61   : > { %s3104_s22 = scalar_lea.vmem %s3539_s24, 64  ;;  %p3112_p10 = scmp.lt.s32.totalorder %s3539_s24, %s3539_s24 }
  0x62   : > { %p3105_p5 = scmp.ne.s32.totalorder %s3539_s24, %s3104_s22  ;;  %p3113_p11 = scmp.lt.s32.totalorder %s3104_s22, %s3104_s22 }
  0x64   : > { %p3107_p7 = pnand %p3105_p5, %p3551_p8  ;;  %p3114_p12 = por %p3113_p11, %p3112_p10 }
  0x66   : > { %p3108_p9 = pneg %p3107_p7 }
  0x68   : > { %p3115_p4 = pnand %p3114_p12, %p3108_p9 }
  0x6a   : > { %3118 = shalt.err (!%p3115_p4)
}
  0x6b   : > { %2788 = dma.hbm_to_vmem [thread:$0]  (!%p3535_p6), %s4811_s2, 64, %s3539_s24, [#allocation10]  }
  0x6c   : > { %s3119_s11 = scalar_lea.hbm %s4754_s4, 16 }
  0x6d   : > { %p3120_p13 = scmp.ne.s32.totalorder %s4754_s4, %s3119_s11  ;;  %p3126_p5 = scmp.lt.u32.totalorder %s3119_s11, %s4754_s4 }
  0x6f   : > { %p3122_p0 = pnand %p3120_p13, %p3551_p8 }
  0x71   : > { %p3123_p2 = pneg %p3122_p0 }
  0x73   : > { %p3128_p7 = pnand %p3126_p5, %p3123_p2 }
  0x75   : > { %3131 = shalt.err (!%p3128_p7)
}
  0x76   : > { %s3402_s28 = smov [#allocation14]   ;;  %s3132_s29 = scalar_lea.hbm %s4755_s5, 32 }
  0x77   : > { %2794 = dma.hbm_to_smem (!%p3535_p6), %s4754_s4, 16, %s3402_s28, [#allocation8]  }
  0x78   : > { %p3133_p9 = scmp.ne.s32.totalorder %s4755_s5, %s3132_s29  ;;  %p3139_p12 = scmp.lt.u32.totalorder %s3132_s29, %s4755_s5 }
  0x7a   : > { %p3135_p10 = pnand %p3133_p9, %p3551_p8 }
  0x7c   : > { %p3136_p11 = pneg %p3135_p10 }
  0x7e   : > { %p3141_p4 = pnand %p3139_p12, %p3136_p11 }
  0x80   : > { %3144 = shalt.err (!%p3141_p4)
}
  0x81   : > { %s3145_s23 = scalar_lea.vmem %s354_s27, 32  ;;  %p3153_p5 = scmp.lt.s32.totalorder %s354_s27, %s354_s27 }
  0x82   : > { %p3146_p13 = scmp.ne.s32.totalorder %s354_s27, %s3145_s23  ;;  %p3154_p7 = scmp.lt.s32.totalorder %s3145_s23, %s3145_s23 }
  0x84   : > { %p3148_p0 = pnand %p3146_p13, %p3551_p8  ;;  %p3155_p1 = por %p3154_p7, %p3153_p5 }
  0x86   : > { %p3149_p2 = pneg %p3148_p0 }
  0x88   : > { %p3156_p3 = pnand %p3155_p1, %p3149_p2 }
  0x8a   : > { %3159 = shalt.err (!%p3156_p3)
}
  0x8b   : > { %2797 = dma.hbm_to_vmem [thread:$0]  (!%p3535_p6), %s4755_s5, 32, %s354_s27, [#allocation13]  }
  0x8c   : > { %s3403_s24 = smov [#allocation16]   ;;  %s3160_s29 = scalar_lea.hbm %s4756_s6, 64 }
  0x8d   : > { %s364_s22 = sshll.u32 %s3403_s24, 4  ;;  %p3161_p9 = scmp.ne.s32.totalorder %s4756_s6, %s3160_s29  ;;  %s365_s22 = int_to_ptr.vmem [resolvable:$true] %s364_s22 }
  0x8e   : > { %p3167_p10 = scmp.lt.u32.totalorder %s3160_s29, %s4756_s6 }
  0x8f   : > { %p3163_p1 = pnand %p3161_p9, %p3551_p8 }
  0x91   : > { %p3164_p3 = pneg %p3163_p1 }
  0x93   : > { %p3169_p11 = pnand %p3167_p10, %p3164_p3 }
  0x95   : > { %3172 = shalt.err (!%p3169_p11)
}
  0x96   : > { %s3173_s27 = scalar_lea.vmem %s365_s22, 64  ;;  %p3181_p0 = scmp.lt.s32.totalorder %s365_s22, %s365_s22 }
  0x97   : > { %p3174_p12 = scmp.ne.s32.totalorder %s365_s22, %s3173_s27  ;;  %p3182_p2 = scmp.lt.s32.totalorder %s3173_s27, %s3173_s27 }
  0x99   : > { %p3176_p4 = pnand %p3174_p12, %p3551_p8  ;;  %p3183_p5 = por %p3182_p2, %p3181_p0 }
  0x9b   : > { %p3177_p13 = pneg %p3176_p4 }
  0x9d   : > { %p3184_p7 = pnand %p3183_p5, %p3177_p13 }
  0x9f   : > { %3187 = shalt.err (!%p3184_p7)
}
  0xa0   : > { %2800 = dma.hbm_to_vmem [thread:$0]  (!%p3535_p6), %s4756_s6, 64, %s365_s22, [#allocation17]  }
  0xa1   : > { %s4764_s25 = sadd.s32 4294967294, %s3396_s16   ;;  %s3674_s17 = sadd.s32 1, %s3396_s16  }
  0xa2   : > { %s41_s28 = ssub.s32 %s3396_s16, %s3674_s17  ;;  %s44_s24 = sadd.s32 1, %s3392_s15 }
  0xa3   : > { %p42_p8 = scmp.eq.s32.totalorder %s41_s28, 0  ;;  %p51_p9 = scmp.ne.s32.totalorder %s3392_s15, %s3388_s14 }
  0xa4   : > { %p52_p1 = scmp.eq.s32.totalorder %s3396_s16, 0  ;;  %p57_p3 = scmp.ne.s32.totalorder %s3388_s14, %s3384_s13 }
  0xa5   : > { %s3685_s18 = scalar_select %p42_p8, %s3392_s15, %s44_s24  }
  0xa6   : > { %p53_p10 = por %p52_p1, %p51_p9  ;;  %p4812_p11 = scmp.eq.s32.totalorder %s3517_s19, 0 }
  0xa7   : > { %p207_p6 = scmp.eq.s32.totalorder %s3517_s19, 1  ;;  %p213_p4 = scmp.eq.s32.totalorder %s4764_s25, 1 }
  0xa8   : > { %p3689_p12 = por %p4812_p11, %p57_p3  ;;  %p2824_p13 = scmp.lt.s32.totalorder %s3396_s16, 2 }
  0xa9   : > { %s375_s22 = sand.u32 1, %s3392_s15   ;;  %p3698_p0 = por %p207_p6, %p51_p9 }
  0xaa   : > { %p3702_p2 = por %p213_p4, %p57_p3  ;;  %s2739_s12 = smul.u32 24, %s375_s22 }
  0xab   : > { %s4814_s29 = scalar_select %p3698_p0, 1, 0 }
  0xac   : > { %s4815_s30 = scalar_select %p3702_p2, 1, 0 }
  0xad   : > { %s2740_s11 = smul.u32 384, %s3396_s16  ;;  %p3707_p5 = pnand %p2824_p13, %p53_p10 }
  0xae   : > { %s4817_s0 = sld [smem:[#allocation33_spill]]  ;;  %s379_s28 = scalar_lea.vmem [#allocation5], %s2739_s12 }
  0xaf   : > { %s387_s24 = sshll.u32 %s379_s28, 4  ;;  %s3718_s25 = scalar_lea.sflag [#allocation6], %s375_s22  ;;  %s3716_s24 = int_to_ptr.vmem [resolvable:$true] %s387_s24 }
  0xb0   : > { %p3190_p8 = pneg %p3707_p5 }
  0xb4   : > { %s3714_s26 = scalar_lea.hbm %s4817_s0, %s2740_s11  ;;  %s3193_s23 = scalar_lea.hbm %s4817_s0, 768 }
  0xb5   : > { %s3188_s1 = scalar_lea.hbm %s3714_s26, 384  ;;  %p3194_p3 = scmp.lt.u32.totalorder %s3714_s26, %s4817_s0 }
  0xb6   : > { %p3189_p7 = scmp.ne.s32.totalorder %s3714_s26, %s3188_s1  ;;  %p3195_p10 = scmp.lt.u32.totalorder %s3193_s23, %s3188_s1 }
  0xb7   : > { %p3197_p6 = scmp.lt.u32.totalorder %s3188_s1, %s3714_s26 }
  0xb8   : > { %p3191_p9 = pnand %p3190_p8, %p3189_p7  ;;  %p3196_p11 = por %p3195_p10, %p3194_p3 }
  0xba   : > { %p3192_p1 = pneg %p3191_p9  ;;  %p3198_p4 = por %p3197_p6, %p3196_p11 }
  0xbc   : > { %p3199_p13 = pnand %p3198_p4, %p3192_p1 }
  0xbe   : > { %3202 = shalt.err (!%p3199_p13)
}
  0xbf   : > { %s3203_s22 = scalar_lea.vmem %s3716_s24, 384  ;;  %s3404_s12 = smov [#allocation5]  }
  0xc0   : > { %p3204_p7 = scmp.ne.s32.totalorder %s3716_s24, %s3203_s22  ;;  %s3208_s28 = sshll.u32 %s3404_s12, 4  ;;  %s3209_s28 = int_to_ptr.vmem [resolvable:$false] %s3208_s28 }
  0xc1   : > { %s3210_s2 = scalar_lea.vmem %s3209_s28, 768  ;;  %p3211_p0 = scmp.lt.s32.totalorder %s3716_s24, %s3209_s28 }
  0xc2   : > { %p3206_p9 = pnand %p3204_p7, %p3190_p8  ;;  %p3212_p3 = scmp.lt.s32.totalorder %s3210_s2, %s3203_s22 }
  0xc4   : > { %p3207_p2 = pneg %p3206_p9  ;;  %p3213_p10 = por %p3212_p3, %p3211_p0 }
  0xc6   : > { %p3214_p11 = pnand %p3213_p10, %p3207_p2 }
  0xc8   : > { %3217 = shalt.err (!%p3214_p11)
}
  0xc9   : > { %s3405_s1 = smov 192   ;;  %s3406_s3 = smov 12  }
  0xca   : > { %2804 = dma.hbm_to_vmem [thread:$0]  (!%p3707_p5), %s3714_s26, 384, %s3716_s24, %s3718_s25, %s3405_s1, %s3405_s1, %s3406_s3  }
  0xcb   : > { %p4818_p8 = scmp.ne.s32.totalorder %s4806_s20, 0 }
  0xcc   : > { %s3749_s11 = sand.u32 (!%p4818_p8), 1, %s3388_s14  }
  0xcd   : > { %399 = sbr.rel (%p4818_p8) target bundleno = 1519 (0x5ef), region = 48  ;;  %s402_s23 = scalar_lea.sflag (!%p4818_p8), [#allocation6], %s3749_s11 }
  0xce   : > { %s4766_s27 = smul.u32 (!%p4818_p8), 24, %s3749_s11 }
  0xd0   : > { %s3755_s22 = scalar_lea.vmem (!%p4818_p8), [#allocation5], %s4766_s27 }
  0xd4   : > { %3347 = dma.done.wait (%p3689_p12), %s402_s23, 384  }
  0xd5   : > { %3349 = vsyncadd (%p3689_p12), %s402_s23, 4294966912  ;;  %p4819_p0 = scmp.eq.s32.totalorder %s3517_s19, 0 }
  0xd7   : > { %3351 = dma.done.wait (%p4819_p0), [#allocation10], 112   ;;  %p4820_p2 = pmov %p4819_p0 }
  0xd8   : > { %p4821_p5 = pmov %p4819_p0 }
  0xd9   : > { %3353 = vsyncadd (%p4820_p2), [#allocation10], 4294967184 }
  0xda   : > { %3355 = dma.done.wait (%p4821_p5), [#allocation13], 128   ;;  %p4822_p1 = pmov %p4819_p0 }
  0xdb   : > { %p4823_p6 = pmov %p4819_p0 }
  0xdc   : > { %3357 = vsyncadd (%p4822_p1), [#allocation13], 4294967168 }
  0xdd   : > { %3359 = dma.done.wait (%p4823_p6), [#allocation8], 16   ;;  %p4824_p4 = pmov %p4819_p0 }
  0xde   : > { %p4825_p12 = pmov %p4819_p0 }
  0xdf   : > { %3361 = vsyncadd (%p4824_p4), [#allocation8], 4294967280 }
  0xe0   : > { %3363 = dma.done.wait (%p4825_p12), [#allocation13], 32   ;;  %p4826_p13 = pmov %p4819_p0 }
  0xe1   : > { %p4827_p7 = pmov %p4819_p0 }
  0xe2   : > { %3365 = vsyncadd (%p4826_p13), [#allocation13], 4294967264 }
  0xe3   : > { %3367 = dma.done.wait (%p4827_p7), [#allocation17], 64   ;;  %p4828_p9 = pmov %p4819_p0 }
  0xe5   : > { %3369 = vsyncadd (%p4828_p9), [#allocation17], 4294967232 }
  0xe6   : > { %434 = sfence }
  0xe7   : > { %v523_v0 = vld [vmem:[%s3755_s22 + $0x8] sm:$0x7]  ;;  %v522_v4 = vld [vmem:[%s3755_s22] sm:$0x77]  ;;  %s3407_s20 = smov 126   ;;  %s3408_s25 = smov 127  }
  0xe8   : > { %v499_v1 = vld [vmem:[%s3755_s22 + $0x8] sm:$0x7]  ;;  %v529_v2 = vrot.slane %v523_v0, 2  ;;  %v498_v5 = vld [vmem:[%s3755_s22] sm:$0x77]  ;;  %v526_v6 = vcombine.high %v522_v4, %v522_v4  ;;  %s3409_s10 = smov 110  }
  0xe9   : > { %v505_v3 = vrot.slane %v499_v1, 5  ;;  %v502_v7 = vcombine.high %v498_v5, %v498_v5  ;;  %v550_v8 = vld [vmem:[%s3755_s22] sm:$0x77]  ;;  %v551_v12 = vld [vmem:[%s3755_s22 + $0x8] sm:$0x7]  ;;  %s3410_s21 = smov 109  }
  0xea   : > { %534 = vrot.lane.b32.xlu1 %v529_v2, %s3407_s20  ;;  %v554_v9 = vcombine.high %v550_v8, %v550_v8  ;;  %v528_v10 = vrot.slane %v526_v6, 2  ;;  %v557_v13 = vrot.slane %v551_v12, 7  ;;  %v596_v15 = vld [vmem:[%s3755_s22] sm:$0x77]  ;;  %v597_v19 = vld [vmem:[%s3755_s22 + $0x8] sm:$0x7] }
  0xeb   : > { %510 = vrot.lane.b32.xlu0 %v505_v3, %s3408_s25  ;;  %v504_v11 = vrot.slane %v502_v7, 5  ;;  %v2907_v16 = vld [vmem:[%s3755_s22 + $0x8] ss:$0 sps:$4 sm:$0x77]   ;;  %v600_v17 = vcombine.high %v596_v15, %v596_v15  ;;  %v574_v18 = vld [vmem:[%s3755_s22] sm:$0x77] }
  0xec   : > { %v556_v14 = vrot.slane %v554_v9, 7  ;;  %v603_v20 = vrot.slane %v597_v19, 1  ;;  %s4771_s26 = smov 108   ;;  %v527_v22 = vrot.slane %v522_v4, 2  ;;  %v503_v23 = vrot.slane %v498_v5, 5  ;;  %s4773_s24 = smov 92  }
  0xed   : > { %v602_v21 = vrot.slane %v600_v17, 1  ;;  %v624_v24 = vld [vmem:[%s3755_s22] sm:$0x77]  ;;  %v578_v26 = vcombine.low %v574_v18, %v574_v18  ;;  %v555_v27 = vrot.slane %v550_v8, 7  ;;  %v601_v32 = vrot.slane %v596_v15, 1  ;;  %s4767_s12 = smov 91  }
  0xee   : > { %532 = vrot.lane.b32.xlu1 %v528_v10, %s3407_s20  ;;  %v489_v25 = vld [vmem:[%s3755_s22] sm:$0x77]  ;;  %v628_v28 = vcombine.high %v624_v24, %v624_v24  ;;  %v625_v34 = vld [vmem:[%s3755_s22 + $0x8] sm:$0x7]  ;;  %vm4775_vm0 = vcmask 256000   ;;  %s4769_s28 = smov 90  }
  0xef   : > { %508 = vrot.lane.b32.xlu0 %v504_v11, %s3408_s25  ;;  %v492_v29 = vcombine.high %v489_v25, %v489_v25  ;;  %494 = vst [vmem:[#allocation2] sm:$0x7] %v489_v25  ;;  %v648_v30 = vld [vmem:[%s3755_s22] sm:$0x77]  ;;  %v631_v36 = vrot.slane %v625_v34, 6  ;;  %v629_v42 = vrot.slane %v624_v24, 6 }
  0xf0   : > { %v630_v31 = vrot.slane %v628_v28, 6  ;;  %v652_v33 = vcombine.high %v648_v30, %v648_v30  ;;  %v672_v37 = vld [vmem:[%s3755_s22] sm:$0x77]  ;;  %v649_v38 = vld [vmem:[%s3755_s22 + $0x8] sm:$0x7]  ;;  %v653_v44 = vrot.slane %v648_v30, 3 }
  0xf1   : > { %495 = vst [vmem:[#allocation2 + $0x8] sm:$0x7] %v492_v29  ;;  %v676_v39 = vcombine.high %v672_v37, %v672_v37  ;;  %v655_v40 = vrot.slane %v649_v38, 3  ;;  %v490_v41 = vld [vmem:[%s3755_s22 + $0x8] sm:$0x7]  ;;  %v3415_v50 = vmov 0  }
  0xf2   : > { %562 = vrot.lane.b32.xlu1 %v557_v13, %s3409_s10  ;;  %v654_v35 = vrot.slane %v652_v33, 3  ;;  %497 = vst.msk [vmem:[#allocation2 + $0x10] sm:$0x7] %vm4775_vm0, %v490_v41  ;;  %v673_v43 = vld [vmem:[%s3755_s22 + $0x8] sm:$0x7]  ;;  %1010 = vmatprep.mubr.bf16.mxu0 %v3415_v50  ;;  %s3416_s2 = smov 32  }
  0xf3   : > { %560 = vrot.lane.b32.xlu0 %v556_v14, %s3409_s10  ;;  %v2644_v45 = vld [vmem:[%s3755_s22 + $0xc] sm:$0x77]  ;;  %2902 = vset.pattern.permute.xlu1 %v3415_v50  ;;  %s3417_s1 = smov 31   ;;  %s4795_s3 = smov 30   ;;  %v2657_v4 = vld [vmem:[%s3755_s22 + $0x14] sm:$0x7] }
  0xf4   : > { %v2646_v46 = vld [vmem:[%s3755_s22 + $0xc] sm:$0x77]  ;;  %v697_v47 = vcombine.high %v2644_v45, %v2644_v45  ;;  %2903 = vset.pattern.permute.xlu0 %v3415_v50  ;;  %2175 = vmatprep.mubr.bf16.mxu1 %v3415_v50  ;;  %s4793_s23 = smov 14   ;;  %s4791_s27 = smov 13   ;;  %v855_v6 = vrot.slane %v2657_v4, 6  ;;  %v3425_v25 = vmov 0.0  }
  0xf5   : > { %v719_v48 = vcombine.high %v2646_v46, %v2646_v46  ;;  %v2648_v49 = vld [vmem:[%s3755_s22 + $0xc] sm:$0x77]  ;;  %v720_v52 = vrot.slane %v2646_v46, 5  ;;  %v2659_v9 = vld [vmem:[%s3755_s22 + $0x14] sm:$0x7]  ;;  %1522 = vst [vmem:[#allocation3] sm:$0xff] %v3425_v25 }
  0xf6   : > { %584 = vrot.lane.b32.xlu1 %v2907_v16, %s3410_s21  ;;  %v744_v53 = vcombine.high %v2648_v49, %v2648_v49  ;;  %v2650_v54 = vld [vmem:[%s3755_s22 + $0xc] sm:$0x77]  ;;  %v745_v56 = vrot.slane %v2648_v49, 2  ;;  %v880_v10 = vrot.slane %v2659_v9, 3  ;;  %v2661_v14 = vld [vmem:[%s3755_s22 + $0x14] sm:$0x7] }
  0xf7   : > { %582 = vrot.lane.b32.xlu0 %v574_v18, %s3410_s21  ;;  %v721_v51 = vrot.slane %v719_v48, 5  ;;  %v774_v57 = vcombine.high %v2650_v54, %v2650_v54  ;;  %v775_v59 = vrot.slane %v2650_v54, 7  ;;  %v2652_v60 = vld [vmem:[%s3755_s22 + $0xc] sm:$0x77]  ;;  %v2645_v17 = vld [vmem:[%s3755_s22 + $0x14] sm:$0x7] }
  0xf8   : > { %v746_v55 = vrot.slane %v744_v53, 2  ;;  %v2654_v61 = vld [vmem:[%s3755_s22 + $0xc] sm:$0x77]  ;;  %v799_v62 = vcombine.low %v2652_v60, %v2652_v60  ;;  %v2649_v18 = vld [vmem:[%s3755_s22 + $0x14] sm:$0x7]  ;;  %v949_v28 = vld [vmem:[#allocation12] sm:$0xff] }
  0xf9   : > { %v776_v58 = vrot.slane %v774_v57, 7  ;;  %v822_v63 = vcombine.high %v2654_v61, %v2654_v61  ;;  %v2656_v0 = vld [vmem:[%s3755_s22 + $0xc] sm:$0x77]  ;;  %v823_v2 = vrot.slane %v2654_v61, 1  ;;  %v2647_v19 = vld [vmem:[%s3755_s22 + $0x14] sm:$0x7] }
  0xfa   : > { %608 = vrot.lane.b32.xlu1 %v603_v20, %s4771_s26  ;;  %v852_v3 = vcombine.high %v2656_v0, %v2656_v0  ;;  %v2658_v5 = vld [vmem:[%s3755_s22 + $0xc] sm:$0x77]  ;;  %v853_v16 = vrot.slane %v2656_v0, 6  ;;  %v747_v20 = vrot.slane %v2649_v18, 2  ;;  %vm520_vm1 = vcmask 259075   ;;  %p4860_p10 = scmp.ne.s32.totalorder %s4814_s29, 0 }
  0xfb   : > { %606 = vrot.lane.b32.xlu0 %v602_v21, %s4771_s26  ;;  %v824_v1 = vrot.slane %v822_v63, 1  ;;  %v877_v8 = vcombine.high %v2658_v5, %v2658_v5  ;;  %v2660_v12 = vld [vmem:[%s3755_s22 + $0xc] sm:$0x77]  ;;  %v878_v15 = vrot.slane %v2658_v5, 3  ;;  %v722_v21 = vrot.slane %v2647_v19, 5 }
  0xfc   : > { %v854_v7 = vrot.slane %v852_v3, 6  ;;  %v902_v13 = vcombine.high %v2660_v12, %v2660_v12  ;;  %vm544_vm2 = vcmask 261126   ;;  %vm548_vm3 = vcmask 253952  }
  0xfd   : > { %v879_v11 = vrot.slane %v877_v8, 3  ;;  %vm4784_vm4 = vcmask 1031168   ;;  %vm4782_vm5 = vcmask 1039360   ;;  %vm572_vm6 = vcmask 257025  }
  0xfe   : > { %530 = vrot.lane.b32.xlu1 %v527_v22, %s3407_s20  ;;  %v2651_v22 = vld [vmem:[%s3755_s22 + $0x14] sm:$0x7]  ;;  %vm4781_vm7 = vcmask 900096   ;;  %vm594_vm8 = vcmask 260100   ;;  %vm4779_vm9 = vcmask 891904   ;;  %vm4778_vm10 = vcmask 883712  }
  0xff   : > { %506 = vrot.lane.b32.xlu0 %v503_v23, %s3408_s25  ;;  %v2922_v23 = vld [vmem:[%s3755_s22 + $0x14] ss:$0 sps:$4 sm:$0x77]   ;;  %v777_v24 = vrot.slane %v2651_v22, 7  ;;  %vm618_vm11 = vcmask 261127   ;;  %vm622_vm12 = vcmask 254976  }
 0x100   : > { %vm4777_vm13 = vcmask 752640   ;;  %vm646_vm14 = vcmask 258050   ;;  %vm4776_vm15 = vcmask 744448  }
 0x102   : > { %580 = vrot.lane.b32.xlu1 %v578_v26, %s3410_s21  ;;  %v2655_v26 = vld [vmem:[%s3755_s22 + $0x14] sm:$0x7]  ;;  %s1155_s22 = sld [smem:[#allocation14]] }
 0x103   : > { %558 = vrot.lane.b32.xlu0 %v555_v27, %s3409_s10  ;;  %v825_v27 = vrot.slane %v2655_v26, 1 }
 0x106   : > { %634 = vrot.lane.b32.xlu1 %v630_v31, %s4773_s24 }
 0x107   : > { %604 = vrot.lane.b32.xlu0 %v601_v32, %s4771_s26  ;;  %s3423_s26 = smov 123  }
 0x10a   : > { %658 = vrot.lane.b32.xlu1 %v654_v35, %s4767_s12 }
 0x10b   : > { %636 = vrot.lane.b32.xlu0 %v631_v36, %s4773_s24 }
 0x10e   : > { %679 = vrot.lane.b32.xlu1 %v676_v39, %s4769_s28 }
 0x10f   : > { %660 = vrot.lane.b32.xlu0 %v655_v40, %s4767_s12 }
 0x112   : > { %632 = vrot.lane.b32.xlu1 %v629_v42, %s4773_s24  ;;  %s4785_s24 = smov 122  }
 0x113   : > { %681 = vrot.lane.b32.xlu0 %v673_v43, %s4769_s28 }
 0x116   : > { %677 = vrot.lane.b32.xlu1 %v672_v37, %s4769_s28  ;;  %s4787_s28 = smov 124  }
 0x117   : > { %656 = vrot.lane.b32.xlu0 %v653_v44, %s4767_s12  ;;  %s4789_s12 = smov 12  }
 0x11a   : > { %700 = vrot.lane.b32.xlu1 %v697_v47, %s3416_s2 }
 0x11b   : > { %698 = vrot.lane.b32.xlu0 %v2644_v45, %s3416_s2 }
 0x11e   : > { %725 = vrot.lane.b32.xlu1 %v721_v51, %s3417_s1 }
 0x11f   : > { %723 = vrot.lane.b32.xlu0 %v720_v52, %s3417_s1 }
 0x122   : > { %750 = vrot.lane.b32.xlu1 %v746_v55, %s4795_s3 }
 0x123   : > { %748 = vrot.lane.b32.xlu0 %v745_v56, %s4795_s3 }
 0x126   : > { %780 = vrot.lane.b32.xlu1 %v776_v58, %s4793_s23 }
 0x127   : > { %778 = vrot.lane.b32.xlu0 %v775_v59, %s4793_s23 }
 0x12a   : > { %803 = vrot.lane.b32.xlu1 %v2652_v60, %s4791_s27 }
 0x12b   : > { %801 = vrot.lane.b32.xlu0 %v799_v62, %s4791_s27 }
 0x12e   : > { %828 = vrot.lane.b32.xlu1 %v824_v1, %s4789_s12 }
 0x12f   : > { %826 = vrot.lane.b32.xlu0 %v823_v2, %s4789_s12 }
 0x132   : > { %860 = vrot.lane.b32.xlu1 %v855_v6, %s4787_s28 }
 0x133   : > { %858 = vrot.lane.b32.xlu0 %v854_v7, %s4787_s28 }
 0x136   : > { %885 = vrot.lane.b32.xlu1 %v880_v10, %s3423_s26 }
 0x137   : > { %883 = vrot.lane.b32.xlu0 %v879_v11, %s3423_s26 }
 0x13a   : > { %907 = vrot.lane.b32.xlu1 %v2661_v14, %s4785_s24 }
 0x13b   : > { %905 = vrot.lane.b32.xlu0 %v902_v13, %s4785_s24 }
 0x13e   : > { %881 = vrot.lane.b32.xlu1 %v878_v15, %s3423_s26 }
 0x13f   : > { %856 = vrot.lane.b32.xlu0 %v853_v16, %s4787_s28  ;;  %s2671_s28 = sld [smem:[#allocation14 + $0x2]] }
 0x142   : > { %702 = vrot.lane.b32.xlu1 %v2645_v17, %s3416_s2 }
 0x143   : > { %903 = vrot.lane.b32.xlu0 %v2660_v12, %s4785_s24  ;;  %v3426_v12 = vmov 65535   ;;  %s2670_s24 = sld [smem:[#allocation14 + $0x1]] }
 0x146   : > { %752 = vrot.lane.b32.xlu1 %v747_v20, %s4795_s3  ;;  %s4834_s3 = smov 91  }
 0x147   : > { %727 = vrot.lane.b32.xlu0 %v722_v21, %s3417_s1 }
 0x14a   : > { %805 = vrot.lane.b32.xlu1 %v2922_v23, %s4791_s27  ;;  %s2673_s27 = sld [smem:[#allocation14 + $0x4]] }
 0x14b   : > { %782 = vrot.lane.b32.xlu0 %v777_v24, %s4793_s23  ;;  %s2674_s23 = sld [smem:[#allocation14 + $0x5]] }
 0x14e   : > { %952 = vperm.xlu1 %2902, %v949_v28  }
 0x14f   : > { %830 = vrot.lane.b32.xlu0 %v825_v27, %s4789_s12  ;;  %s2672_s12 = sld [smem:[#allocation14 + $0x3]] }
 0x15c   : > { %v535_v29 = vpop.permute.xlu1 %534 }
 0x15d   : > { %v511_v30 = vpop.permute.xlu0 %510  ;;  %545 = vst.msk [vmem:[#allocation2 + $0x10] sm:$0xc0] %vm544_vm2, %v535_v29  ;;  %vm4780_vm2 = vcmask 736256  }
 0x15e   : > { %521 = vst.msk [vmem:[#allocation2 + $0x10] sm:$0x38] %vm520_vm1, %v511_v30  ;;  %vm670_vm1 = vcmask 261125  }
 0x15f   : > { %549 = vst.msk [vmem:[#allocation2 + $0x38] sm:$0x1] %vm548_vm3, %v535_v29  ;;  %vm959_vm3 = vcmask 1044480  }
 0x160   : > { %v533_v31 = vpop.permute.xlu1 %532  ;;  %v961_v13 = vsel %vm959_vm3, 4294967295, %v3426_v12  ;;  %vm760_vm3 = vcmask 1047814  }
 0x161   : > { %v509_v32 = vpop.permute.xlu0 %508  ;;  %v538_v33 = vsel %vm4784_vm4, %v533_v31, %v535_v29 }
 0x162   : > { %v514_v34 = vsel %vm4782_vm5, %v509_v32, %v511_v30  ;;  %543 = vst [vmem:[#allocation2 + $0x30] ss:$-36 sps:$4 sm:$0xc1] %v538_v33   ;;  %v3908_v33 = vld [vmem:[#allocation11] sm:$0xf] }
 0x163   : > { %519 = vst [vmem:[#allocation2 + $0x8] sm:$0x38] %v514_v34 }
 0x164   : > { %v563_v35 = vpop.permute.xlu1 %562 }
 0x165   : > { %v561_v36 = vpop.permute.xlu0 %560  ;;  %573 = vst.msk [vmem:[#allocation2 + $0x38] sm:$0xe] %vm572_vm6, %v563_v35  ;;  %vm704_vm6 = vcmask 261120  }
 0x166   : > { %v566_v37 = vsel %vm4781_vm7, %v561_v36, %v563_v35 }
 0x167   : > { %571 = vst [vmem:[#allocation2 + $0x30] sm:$0xe] %v566_v37 }
 0x168   : > { %v585_v38 = vpop.permute.xlu1 %584 }
 0x169   : > { %v583_v39 = vpop.permute.xlu0 %582  ;;  %595 = vst.msk [vmem:[#allocation2 + $0x38] sm:$0x70] %vm594_vm8, %v585_v38  ;;  %vm710_vm8 = vcmask 1042688  }
 0x16a   : > { %v588_v40 = vsel %vm4779_vm9, %v583_v39, %v585_v38  ;;  %v920_v53 = vld [vmem:[#allocation2 + $0x8] sm:$0xff] }
 0x16b   : > { %593 = vst [vmem:[#allocation2 + $0x30] sm:$0x70] %v588_v40 }
 0x16c   : > { %v609_v41 = vpop.permute.xlu1 %608 }
 0x16d   : > { %v607_v42 = vpop.permute.xlu0 %606  ;;  %619 = vst.msk [vmem:[#allocation2 + $0x38] sm:$0x80] %vm618_vm11, %v609_v41  ;;  %vm960_vm11 = vcmask 1045504  }
 0x16e   : > { %v612_v43 = vsel %vm4778_vm10, %v607_v42, %v609_v41  ;;  %623 = vst.msk [vmem:[#allocation2 + $0x60] sm:$0x3] %vm622_vm12, %v609_v41  ;;  %v3896_v19 = vsel %vm960_vm11, %v961_v13, 0  ;;  %vm729_vm12 = vcmask 252928   ;;  %vm765_vm11 = vcmask 1040640  }
 0x16f   : > { %617 = vst [vmem:[#allocation2 + $0x58] ss:$-36 sps:$4 sm:$0x83] %v612_v43  }
 0x170   : > { %v531_v44 = vpop.permute.xlu1 %530 }
 0x171   : > { %v507_v45 = vpop.permute.xlu0 %506  ;;  %v537_v46 = vsel %vm4784_vm4, %v531_v44, %v533_v31  ;;  %vm738_vm4 = vcmask 521219  }
 0x172   : > { %v513_v47 = vsel %vm4782_vm5, %v507_v45, %v509_v32  ;;  %542 = vst [vmem:[#allocation2 + $0x28] ss:$-36 sps:$4 sm:$0xc1] %v537_v46   ;;  %vm763_vm5 = vcmask 523270  }
 0x173   : > { %518 = vst [vmem:[#allocation2] sm:$0x38] %v513_v47 }
 0x174   : > { %v581_v48 = vpop.permute.xlu1 %580 }
 0x175   : > { %v559_v49 = vpop.permute.xlu0 %558  ;;  %v587_v51 = vsel %vm4779_vm9, %v581_v48, %v583_v39  ;;  %vm843_vm9 = vcmask 1041664  }
 0x176   : > { %v565_v52 = vsel %vm4781_vm7, %v559_v49, %v561_v36  ;;  %v925_v54 = vld [vmem:[#allocation2 + $0x30] sm:$0xff]  ;;  %592 = vst [vmem:[#allocation2 + $0x28] sm:$0x70] %v587_v51  ;;  %vm4783_vm7 = vcmask 1006592  }
 0x177   : > { %570 = vst [vmem:[#allocation2 + $0x28] sm:$0xe] %v565_v52  ;;  %v940_v55 = vpack.c.bf16 %v925_v54, %v920_v53 }
 0x178   : > { %v635_v56 = vpop.permute.xlu1 %634 }
 0x179   : > { %v605_v57 = vpop.permute.xlu0 %604  ;;  %978 = vmatprep.subr.bf16.mxu0 %v940_v55 }
 0x17a   : > { %v611_v58 = vsel %vm4778_vm10, %v605_v57, %v607_v42  ;;  %v919_v1 = vld [vmem:[#allocation2] sm:$0xff]  ;;  %vm838_vm10 = vcmask 1047815  }
 0x17b   : > { %616 = vst [vmem:[#allocation2 + $0x50] ss:$-36 sps:$4 sm:$0x83] %v611_v58  }
 0x17c   : > { %v659_v59 = vpop.permute.xlu1 %658 }
 0x17d   : > { %v637_v60 = vpop.permute.xlu0 %636 }
 0x17e   : > { %v640_v61 = vsel %vm4777_vm13, %v635_v56, %v637_v60  ;;  %647 = vst.msk [vmem:[#allocation2 + $0x60] sm:$0x1c] %vm646_vm14, %v637_v60  ;;  %vm735_vm14 = vcmask 1045763  }
 0x17f   : > { %645 = vst [vmem:[#allocation2 + $0x58] sm:$0x1c] %v640_v61 }
 0x180   : > { %v680_v62 = vpop.permute.xlu1 %679 }
 0x181   : > { %v661_v63 = vpop.permute.xlu0 %660 }
 0x182   : > { %v664_v0 = vsel %vm4776_vm15, %v659_v59, %v661_v63  ;;  %671 = vst.msk [vmem:[#allocation2 + $0x60] sm:$0xe0] %vm670_vm1, %v661_v63  ;;  %v924_v2 = vld [vmem:[#allocation2 + $0x28] sm:$0xff]  ;;  %vm754_vm1 = vcmask 244736  }
 0x183   : > { %669 = vst [vmem:[#allocation2 + $0x58] sm:$0xe0] %v664_v0  ;;  %v939_v3 = vpack.c.bf16 %v924_v2, %v919_v1 }
 0x184   : > { %v633_v4 = vpop.permute.xlu1 %632 }
 0x185   : > { %v682_v5 = vpop.permute.xlu0 %681  ;;  %979 = vmatpush1.bf16.msra.mxu0 %v939_v3  ;;  %v639_v6 = vsel %vm4777_vm13, %v633_v4, %v635_v56  ;;  %vm832_vm13 = vcmask 97280  }
 0x186   : > { %v685_v7 = vsel %vm4780_vm2, %v680_v62, %v682_v5  ;;  %691 = vst.msk [vmem:[#allocation2 + $0x88] sm:$0x7] %vm4775_vm0, %v682_v5  ;;  %644 = vst [vmem:[#allocation2 + $0x50] sm:$0x1c] %v639_v6  ;;  %vm790_vm0 = vcmask 1043713  }
 0x187   : > { %690 = vst [vmem:[#allocation2 + $0x80] sm:$0x7] %v685_v7 }
 0x188   : > { %v678_v8 = vpop.permute.xlu1 %677 }
 0x189   : > { %v657_v9 = vpop.permute.xlu0 %656  ;;  %v684_v10 = vsel %vm4780_vm2, %v678_v8, %v680_v62  ;;  %vm862_vm2 = vcmask 1014784  }
 0x18a   : > { %v663_v11 = vsel %vm4776_vm15, %v657_v9, %v659_v59  ;;  %689 = vst [vmem:[#allocation2 + $0x78] sm:$0x7] %v684_v10  ;;  %v930_v17 = vld [vmem:[#allocation2 + $0x58] sm:$0xff]  ;;  %vm955_vm15 = vcmask 220160  }
 0x18b   : > { %668 = vst [vmem:[#allocation2 + $0x50] sm:$0xe0] %v663_v11 }
 0x18c   : > { %v3891_v14 = vpop.permute.xlu1 %700 }
 0x18d   : > { %v699_v15 = vpop.permute.xlu0 %698 }
 0x18e   : > { %v705_v16 = vsel %vm704_vm6, %v699_v15, %v3891_v14  ;;  %711 = vst.msk [vmem:[#allocation2 + $0x10] sm:$0x7] %vm710_vm8, %v699_v15  ;;  %v935_v18 = vld [vmem:[#allocation2 + $0x80] sm:$0x7] }
 0x18f   : > { %712 = vst [vmem:[#allocation2 + $0x18] sm:$0x7] %v705_v16  ;;  %v945_v20 = vpack.c.bf16 %v935_v18, %v930_v17 }
 0x190   : > { %v3898_v21 = vpop.permute.xlu1 %725 }
 0x191   : > { %v724_v22 = vpop.permute.xlu0 %723  ;;  %v967_v23 = vand.u32 %v3896_v19, %v945_v20  ;;  %v934_v27 = vld [vmem:[#allocation2 + $0x78] sm:$0x7] }
 0x192   : > { %v730_v24 = vsel %vm729_vm12, %v724_v22, %v3898_v21  ;;  %736 = vst.msk [vmem:[#allocation2 + $0x10] sm:$0x38] %vm735_vm14, %v724_v22  ;;  %v929_v26 = vld [vmem:[#allocation2 + $0x50] sm:$0xff]  ;;  %vm784_vm14 = vcmask 113664  }
 0x193   : > { %737 = vst [vmem:[#allocation2 + $0x18] sm:$0x38] %v730_v24  ;;  %980 = vmatprep.subr.bf16.mxu0 %v967_v23  ;;  %v944_v28 = vpack.c.bf16 %v934_v27, %v929_v26 }
 0x194   : > { %v3903_v29 = vpop.permute.xlu1 %750 }
 0x195   : > { %v749_v30 = vpop.permute.xlu0 %748  ;;  %v964_v31 = vand.u32 %v3896_v19, %v944_v28 }
 0x196   : > { %v755_v32 = vsel %vm754_vm1, %v749_v30, %v3903_v29  ;;  %761 = vst.msk [vmem:[#allocation2 + $0x10] sm:$0xc0] %vm760_vm3, %v749_v30  ;;  %vm807_vm3 = vcmask 105472  }
 0x197   : > { %766 = vst.msk [vmem:[#allocation2 + $0x38] sm:$0x1] %vm765_vm11, %v749_v30  ;;  %762 = vst [vmem:[#allocation2 + $0x40] ss:$-36 sps:$4 sm:$0xc1] %v755_v32   ;;  %981 = vmatpush1.bf16.msra.mxu0 %v964_v31  ;;  %vm813_vm11 = vcmask 1046788   ;;  %v1130_v30 = vlaneseq }
 0x198   : > { %v3910_v34 = vpop.permute.xlu1 %780 }
 0x199   : > { %v779_v35 = vpop.permute.xlu0 %778  ;;  %v3959_v31 = vshrl.u32 %v1130_v30, 7 }
 0x19a   : > { %v785_v36 = vsel %vm784_vm14, %v779_v35, %v3910_v34  ;;  %791 = vst.msk [vmem:[#allocation2 + $0x38] sm:$0xe] %vm790_vm0, %v779_v35  ;;  %2662 = vmatmul.mubr.msk.bf16.vlgmr.msra.gmra.mrb[0].mxu0 %vm955_vm15, %v3908_v33  ;;  %vm871_vm0 = vcmask 520194   ;;  %v488_v35 = vld [vmem:[#allocation9] sm:$0x7] }
 0x19b   : > { %792 = vst [vmem:[#allocation2 + $0x40] sm:$0xe] %v785_v36  ;;  %1051 = vmatprep.mubr.bf16.mxu0 %v3415_v50  ;;  %v3962_v32 = vsub.s32 0, %v3959_v31 }
 0x19c   : > { %v3917_v37 = vpop.permute.xlu1 %803 }
 0x19d   : > { %v802_v38 = vpop.permute.xlu0 %801  ;;  %v921_v54 = vld [vmem:[#allocation2 + $0x10] sm:$0xff] }
 0x19e   : > { %v808_v39 = vsel %vm807_vm3, %v802_v38, %v3917_v37  ;;  %814 = vst.msk [vmem:[#allocation2 + $0x38] sm:$0x70] %vm813_vm11, %v802_v38  ;;  %vm896_vm11 = vcmask 523269   ;;  %v922_v51 = vld [vmem:[#allocation2 + $0x18] sm:$0xff] }
 0x19f   : > { %815 = vst [vmem:[#allocation2 + $0x40] sm:$0x70] %v808_v39 }
 0x1a0   : > { %v3921_v40 = vpop.permute.xlu1 %828 }
 0x1a1   : > { %v827_v41 = vpop.permute.xlu0 %826 }
 0x1a2   : > { %v833_v42 = vsel %vm832_vm13, %v827_v41, %v3921_v40  ;;  %839 = vst.msk [vmem:[#allocation2 + $0x38] sm:$0x80] %vm838_vm10, %v827_v41  ;;  %vm909_vm10 = vcmask 998400  }
 0x1a3   : > { %844 = vst.msk [vmem:[#allocation2 + $0x60] sm:$0x3] %vm843_vm9, %v827_v41  ;;  %840 = vst [vmem:[#allocation2 + $0x68] ss:$-36 sps:$4 sm:$0x83] %v833_v42   ;;  %vm713_vm9 = vcmask 518144  }
 0x1a4   : > { %v861_v43 = vpop.permute.xlu1 %860 }
 0x1a5   : > { %v859_v44 = vpop.permute.xlu0 %858  ;;  %872 = vst.msk [vmem:[#allocation2 + $0x70] sm:$0x1c] %vm871_vm0, %v861_v43  ;;  %vm893_vm0 = vcmask 1047813  }
 0x1a6   : > { %v864_v45 = vsel %vm862_vm2, %v859_v44, %v861_v43 }
 0x1a7   : > { %870 = vst [vmem:[#allocation2 + $0x68] sm:$0x1c] %v864_v45 }
 0x1a8   : > { %v886_v46 = vpop.permute.xlu1 %885 }
 0x1a9   : > { %v884_v47 = vpop.permute.xlu0 %883  ;;  %v926_v48 = vld [vmem:[#allocation2 + $0x38] sm:$0xff]  ;;  %897 = vst.msk [vmem:[#allocation2 + $0x70] sm:$0xe0] %vm896_vm11, %v886_v46  ;;  %vm868_vm11 = vcmask 1044738  }
 0x1aa   : > { %v889_v49 = vsel %vm4783_vm7, %v884_v47, %v886_v46  ;;  %v927_v52 = vld [vmem:[#allocation2 + $0x40] sm:$0xff]  ;;  %v941_v55 = vpack.c.bf16 %v926_v48, %v921_v54  ;;  %v3989_v54 = vstv %s1155_s22 }
 0x1ab   : > { %895 = vst [vmem:[#allocation2 + $0x68] sm:$0xe0] %v889_v49  ;;  %v942_v53 = vpack.c.bf16 %v927_v52, %v922_v51 }
 0x1ac   : > { %v908_v56 = vpop.permute.xlu1 %907 }
 0x1ad   : > { %v906_v57 = vpop.permute.xlu0 %905  ;;  %1019 = vmatprep.subr.bf16.mxu0 %v942_v53  ;;  %917 = vst.msk [vmem:[#allocation2 + $0x98] sm:$0x7] %vm713_vm9, %v908_v56 }
 0x1ae   : > { %v911_v58 = vsel %vm909_vm10, %v906_v57, %v908_v56  ;;  %1020 = vmatpush1.bf16.msra.mxu0 %v941_v55  ;;  %v3991_v55 = vstv %s2670_s24  ;;  %v3993_v56 = vstv %s2671_s28 }
 0x1af   : > { %916 = vst [vmem:[#allocation2 + $0x90] sm:$0x7] %v911_v58 }
 0x1b0   : > { %v882_v59 = vpop.permute.xlu1 %881 }
 0x1b1   : > { %v857_v60 = vpop.permute.xlu0 %856  ;;  %v888_v61 = vsel %vm4783_vm7, %v882_v59, %v884_v47  ;;  %vm768_vm7 = vcmask 516096  }
 0x1b2   : > { %v863_v62 = vsel %vm862_vm2, %v857_v60, %v859_v44  ;;  %894 = vst.msk [vmem:[#allocation2 + $0x60] sm:$0xe0] %vm893_vm0, %v888_v61  ;;  %v932_v3 = vld [vmem:[#allocation2 + $0x68] sm:$0xff]  ;;  %vm841_vm0 = vcmask 523271   ;;  %v4001_v61 = vstv %s2673_s27  ;;  %s2743_s27 = smul.u32 48, %s3749_s11 }
 0x1b3   : > { %869 = vst.msk [vmem:[#allocation2 + $0x60] sm:$0x1c] %vm868_vm11, %v863_v62  ;;  %v4003_v62 = vstv %s2674_s23  ;;  %s3429_s23 = smov 19  }
 0x1b4   : > { %v703_v63 = vpop.permute.xlu1 %702  ;;  %v938_v22 = vld [vmem:[#allocation2 + $0x98] sm:$0x7]  ;;  %s4055_s24 = scalar_lea.vmem [#allocation22], %s2743_s27  ;;  %s4169_s28 = scalar_lea.vmem [#allocation21], %s2743_s27 }
 0x1b5   : > { %v904_v0 = vpop.permute.xlu0 %903  ;;  %v706_v1 = vsel %vm704_vm6, %v3891_v14, %v703_v63  ;;  %s3430_s27 = smov 115  }
 0x1b6   : > { %v910_v2 = vsel %vm909_vm10, %v904_v0, %v906_v57  ;;  %v937_v4 = vld [vmem:[#allocation2 + $0x90] sm:$0x7]  ;;  %714 = vst.msk [vmem:[#allocation2 + $0x20] sm:$0x7] %vm713_vm9, %v706_v1  ;;  %vm816_vm9 = vcmask 522244   ;;  %v3995_v57 = vstv %s2672_s12  ;;  %s2742_s12 = smul.u32 6, %s3749_s11 }
 0x1b7   : > { %915 = vst.msk [vmem:[#allocation2 + $0x88] sm:$0x7] %vm710_vm8, %v910_v2  ;;  %v947_v5 = vpack.c.bf16 %v937_v4, %v932_v3  ;;  %vm793_vm8 = vcmask 519169  }
 0x1b8   : > { %v753_v6 = vpop.permute.xlu1 %752  ;;  %s4206_s22 = scalar_lea.vmem [#allocation19], %s2742_s12  ;;  %s4831_s12 = smov 92  }
 0x1b9   : > { %v728_v7 = vpop.permute.xlu0 %727  ;;  %v973_v8 = vand.u32 %v3896_v19, %v947_v5  ;;  %v756_v9 = vsel %vm754_vm1, %v3903_v29, %v753_v6 }
 0x1ba   : > { %v731_v10 = vsel %vm729_vm12, %v3898_v21, %v728_v7  ;;  %764 = vst.msk [vmem:[#allocation2 + $0x20] sm:$0xc0] %vm763_vm5, %v756_v9  ;;  %v931_v15 = vld [vmem:[#allocation2 + $0x60] sm:$0xff]  ;;  %vm846_vm5 = vcmask 517120  }
 0x1bb   : > { %769 = vst.msk [vmem:[#allocation2 + $0x48] sm:$0x1] %vm768_vm7, %v756_v9  ;;  %1021 = vmatprep.subr.bf16.mxu0 %v973_v8 }
 0x1bc   : > { %739 = vst.msk [vmem:[#allocation2 + $0x20] sm:$0x38] %vm738_vm4, %v731_v10  ;;  %v806_v11 = vpop.permute.xlu1 %805  ;;  %vm3427_vm4 = vmmov 0  }
 0x1bd   : > { %v783_v12 = vpop.permute.xlu0 %782  ;;  %v809_v13 = vsel %vm807_vm3, %v3917_v37, %v806_v11 }
 0x1be   : > { %v786_v14 = vsel %vm784_vm14, %v3910_v34, %v783_v12  ;;  %v936_v16 = vld [vmem:[#allocation2 + $0x88] sm:$0x7]  ;;  %817 = vst.msk [vmem:[#allocation2 + $0x48] sm:$0x70] %vm816_vm9, %v809_v13  ;;  %v1571_v34 = vsub.s32 1, %v3959_v31 }
 0x1bf   : > { %794 = vst.msk [vmem:[#allocation2 + $0x48] sm:$0xe] %vm793_vm8, %v786_v14  ;;  %v946_v17 = vpack.c.bf16 %v936_v16, %v931_v15 }
 0x1c0   : > { %v3965_v36 = vrot.slane %v488_v35, %v1571_v34 }
 0x1c1   : > { %v831_v18 = vpop.permute.xlu0 %830  ;;  %v970_v20 = vand.u32 %v3896_v19, %v946_v17 }
 0x1c2   : > { %v834_v21 = vsel %vm832_vm13, %v3921_v40, %v831_v18  ;;  %1834 = vrot.lane.b32.xlu1 %v3965_v36, %s3416_s2 }
 0x1c3   : > { %842 = vst.msk [vmem:[#allocation2 + $0x48] sm:$0x80] %vm841_vm0, %v834_v21  ;;  %1022 = vmatpush1.bf16.msra.mxu0 %v970_v20  ;;  %v923_v23 = vld [vmem:[#allocation2 + $0x20] sm:$0xff] }
 0x1c4   : > { %847 = vst.msk [vmem:[#allocation2 + $0x70] sm:$0x3] %vm846_vm5, %v834_v21  ;;  %2717 = vmatprep.subr.bf16.mxu0 %v3425_v25 }
 0x1c6   : > { %2663 = vmatmul.mubr.msk.bf16.vlgmr.msra.gmra.mrb[4].mxu0 %vm955_vm15, %v3908_v33 }
 0x1c7   : > { %2721 = vmatprep.mubr.msk.bf16.mxu0 %vm3427_vm4, %v3425_v25 }
 0x1ca   : > { %v928_v24 = vld [vmem:[#allocation2 + $0x48] sm:$0xff] }
 0x1cb   : > { %v933_v26 = vld [vmem:[#allocation2 + $0x70] sm:$0xff]  ;;  %v943_v27 = vpack.c.bf16 %v928_v24, %v923_v23 }
 0x1cc   : > { %v948_v28 = vpack.c.bf16 %v938_v22, %v933_v26 }
 0x1cd   : > { %2718 = vmatpush3.bf16.msra.mxu0 %v943_v27  ;;  %v3979_v37 = vpop.permute.xlu1 %952 }
 0x1ce   : > { %2719 = vmatprep.subr.bf16.mxu0 %v3425_v25  ;;  %v976_v29 = vand.u32 %v3896_v19, %v948_v28  ;;  %v3968_v25 = vrot.slane %v488_v35, %v3962_v32  ;;  %v1575_v19 = vsub.s32 2, %v3959_v31 }
 0x1d0   : > { %1832 = vrot.lane.b32.xlu0 %v3968_v25, %s3416_s2 }
 0x1d1   : > { %2720 = vmatpush3.bf16.msra.mxu0 %v976_v29 }
 0x1d4   : > { %2722 = vmatmul.mubr.msk.bf16.vlgmr.msra.gmra.mrb[8].mxu0 %vm955_vm15, %v3908_v33  ;;  %v3975_v33 = vrot.slane %v488_v35, %v1575_v19 }
 0x1d5   : > { %2216 = vmatprep.mubr.bf16.mxu0 %v3415_v50 }
 0x1d6   : > { %1836 = vrot.lane.b32.xlu0 %v3975_v33, %s3416_s2 }
 0x26d   : > { %v1012_v38 = vpop.f32.mrb[0].mxu0 }
 0x26e   : > { %v1013_v39 = vadd.f32 %v1012_v38, %v3979_v37  ;;  %v1014_v40 = vpop.f32.mrb[1].mxu0 }
 0x26f   : > { %v1015_v41 = vadd.f32 %v1014_v40, %v3979_v37  ;;  %v1016_v42 = vpop.f32.mrb[2].mxu0 }
 0x270   : > { %v2665_v43 = vmul.f32 -1.442695, %v1013_v39  ;;  %v1017_v44 = vpop.f32.mrb[3].mxu0 }
 0x271   : > { %v2666_v45 = vmul.f32 -1.442695, %v1015_v41 }
 0x272   : > { %2924 = vpow2.f32 %v2665_v43 }
 0x273   : > { %2926 = vpow2.f32 %v2666_v45 }
 0x27c   : > { %v2925_v46 = vpop.eup %2924 }
 0x27d   : > { %v2927_v47 = vpop.eup %2926  ;;  %v1115_v48 = vadd.f32 1.0, %v2925_v46 }
 0x27e   : > { %v1116_v49 = vadd.f32 1.0, %v2927_v47 }
 0x27f   : > { %2928 = vrcp.f32 %v1115_v48 }
 0x280   : > { %2930 = vrcp.f32 %v1116_v49 }
 0x289   : > { %v3983_v51 = vpop.eup %2928 }
 0x28a   : > { %v3985_v52 = vpop.eup %2930  ;;  %v1133_v53 = vrot.slane %v3983_v51, %v3962_v32 }
 0x28b   : > { %v1137_v58 = vrot.slane %v3985_v52, %v3962_v32  ;;  %v1529_v59 = vcombine.low %v3983_v51, %v3985_v52 }
 0x28c   : > { %v1150_v60 = vmul.f32 %v1133_v53, %v1013_v39 }
 0x28d   : > { %v1151_v63 = vmul.f32 %v1137_v58, %v1015_v41 }
 0x28e   : > { %v1157_v0 = vsub.f32 %v1150_v60, %v3989_v54  ;;  %v1169_v1 = vsub.f32 %v1150_v60, %v3991_v55  ;;  %v1196_v2 = vsub.f32 %v1150_v60, %v3993_v56  ;;  %v1223_v3 = vsub.f32 %v1150_v60, %v3995_v57 }
 0x28f   : > { %v1158_v4 = vsub.f32 %v1151_v63, %v3989_v54  ;;  %v1170_v5 = vsub.f32 %v1151_v63, %v3991_v55  ;;  %v1250_v8 = vsub.f32 %v1150_v60, %v4001_v61  ;;  %v1277_v9 = vsub.f32 %v1150_v60, %v4003_v62 }
 0x290   : > { %v1162_v6 = vmul.f32 %v1157_v0, %v1157_v0  ;;  %v1174_v7 = vmul.f32 %v1169_v1, %v1169_v1  ;;  %v1201_v10 = vmul.f32 %v1196_v2, %v1196_v2  ;;  %v4013_v11 = vmul.f32 %v1223_v3, %v1223_v3 }
 0x291   : > { %v4015_v12 = vmul.f32 %v1158_v4, %v1158_v4  ;;  %v4017_v13 = vmul.f32 %v1170_v5, %v1170_v5  ;;  %v1197_v15 = vsub.f32 %v1151_v63, %v3993_v56  ;;  %v1224_v16 = vsub.f32 %v1151_v63, %v3995_v57 }
 0x292   : > { %vm1179_vm7 = vcmp.lt.f32.partialorder %v1174_v7, %v1162_v6  ;;  %v1189_v14 = vmin.f32 %v1162_v6, %v1174_v7  ;;  %v1251_v20 = vsub.f32 %v1151_v63, %v4001_v61  ;;  %v4028_v26 = vmul.f32 %v1250_v8, %v1250_v8 }
 0x293   : > { %v1184_v17 = vsel %vm1179_vm7, 1, %v3415_v50  ;;  %vm1180_vm15 = vcmp.lt.f32.partialorder %v4017_v13, %v4015_v12  ;;  %v1190_v18 = vmin.f32 %v4015_v12, %v4017_v13  ;;  %v1202_v23 = vmul.f32 %v1197_v15, %v1197_v15 }
 0x294   : > { %vm1206_vm11 = vcmp.lt.f32.partialorder %v1201_v10, %v1189_v14  ;;  %v1216_v21 = vmin.f32 %v1189_v14, %v1201_v10  ;;  %v1185_v22 = vsel %vm1180_vm15, 1, %v3415_v50  ;;  %v4030_v27 = vmul.f32 %v1224_v16, %v1224_v16 }
 0x295   : > { %v1211_v24 = vsel %vm1206_vm11, 2, %v1184_v17  ;;  %v1278_v28 = vsub.f32 %v1151_v63, %v4003_v62  ;;  %vm1207_vm8 = vcmp.lt.f32.partialorder %v1202_v23, %v1190_v18  ;;  %v1217_v34 = vmin.f32 %v1190_v18, %v1202_v23 }
 0x296   : > { %vm1233_vm9 = vcmp.lt.f32.partialorder %v4013_v11, %v1216_v21  ;;  %v1243_v29 = vmin.f32 %v1216_v21, %v4013_v11  ;;  %v1282_v19 = vmul.f32 %v1277_v9, %v1277_v9  ;;  %v1212_v38 = vsel %vm1207_vm8, 2, %v1185_v22 }
 0x297   : > { %v1238_v35 = vsel %vm1233_vm9, 3, %v1211_v24  ;;  %v4036_v39 = vmul.f32 %v1251_v20, %v1251_v20  ;;  %vm1234_vm5 = vcmp.lt.f32.partialorder %v4030_v27, %v1217_v34  ;;  %v1244_v41 = vmin.f32 %v1217_v34, %v4030_v27 }
 0x298   : > { %vm1260_vm0 = vcmp.lt.f32.partialorder %v4028_v26, %v1243_v29  ;;  %v1270_v40 = vmin.f32 %v1243_v29, %v4028_v26  ;;  %v1239_v43 = vsel %vm1234_vm5, 3, %v1212_v38  ;;  %v4042_v44 = vmul.f32 %v1278_v28, %v1278_v28 }
 0x299   : > { %v1265_v42 = vsel %vm1260_vm0, 4, %v1238_v35  ;;  %v1053_v45 = vpop.f32.mrb[4].mxu0  ;;  %vm1261_vm15 = vcmp.lt.f32.partialorder %v4036_v39, %v1244_v41  ;;  %v1271_v47 = vmin.f32 %v1244_v41, %v4036_v39  ;;  %vm4109_vm9 = vcmp.lt.s32.totalorder %v1130_v30, 288 }
 0x29a   : > { %vm1287_vm7 = vcmp.lt.f32.partialorder %v1282_v19, %v1270_v40  ;;  %v1297_v46 = vmin.f32 %v1270_v40, %v1282_v19  ;;  %v1055_v48 = vpop.f32.mrb[5].mxu0  ;;  %v1266_v53 = vsel %vm1261_vm15, 4, %v1239_v43  ;;  %v4047_v58 = vadd.f32 %v1053_v45, %v3979_v37 }
 0x29b   : > { %v1292_v49 = vsel %vm1287_vm7, 5, %v1265_v42  ;;  %v4050_v60 = vadd.f32 %v1055_v48, %v3979_v37  ;;  %v1057_v63 = vpop.f32.mrb[6].mxu0  ;;  %vm1288_vm11 = vcmp.lt.f32.partialorder %v4042_v44, %v1271_v47  ;;  %v1298_v5 = vmin.f32 %v1271_v47, %v4042_v44 }
 0x29c   : > { %v1302_v0 = vsub.f32 %v1162_v6, %v1297_v46  ;;  %v1337_v1 = vsub.f32 %v1174_v7, %v1297_v46  ;;  %v1372_v2 = vsub.f32 %v1201_v10, %v1297_v46  ;;  %v1407_v3 = vsub.f32 %v4013_v11, %v1297_v46  ;;  %v1058_v4 = vpop.f32.mrb[7].mxu0  ;;  %1561 = vst [vmem:[%s4055_s24] sm:$0xff] %v1292_v49 }
 0x29d   : > { %v2667_v8 = vmul.f32 -1.442695, %v4047_v58  ;;  %v2668_v9 = vmul.f32 -1.442695, %v4050_v60  ;;  %v1293_v14 = vsel %vm1288_vm11, 5, %v1266_v53  ;;  %v1303_v11 = vsub.f32 %v4015_v12, %v1298_v5 }
 0x29e   : > { %v1307_v6 = vmul.f32 -1.0, %v1302_v0  ;;  %v1342_v7 = vmul.f32 -1.0, %v1337_v1  ;;  %v1377_v10 = vmul.f32 -1.0, %v1372_v2  ;;  %v1338_v15 = vsub.f32 %v4017_v13, %v1298_v5  ;;  %1562 = vst [vmem:[%s4055_s24 + $0x8] sm:$0xff] %v1293_v14 }
 0x29f   : > { %v1373_v16 = vsub.f32 %v1202_v23, %v1298_v5  ;;  %v1408_v17 = vsub.f32 %v4030_v27, %v1298_v5  ;;  %2932 = vpow2.f32 %v2667_v8  ;;  %v1308_v22 = vmul.f32 -1.0, %v1303_v11 }
 0x2a0   : > { %v1312_v18 = vmul.f32 1.442695, %v1307_v6  ;;  %v1347_v20 = vmul.f32 1.442695, %v1342_v7  ;;  %v1382_v21 = vmul.f32 1.442695, %v1377_v10  ;;  %2934 = vpow2.f32 %v2668_v9 }
 0x2a1   : > { %v1343_v24 = vmul.f32 -1.0, %v1338_v15  ;;  %v1378_v28 = vmul.f32 -1.0, %v1373_v16  ;;  %v1412_v29 = vmul.f32 -1.0, %v1407_v3  ;;  %v1442_v34 = vsub.f32 %v4028_v26, %v1297_v46 }
 0x2a2   : > { %2936 = vpow2.f32 %v1312_v18  ;;  %v1477_v35 = vsub.f32 %v1282_v19, %v1297_v46  ;;  %v1314_v12 = vmul.f32 1.442695, %v1308_v22  ;;  %v1413_v40 = vmul.f32 -1.0, %v1408_v17 }
 0x2a3   : > { %2938 = vpow2.f32 %v1347_v20  ;;  %v1349_v13 = vmul.f32 1.442695, %v1343_v24  ;;  %v1417_v23 = vmul.f32 1.442695, %v1412_v29  ;;  %v1447_v27 = vmul.f32 -1.0, %v1442_v34 }
 0x2a4   : > { %2940 = vpow2.f32 %v1382_v21  ;;  %v1482_v38 = vmul.f32 -1.0, %v1477_v35  ;;  %v1443_v41 = vsub.f32 %v4036_v39, %v1298_v5  ;;  %v1478_v42 = vsub.f32 %v4042_v44, %v1298_v5 }
 0x2a5   : > { %2942 = vpow2.f32 %v1314_v12  ;;  %v1384_v43 = vmul.f32 1.442695, %v1378_v28  ;;  %v1452_v45 = vmul.f32 1.442695, %v1447_v27  ;;  %v1419_v26 = vmul.f32 1.442695, %v1413_v40 }
 0x2a6   : > { %2944 = vpow2.f32 %v1349_v13  ;;  %v1487_v47 = vmul.f32 1.442695, %v1482_v38  ;;  %v1448_v49 = vmul.f32 -1.0, %v1443_v41  ;;  %v1483_v63 = vmul.f32 -1.0, %v1478_v42 }
 0x2a7   : > { %v1094_v48 = vpop.f32.mrb[8].mxu0  ;;  %2946 = vpow2.f32 %v1417_v23  ;;  %v3428_v3 = vmov 1966171168  }
 0x2a8   : > { %v4070_v19 = vadd.f32 %v1094_v48, %v3979_v37  ;;  %v2723_v46 = vpop.f32.mrb[9].mxu0  ;;  %2948 = vpow2.f32 %v1452_v45  ;;  %v1531_v4 = vunpack.c.l.s4 %v3428_v3  ;;  %v1454_v37 = vmul.f32 1.442695, %v1448_v49 }
 0x2a9   : > { %v1097_v53 = vpop.f32.mrb[10].mxu0  ;;  %2950 = vpow2.f32 %v1487_v47  ;;  %v2933_v0 = vpop.eup %2932  ;;  %v1489_v7 = vmul.f32 1.442695, %v1483_v63 }
 0x2aa   : > { %v2669_v39 = vmul.f32 -1.442695, %v4070_v19  ;;  %v2724_v44 = vpop.f32.mrb[11].mxu0  ;;  %2952 = vpow2.f32 %v1384_v43  ;;  %v2935_v1 = vpop.eup %2934  ;;  %v1117_v2 = vadd.f32 1.0, %v2933_v0  ;;  %v1532_v16 = vunpack.c.0.s8 %v1531_v4 }
 0x2ab   : > { %2954 = vpow2.f32 %v1419_v26  ;;  %v1118_v8 = vadd.f32 1.0, %v2935_v1 }
 0x2ac   : > { %v2937_v5 = vpop.eup %2936  ;;  %2956 = vpow2.f32 %v2669_v39  ;;  %v4080_v27 = vsub.s32 %v1532_v16, %v3959_v31 }
 0x2ad   : > { %v2939_v9 = vpop.eup %2938  ;;  %2958 = vrcp.f32 %v1117_v2  ;;  %v1322_v6 = vmul.f32 %v2937_v5, %v3989_v54 }
 0x2ae   : > { %v2941_v10 = vpop.eup %2940  ;;  %2960 = vrcp.f32 %v1118_v8  ;;  %v1357_v14 = vmul.f32 %v2939_v9, %v3991_v55  ;;  %v1367_v11 = vadd.f32 %v2939_v9, %v2937_v5  ;;  %v1536_v31 = vrot.slane %v1529_v59, %v4080_v27 }
 0x2af   : > { %v2943_v15 = vpop.eup %2942  ;;  %v1392_v20 = vmul.f32 %v2941_v10, %v3993_v56  ;;  %2962 = vpow2.f32 %v1454_v37 }
 0x2b0   : > { %v2945_v17 = vpop.eup %2944  ;;  %v1362_v18 = vadd.f32 %v1357_v14, %v1322_v6  ;;  %v1402_v21 = vadd.f32 %v2941_v10, %v1367_v11  ;;  %v1323_v24 = vmul.f32 %v2943_v15, %v3989_v54  ;;  %2964 = vpow2.f32 %v1489_v7 }
 0x2b1   : > { %v2947_v22 = vpop.eup %2946  ;;  %v1358_v28 = vmul.f32 %v2945_v17, %v3991_v55  ;;  %v1368_v13 = vadd.f32 %v2945_v17, %v2943_v15 }
 0x2b2   : > { %v2949_v29 = vpop.eup %2948  ;;  %v1397_v34 = vadd.f32 %v1392_v20, %v1362_v18  ;;  %v1427_v35 = vmul.f32 %v2947_v22, %v3995_v57  ;;  %v1437_v12 = vadd.f32 %v2947_v22, %v1402_v21 }
 0x2b3   : > { %v2951_v23 = vpop.eup %2950  ;;  %v1363_v43 = vadd.f32 %v1358_v28, %v1323_v24  ;;  %v1462_v47 = vmul.f32 %v2949_v29, %v4001_v61 }
 0x2b4   : > { %v2953_v38 = vpop.eup %2952  ;;  %v1432_v40 = vadd.f32 %v1427_v35, %v1397_v34  ;;  %v1472_v41 = vadd.f32 %v2949_v29, %v1437_v12  ;;  %v1497_v8 = vmul.f32 %v2951_v23, %v4003_v62 }
 0x2b5   : > { %v2955_v42 = vpop.eup %2954  ;;  %v1403_v26 = vadd.f32 %v2953_v38, %v1368_v13  ;;  %v1393_v53 = vmul.f32 %v2953_v38, %v3993_v56 }
 0x2b6   : > { %v2957_v45 = vpop.eup %2956  ;;  %v1507_v48 = vadd.f32 %v2951_v23, %v1472_v41  ;;  %v1467_v39 = vadd.f32 %v1462_v47, %v1432_v40  ;;  %v1428_v9 = vmul.f32 %v2955_v42, %v3995_v57 }
 0x2b7   : > { %v2959_v46 = vpop.eup %2958  ;;  %v1119_v49 = vadd.f32 1.0, %v2957_v45  ;;  %v1398_v2 = vadd.f32 %v1393_v53, %v1363_v43  ;;  %v1438_v37 = vadd.f32 %v2955_v42, %v1403_v26 }
 0x2b8   : > { %v2961_v63 = vpop.eup %2960  ;;  %v1141_v0 = vrot.slane %v2959_v46, %v3962_v32  ;;  %2966 = vrcp.f32 %v1507_v48  ;;  %v1543_v44 = vrot.slane %v2959_v46, %v4080_v27  ;;  %v1502_v14 = vadd.f32 %v1497_v8, %v1467_v39 }
 0x2b9   : > { %v1145_v1 = vrot.slane %v2961_v63, %v3962_v32  ;;  %2968 = vrcp.f32 %v1119_v49  ;;  %v1771_v3 = vcombine.low %v2959_v46, %v2961_v63  ;;  %v2963_v4 = vpop.eup %2962  ;;  %v1433_v15 = vadd.f32 %v1428_v9, %v1398_v2 }
 0x2ba   : > { %v1152_v5 = vmul.f32 %v1141_v0, %v4047_v58  ;;  %v4093_v51 = vcombine.low %v1536_v31, %v1543_v44  ;;  %v2965_v52 = vpop.eup %2964  ;;  %v1463_v16 = vmul.f32 %v2963_v4, %v4001_v61  ;;  %v1473_v20 = vadd.f32 %v2963_v4, %v1438_v37 }
 0x2bb   : > { %v1153_v59 = vmul.f32 %v1145_v1, %v4050_v60  ;;  %v1498_v29 = vmul.f32 %v2965_v52, %v4003_v62  ;;  %v4134_v40 = vrot.slane %v1771_v3, %v4080_v27 }
 0x2bc   : > { %v1159_v6 = vsub.f32 %v1152_v5, %v3989_v54  ;;  %v1171_v7 = vsub.f32 %v1152_v5, %v3991_v55  ;;  %v1198_v10 = vsub.f32 %v1152_v5, %v3993_v56  ;;  %v1225_v60 = vsub.f32 %v1152_v5, %v3995_v57 }
 0x2bd   : > { %v1160_v11 = vsub.f32 %v1153_v59, %v3989_v54  ;;  %v1172_v58 = vsub.f32 %v1153_v59, %v3991_v55  ;;  %v1252_v22 = vsub.f32 %v1152_v5, %v4001_v61  ;;  %v1199_v30 = vsub.f32 %v1153_v59, %v3993_v56 }
 0x2be   : > { %v4103_v17 = vmul.f32 %v1159_v6, %v1159_v6  ;;  %v4105_v18 = vmul.f32 %v1171_v7, %v1171_v7  ;;  %v4123_v35 = vmul.f32 %v1198_v10, %v1198_v10  ;;  %v1226_v12 = vsub.f32 %v1153_v59, %v3995_v57 }
 0x2bf   : > { %v4114_v24 = vmul.f32 %v1160_v11, %v1160_v11  ;;  %v4116_v28 = vmul.f32 %v1172_v58, %v1172_v58  ;;  %v1279_v13 = vsub.f32 %v1152_v5, %v4003_v62  ;;  %v1253_v38 = vsub.f32 %v1153_v59, %v4001_v61 }
 0x2c0   : > { %v4121_v34 = vmin.f32 %v4103_v17, %v4105_v18  ;;  %v4140_v43 = vmul.f32 %v1225_v60, %v1225_v60  ;;  %v4142_v45 = vmul.f32 %v1199_v30, %v1199_v30  ;;  %v1508_v47 = vadd.f32 %v2965_v52, %v1473_v20 }
 0x2c1   : > { %v4130_v23 = vmin.f32 %v4114_v24, %v4116_v28  ;;  %v4147_v26 = vmul.f32 %v1252_v22, %v1252_v22  ;;  %v1280_v46 = vsub.f32 %v1153_v59, %v4003_v62  ;;  %v1468_v53 = vadd.f32 %v1463_v16, %v1433_v15 }
 0x2c2   : > { %v2967_v41 = vpop.eup %2966  ;;  %v4138_v42 = vmin.f32 %v4121_v34, %v4123_v35  ;;  %v4158_v0 = vmul.f32 %v1226_v12, %v1226_v12  ;;  %v4162_v44 = vmul.f32 %v1279_v13, %v1279_v13  ;;  %v4164_v1 = vmul.f32 %v1253_v38, %v1253_v38 }
 0x2c3   : > { %v4145_v48 = vpop.eup %2968  ;;  %v1517_v49 = vmul.f32 %v2967_v41, %v1502_v14  ;;  %v4156_v63 = vmin.f32 %v4130_v23, %v4142_v45  ;;  %vm1181_vm8 = vcmp.lt.f32.partialorder %v4105_v18, %v4103_v17  ;;  %2970 = vrcp.f32 %v1508_v47 }
 0x2c4   : > { %v4152_v31 = vmin.f32 %v4138_v42, %v4140_v43  ;;  %v1149_v39 = vrot.slane %v4145_v48, %v3962_v32  ;;  %v1503_v5 = vadd.f32 %v1498_v29, %v1468_v53  ;;  %v4187_v8 = vsel %vm1181_vm8, 1, %v3415_v50 }
 0x2c5   : > { %v1580_v2 = vmul.f32 %v3968_v25, %v1517_v49  ;;  %1558 = vst [vmem:[%s4169_s28] sm:$0xff] %v1517_v49  ;;  %v4180_v32 = vmin.f32 %v4156_v63, %v4158_v0  ;;  %v4183_v25 = vmul.f32 %v1280_v46, %v1280_v46  ;;  %v1551_v37 = vrot.slane %v4093_v51, %v4080_v27 }
 0x2c6   : > { %v4176_v3 = vmin.f32 %v4152_v31, %v4147_v26  ;;  %v1154_v4 = vmul.f32 %v1149_v39, %v4070_v19  ;;  %v1785_v9 = vrot.slane %v4145_v48, %v4080_v27  ;;  %vm1208_vm0 = vcmp.lt.f32.partialorder %v4123_v35, %v4121_v34 }
 0x2c7   : > { %1586 = vrot.lane.b32.xlu1 %v1580_v2, %s3429_s23  ;;  %v4195_v19 = vmin.f32 %v4180_v32, %v4164_v1  ;;  %1557 = vst.msk [vmem:[%s4206_s22] sm:$0x7] %vm4109_vm9, %v1551_v37  ;;  %vm1235_vm5 = vcmp.lt.f32.partialorder %v4140_v43, %v4138_v42  ;;  %vm1262_vm7 = vcmp.lt.f32.partialorder %v4147_v26, %v4152_v31 }
 0x2c8   : > { %v1299_v52 = vmin.f32 %v4176_v3, %v4162_v44  ;;  %v1161_v59 = vsub.f32 %v1154_v4, %v3989_v54  ;;  %v1173_v6 = vsub.f32 %v1154_v4, %v3991_v55  ;;  %v1200_v7 = vsub.f32 %v1154_v4, %v3993_v56 }
 0x2c9   : > { %v1227_v10 = vsub.f32 %v1154_v4, %v3995_v57  ;;  %v1254_v51 = vsub.f32 %v1154_v4, %v4001_v61  ;;  %v1300_v60 = vmin.f32 %v4195_v19, %v4183_v25  ;;  %v1281_v22 = vsub.f32 %v1154_v4, %v4003_v62 }
 0x2ca   : > { %v1304_v14 = vsub.f32 %v4103_v17, %v1299_v52  ;;  %v1339_v11 = vsub.f32 %v4105_v18, %v1299_v52  ;;  %v1374_v58 = vsub.f32 %v4123_v35, %v1299_v52  ;;  %v1409_v15 = vsub.f32 %v4140_v43, %v1299_v52 }
 0x2cb   : > { %v1444_v16 = vsub.f32 %v4147_v26, %v1299_v52  ;;  %v4218_v20 = vmul.f32 %v1161_v59, %v1161_v59  ;;  %v1305_v18 = vsub.f32 %v4114_v24, %v1300_v60  ;;  %v1340_v38 = vsub.f32 %v4116_v28, %v1300_v60 }
 0x2cc   : > { %v1309_v29 = vmul.f32 -1.0, %v1304_v14  ;;  %v1344_v30 = vmul.f32 -1.0, %v1339_v11  ;;  %v1379_v12 = vmul.f32 -1.0, %v1374_v58  ;;  %v1414_v13 = vmul.f32 -1.0, %v1409_v15 }
 0x2cd   : > { %v1449_v17 = vmul.f32 -1.0, %v1444_v16  ;;  %v1375_v41 = vsub.f32 %v4142_v45, %v1300_v60  ;;  %v4226_v53 = vmul.f32 %v1173_v6, %v1173_v6  ;;  %v1479_v2 = vsub.f32 %v4162_v44, %v1299_v52  ;;  %v2971_v59 = vpop.eup %2970 }
 0x2ce   : > { %v1316_v47 = vmul.f32 1.442695, %v1309_v29  ;;  %v1351_v46 = vmul.f32 1.442695, %v1344_v30  ;;  %v1386_v49 = vmul.f32 1.442695, %v1379_v12  ;;  %v4233_v58 = vmul.f32 %v1200_v7, %v1200_v7 }
 0x2cf   : > { %v1421_v39 = vmul.f32 1.442695, %v1414_v13  ;;  %v1310_v4 = vmul.f32 -1.0, %v1305_v18  ;;  %v1345_v37 = vmul.f32 -1.0, %v1340_v38  ;;  %v1380_v14 = vmul.f32 -1.0, %v1375_v41 }
 0x2d0   : > { %2972 = vpow2.f32 %v1316_v47  ;;  %v4231_v11 = vmin.f32 %v4218_v20, %v4226_v53  ;;  %v1456_v6 = vmul.f32 1.442695, %v1449_v17  ;;  %v4241_v29 = vmul.f32 %v1227_v10, %v1227_v10 }
 0x2d1   : > { %2974 = vpow2.f32 %v1351_v46  ;;  %v1318_v15 = vmul.f32 1.442695, %v1310_v4  ;;  %v1353_v16 = vmul.f32 1.442695, %v1345_v37  ;;  %v4243_v30 = vmul.f32 %v1254_v51, %v1254_v51 }
 0x2d2   : > { %2976 = vpow2.f32 %v1386_v49  ;;  %v4239_v52 = vmin.f32 %v4231_v11, %v4233_v58  ;;  %v4245_v12 = vmul.f32 %v1281_v22, %v1281_v22  ;;  %v1518_v7 = vmul.f32 %v2971_v59, %v1503_v5 }
 0x2d3   : > { %v1388_v13 = vmul.f32 1.442695, %v1380_v14  ;;  %v1410_v18 = vsub.f32 %v4158_v0, %v1300_v60  ;;  %2978 = vpow2.f32 %v1318_v15  ;;  %v1445_v38 = vsub.f32 %v4164_v1, %v1300_v60 }
 0x2d4   : > { %v4250_v17 = vmin.f32 %v4239_v52, %v4241_v29  ;;  %v1480_v41 = vsub.f32 %v4183_v25, %v1300_v60  ;;  %2980 = vpow2.f32 %v1353_v16  ;;  %v1581_v10 = vmul.f32 %v3965_v36, %v1518_v7  ;;  %1559 = vst [vmem:[%s4169_s28 + $0x8] sm:$0xff] %v1518_v7 }
 0x2d5   : > { %v1415_v51 = vmul.f32 -1.0, %v1410_v18  ;;  %v1484_v22 = vmul.f32 -1.0, %v1479_v2  ;;  %2982 = vpow2.f32 %v1421_v39  ;;  %v1450_v47 = vmul.f32 -1.0, %v1445_v38 }
 0x2d6   : > { %v4258_v5 = vmin.f32 %v4250_v17, %v4243_v30  ;;  %v1485_v46 = vmul.f32 -1.0, %v1480_v41  ;;  %1588 = vrot.lane.b32.xlu0 %v1581_v10, %s3429_s23  ;;  %2984 = vpow2.f32 %v1388_v13  ;;  %v1213_v36 = vsel %vm1208_vm0, 2, %v4187_v8 }
 0x2d7   : > { %v1423_v49 = vmul.f32 1.442695, %v1415_v51  ;;  %v1491_v4 = vmul.f32 1.442695, %v1484_v22  ;;  %2986 = vpow2.f32 %v1456_v6  ;;  %v1458_v39 = vmul.f32 1.442695, %v1450_v47 }
 0x2d8   : > { %v1301_v60 = vmin.f32 %v4258_v5, %v4245_v12  ;;  %v1493_v2 = vmul.f32 1.442695, %v1485_v46  ;;  %v4273_v37 = vcombine.low %v4134_v40, %v1785_v9  ;;  %vm1183_vm15 = vcmp.lt.f32.partialorder %v4226_v53, %v4218_v20 }
 0x2d9   : > { %2988 = vpow2.f32 %v1423_v49  ;;  %v1240_v40 = vsel %vm1235_vm5, 3, %v1213_v36  ;;  %vm1289_vm11 = vcmp.lt.f32.partialorder %v4162_v44, %v4176_v3  ;;  %vm1210_vm8 = vcmp.lt.f32.partialorder %v4233_v58, %v4231_v11 }
 0x2da   : > { %v2973_v34 = vpop.eup %2972  ;;  %v1306_v35 = vsub.f32 %v4218_v20, %v1301_v60  ;;  %v1341_v8 = vsub.f32 %v4226_v53, %v1301_v60  ;;  %v1376_v59 = vsub.f32 %v4233_v58, %v1301_v60  ;;  %2990 = vpow2.f32 %v1458_v39  ;;  %v4316_v53 = vld [vmem:[#allocation3] sm:$0xff] }
 0x2db   : > { %v2975_v14 = vpop.eup %2974  ;;  %v1324_v6 = vmul.f32 %v2973_v34, %v3989_v54  ;;  %2992 = vpow2.f32 %v1491_v4  ;;  %v1411_v48 = vsub.f32 %v4241_v29, %v1301_v60  ;;  %v1446_v41 = vsub.f32 %v4243_v30, %v1301_v60 }
 0x2dc   : > { %v2977_v9 = vpop.eup %2976  ;;  %v1311_v15 = vmul.f32 -1.0, %v1306_v35  ;;  %v1346_v16 = vmul.f32 -1.0, %v1341_v8  ;;  %v1381_v7 = vmul.f32 -1.0, %v1376_v59  ;;  %v1359_v13 = vmul.f32 %v2975_v14, %v3991_v55 }
 0x2dd   : > { %v1369_v18 = vadd.f32 %v2975_v14, %v2973_v34  ;;  %2994 = vpow2.f32 %v1493_v2  ;;  %v1416_v38 = vmul.f32 -1.0, %v1411_v48  ;;  %v2979_v10 = vpop.eup %2978  ;;  %v1267_v43 = vsel %vm1262_vm7, 4, %v1240_v40 }
 0x2de   : > { %v1320_v51 = vmul.f32 1.442695, %v1311_v15  ;;  %v1355_v22 = vmul.f32 1.442695, %v1346_v16  ;;  %v2981_v47 = vpop.eup %2980  ;;  %v1325_v46 = vmul.f32 %v2979_v10, %v3989_v54  ;;  %v1390_v42 = vmul.f32 1.442695, %v1381_v7 }
 0x2df   : > { %v1404_v49 = vadd.f32 %v2977_v9, %v1369_v18  ;;  %v2983_v4 = vpop.eup %2982  ;;  %v1360_v36 = vmul.f32 %v2981_v47, %v3991_v55  ;;  %v1364_v39 = vadd.f32 %v1359_v13, %v1324_v6  ;;  %v1370_v2 = vadd.f32 %v2981_v47, %v2979_v10 }
 0x2e0   : > { %2996 = vpow2.f32 %v1320_v51  ;;  %v2985_v34 = vpop.eup %2984  ;;  %v1425_v8 = vmul.f32 1.442695, %v1416_v38  ;;  %v1451_v59 = vmul.f32 -1.0, %v1446_v41  ;;  %v1394_v15 = vmul.f32 %v2977_v9, %v3993_v56 }
 0x2e1   : > { %2998 = vpow2.f32 %v1355_v22  ;;  %v1439_v35 = vadd.f32 %v2983_v4, %v1404_v49  ;;  %v2987_v14 = vpop.eup %2986  ;;  %v1365_v48 = vadd.f32 %v1360_v36, %v1325_v46  ;;  %v1405_v16 = vadd.f32 %v2985_v34, %v1370_v2 }
 0x2e2   : > { %3000 = vpow2.f32 %v1390_v42  ;;  %v1460_v40 = vmul.f32 1.442695, %v1451_v59  ;;  %v1481_v6 = vsub.f32 %v4245_v12, %v1301_v60  ;;  %v1395_v13 = vmul.f32 %v2985_v34, %v3993_v56 }
 0x2e3   : > { %v2989_v26 = vpop.eup %2988  ;;  %v1474_v31 = vadd.f32 %v2987_v14, %v1439_v35  ;;  %v1399_v18 = vadd.f32 %v1394_v15, %v1364_v39  ;;  %3002 = vpow2.f32 %v1425_v8  ;;  %v4297_v9 = vsel %vm1289_vm11, 5, %v1267_v43 }
 0x2e4   : > { %v2991_v7 = vpop.eup %2990  ;;  %v1440_v38 = vadd.f32 %v2989_v26, %v1405_v16  ;;  %v1486_v10 = vmul.f32 -1.0, %v1481_v6  ;;  %v1400_v51 = vadd.f32 %v1395_v13, %v1365_v48  ;;  %v1429_v44 = vmul.f32 %v2983_v4, %v3995_v57  ;;  %1563 = vst.msk [vmem:[%s4055_s24 + $0x10] sm:$0xff] %vm704_vm6, %v4297_v9 }
 0x2e5   : > { %v2993_v41 = vpop.eup %2992  ;;  %3004 = vpow2.f32 %v1460_v40  ;;  %v1430_v46 = vmul.f32 %v2989_v26, %v3995_v57  ;;  %v1188_v43 = vsel %vm1183_vm15, 1, %v3415_v50  ;;  %vm1237_vm0 = vcmp.lt.f32.partialorder %v4241_v29, %v4239_v52 }
 0x2e6   : > { %v1475_v3 = vadd.f32 %v2991_v7, %v1440_v38  ;;  %v1509_v22 = vadd.f32 %v2993_v41, %v1474_v31  ;;  %v1495_v60 = vmul.f32 1.442695, %v1486_v10  ;;  %v1434_v49 = vadd.f32 %v1429_v44, %v1399_v18 }
 0x2e7   : > { %v2995_v47 = vpop.eup %2994  ;;  %vm1264_vm5 = vcmp.lt.f32.partialorder %v4243_v30, %v4250_v17  ;;  %v1435_v36 = vadd.f32 %v1430_v46, %v1400_v51  ;;  %v1464_v39 = vmul.f32 %v2987_v14, %v4001_v61  ;;  %vm1524_vm7 = vcmask 703488  }
 0x2e8   : > { %v1510_v42 = vadd.f32 %v2995_v47, %v1475_v3  ;;  %3006 = vrcp.f32 %v1509_v22  ;;  %1525 = vst.msk [vmem:[#allocation3 + $0x10] sm:$0xff] %vm1524_vm7, %v4316_v53  ;;  %v1215_v11 = vsel %vm1210_vm8, 2, %v1188_v43  ;;  %vm1291_vm15 = vcmp.lt.f32.partialorder %v4245_v12, %v4258_v5 }
 0x2e9   : > { %v1242_v35 = vsel %vm1237_vm0, 3, %v1215_v11  ;;  %vm1182_vm11 = vcmp.lt.f32.partialorder %v4116_v28, %v4114_v24  ;;  %vm1209_vm8 = vcmp.lt.f32.partialorder %v4142_v45, %v4130_v23  ;;  %vm1236_vm7 = vcmp.lt.f32.partialorder %v4158_v0, %v4156_v63 }
 0x2ea   : > { %v2997_v4 = vpop.eup %2996  ;;  %3008 = vrcp.f32 %v1510_v42  ;;  %v1269_v8 = vsel %vm1264_vm5, 4, %v1242_v35  ;;  %v1187_v59 = vsel %vm1182_vm11, 1, %v3415_v50  ;;  %v1469_v52 = vadd.f32 %v1464_v39, %v1434_v49 }
 0x2eb   : > { %v2999_v2 = vpop.eup %2998  ;;  %v1326_v20 = vmul.f32 %v2997_v4, %v3989_v54  ;;  %3010 = vpow2.f32 %v1495_v60  ;;  %v4336_v12 = vsel %vm1291_vm15, 5, %v1269_v8  ;;  %v1214_v28 = vsel %vm1209_vm8, 2, %v1187_v59  ;;  %v2117_v8 = vld [vmem:[#allocation16] sm:$0x7] }
 0x2ec   : > { %v1361_v58 = vmul.f32 %v2999_v2, %v3991_v55  ;;  %v1371_v34 = vadd.f32 %v2999_v2, %v2997_v4  ;;  %v3001_v54 = vpop.eup %3000  ;;  %v1465_v55 = vmul.f32 %v2991_v7, %v4001_v61  ;;  %vm1263_vm0 = vcmp.lt.f32.partialorder %v4164_v1, %v4180_v32  ;;  %v1833_v1 = vpop.permute.xlu0 %1832 }
 0x2ed   : > { %v3003_v24 = vpop.eup %3002  ;;  %vm1290_vm5 = vcmp.lt.f32.partialorder %v4183_v25, %v4195_v19  ;;  %v1499_v23 = vmul.f32 %v2993_v41, %v4003_v62  ;;  %v1241_v30 = vsel %vm1236_vm7, 3, %v1214_v28  ;;  %v1500_v5 = vmul.f32 %v2995_v47, %v4003_v62  ;;  %v1835_v19 = vpop.permute.xlu1 %1834 }
 0x2ee   : > { %v1406_v29 = vadd.f32 %v3001_v54, %v1371_v34  ;;  %v1470_v50 = vadd.f32 %v1465_v55, %v1435_v36  ;;  %v1366_v0 = vadd.f32 %v1361_v58, %v1326_v20  ;;  %v1268_v17 = vsel %vm1263_vm0, 4, %v1241_v30 }
 0x2ef   : > { %v3005_v63 = vpop.eup %3004  ;;  %v1504_v14 = vadd.f32 %v1499_v23, %v1469_v52  ;;  %v4344_v15 = vsel %vm1290_vm5, 5, %v1268_v17  ;;  %v1396_v32 = vmul.f32 %v3001_v54, %v3993_v56  ;;  %v1838_v56 = vsel %vm704_vm6, %v1833_v1, %v1835_v19 }
 0x2f0   : > { %v1441_v45 = vadd.f32 %v3003_v24, %v1406_v29  ;;  %v1505_v26 = vadd.f32 %v1500_v5, %v1470_v50  ;;  %v1431_v41 = vmul.f32 %v3003_v24, %v3995_v57  ;;  %v1466_v44 = vmul.f32 %v3005_v63, %v4001_v61 }
 0x2f1   : > { %v1401_v6 = vadd.f32 %v1396_v32, %v1366_v0  ;;  %vm1598_vm15 = vcmask 1047704   ;;  %vm1592_vm11 = vcmask 154624   ;;  %vm1601_vm8 = vcmask 416768  }
 0x2f2   : > { %v1476_v48 = vadd.f32 %v3005_v63, %v1441_v45  ;;  %v3007_v16 = vpop.eup %3006  ;;  %vm1855_vm7 = vcmask 941056   ;;  %v1793_v45 = vrot.slane %v4273_v37, %v4080_v27  ;;  %vm4841_vm0 = vcmask 1031168  }
 0x2f3   : > { %v4347_v31 = vmul.f32 %v3007_v16, %v1504_v14  ;;  %v1436_v10 = vadd.f32 %v1431_v41, %v1401_v6  ;;  %vm4842_vm5 = vcmask 1039360  }
 0x2f4   : > { %v3009_v25 = vpop.eup %3008 }
 0x2f5   : > { %v3011_v40 = vpop.eup %3010  ;;  %v4349_v7 = vmul.f32 %v3009_v25, %v1505_v26  ;;  %1560 = vst.msk [vmem:[%s4169_s28 + $0x10] sm:$0xff] %vm704_vm6, %v4347_v31  ;;  %v1843_v13 = vmul.f32 %v1833_v1, %v4347_v31  ;;  %v1582_v18 = vmul.f32 %v3975_v33, %v4347_v31  ;;  %v1471_v3 = vadd.f32 %v1466_v44, %v1436_v10  ;;  %v1837_v33 = vpop.permute.xlu0 %1836 }
 0x2f6   : > { %v1511_v38 = vadd.f32 %v3011_v40, %v1476_v48  ;;  %v1501_v22 = vmul.f32 %v3011_v40, %v4003_v62  ;;  %v1839_v46 = vsel %vm704_vm6, %v1835_v19, %v1837_v33 }
 0x2f7   : > { %1849 = vrot.lane.b32.xlu0 %v1843_v13, %s3430_s27  ;;  %1590 = vrot.lane.b32.xlu1 %v1582_v18, %s3429_s23  ;;  %v1844_v51 = vmul.f32 %v1838_v56, %v4349_v7  ;;  %s4832_s23 = smov 108  }
 0x2f8   : > { %3012 = vrcp.f32 %v1511_v38  ;;  %v1506_v47 = vadd.f32 %v1501_v22, %v1471_v3 }
 0x2fb   : > { %1851 = vrot.lane.b32.xlu1 %v1844_v51, %s3430_s27 }
 0x302   : > { %v3013_v60 = vpop.eup %3012 }
 0x303   : > { %v4364_v57 = vmul.f32 %v3013_v60, %v1506_v47 }
 0x305   : > { %v1845_v49 = vmul.f32 %v1839_v46, %v4364_v57 }
 0x307   : > { %1853 = vrot.lane.b32.xlu0 %v1845_v49, %s3430_s27  ;;  %s4833_s27 = smov 90  }
 0x339   : > { %v1587_v42 = vpop.permute.xlu1 %1586 }
 0x33a   : > { %1599 = vst.msk [vmem:[#allocation3] sm:$0xff] %vm1598_vm15, %v1587_v42 }
 0x341   : > { %v4368_v43 = vld [vmem:[#allocation3] sm:$0xff] }
 0x342   : > { %1635 = vrot.lane.b32.xlu0 %v4368_v43, %s3407_s20  ;;  %1615 = vrot.lane.b32.xlu1 %v4368_v43, %s3408_s25 }
 0x346   : > { %1675 = vrot.lane.b32.xlu0 %v4368_v43, %s3410_s21  ;;  %1655 = vrot.lane.b32.xlu1 %v4368_v43, %s3409_s10 }
 0x348   : > { %v1589_v61 = vpop.permute.xlu0 %1588 }
 0x349   : > { %v4379_v62 = vsel %vm1592_vm11, %v1587_v42, %v1589_v61 }
 0x34a   : > { %1715 = vrot.lane.b32.xlu0 %v4368_v43, %s4831_s12  ;;  %1695 = vrot.lane.b32.xlu1 %v4368_v43, %s4832_s23 }
 0x34e   : > { %1755 = vrot.lane.b32.xlu0 %v4368_v43, %s4833_s27  ;;  %1735 = vrot.lane.b32.xlu1 %v4368_v43, %s4834_s3 }
 0x352   : > { %1637 = vrot.lane.b32.xlu0 %v4379_v62, %s3407_s20  ;;  %1617 = vrot.lane.b32.xlu1 %v4379_v62, %s3408_s25 }
 0x356   : > { %1657 = vrot.lane.b32.xlu0 %v4379_v62, %s3409_s10  ;;  %1757 = vrot.lane.b32.xlu1 %v4379_v62, %s4833_s27 }
 0x35a   : > { %1677 = vrot.lane.b32.xlu0 %v4379_v62, %s3410_s21 }
 0x35e   : > { %1697 = vrot.lane.b32.xlu0 %v4379_v62, %s4832_s23 }
 0x362   : > { %1717 = vrot.lane.b32.xlu0 %v4379_v62, %s4831_s12 }
 0x366   : > { %1737 = vrot.lane.b32.xlu0 %v4379_v62, %s4834_s3 }
 0x369   : > { %v1591_v4 = vpop.permute.xlu1 %1590  ;;  %v1850_v39 = vpop.permute.xlu0 %1849 }
 0x36a   : > { %v1594_v36 = vsel %vm1592_vm11, %v1589_v61, %v1591_v4  ;;  %vm4844_vm11 = vcmask 736256  }
 0x36b   : > { %1602 = vst.msk [vmem:[#allocation3 + $0x10] sm:$0xff] %vm1601_vm8, %v1594_v36 }
 0x36d   : > { %v1852_v2 = vpop.permute.xlu1 %1851 }
 0x36e   : > { %v1856_v20 = vsel %vm1855_vm7, %v1850_v39, %v1852_v2 }
 0x36f   : > { %1861 = vst.msk [vmem:[#allocation3] sm:$0xff] %vm1598_vm15, %v1856_v20  ;;  %vm4843_vm15 = vcmask 900096  }
 0x372   : > { %v1605_v11 = vld [vmem:[#allocation3 + $0x10] sm:$0xff] }
 0x373   : > { %1608 = vst.msk [vmem:[#allocation4 + $0x10] sm:$0xff] %vm704_vm6, %v1605_v11  ;;  %1639 = vrot.lane.b32.xlu1 %v1605_v11, %s3407_s20  ;;  %1619 = vrot.lane.b32.xlu0 %v1605_v11, %s3408_s25  ;;  %s4835_s20 = smov 30   ;;  %s4836_s25 = smov 14  }
 0x376   : > { %v2006_v35 = vld [vmem:[#allocation3] sm:$0xff] }
 0x377   : > { %1659 = vrot.lane.b32.xlu1 %v1605_v11, %s3409_s10  ;;  %1759 = vrot.lane.b32.xlu0 %v1605_v11, %s4833_s27  ;;  %s4837_s10 = smov 13  }
 0x379   : > { %v1854_v58 = vpop.permute.xlu0 %1853 }
 0x37a   : > { %v1857_v34 = vsel %vm1855_vm7, %v1852_v2, %v1854_v58  ;;  %1863 = vst.msk [vmem:[#allocation3 + $0x10] sm:$0xff] %vm1601_vm8, %v1854_v58  ;;  %vm4845_vm8 = vcmask 891904   ;;  %vm4846_vm7 = vcmask 883712  }
 0x37b   : > { %1679 = vrot.lane.b32.xlu1 %v1605_v11, %s3410_s21  ;;  %2012 = vrot.lane.b32.xlu0 %v2006_v35, %s3423_s26  ;;  %s4838_s21 = smov 12  }
 0x37f   : > { %1699 = vrot.lane.b32.xlu1 %v1605_v11, %s4832_s23  ;;  %1872 = vrot.lane.b32.xlu0 %v1857_v34, %s3416_s2  ;;  %s2365_s23 = sshll.u32 %s4206_s22, 4  ;;  %s4570_s23 = int_to_ptr.vmem [resolvable:$true] %s2365_s23 }
 0x381   : > { %v1888_v54 = vld [vmem:[#allocation3 + $0x10] sm:$0xff] }
 0x383   : > { %1719 = vrot.lane.b32.xlu1 %v1605_v11, %s4831_s12  ;;  %1894 = vrot.lane.b32.xlu0 %v1857_v34, %s3417_s1  ;;  %s4797_s12 = smov 96  }
 0x387   : > { %1739 = vrot.lane.b32.xlu1 %v1605_v11, %s4834_s3  ;;  %1896 = vrot.lane.b32.xlu0 %v1888_v54, %s3417_s1  ;;  %s4839_s3 = smov 124  }
 0x38b   : > { %1870 = vrot.lane.b32.xlu1 %v2006_v35, %s3416_s2  ;;  %1914 = vrot.lane.b32.xlu0 %v1857_v34, %s4835_s20 }
 0x38f   : > { %1892 = vrot.lane.b32.xlu1 %v2006_v35, %s3417_s1  ;;  %1934 = vrot.lane.b32.xlu0 %v1857_v34, %s4836_s25  ;;  %s4840_s1 = smov 122  }
 0x393   : > { %1912 = vrot.lane.b32.xlu1 %v2006_v35, %s4835_s20  ;;  %1936 = vrot.lane.b32.xlu0 %v1888_v54, %s4836_s25 }
 0x397   : > { %1932 = vrot.lane.b32.xlu1 %v2006_v35, %s4836_s25  ;;  %1954 = vrot.lane.b32.xlu0 %v1857_v34, %s4837_s10  ;;  %s2745_s25 = smul.u32 96, %s3517_s19 }
 0x39b   : > { %1952 = vrot.lane.b32.xlu1 %v2006_v35, %s4837_s10  ;;  %1974 = vrot.lane.b32.xlu0 %v1857_v34, %s4838_s21 }
 0x39f   : > { %1972 = vrot.lane.b32.xlu1 %v2006_v35, %s4838_s21  ;;  %1976 = vrot.lane.b32.xlu0 %v1888_v54, %s4838_s21 }
 0x3a3   : > { %1992 = vrot.lane.b32.xlu1 %v2006_v35, %s4839_s3  ;;  %1996 = vrot.lane.b32.xlu0 %v1888_v54, %s4839_s3 }
 0x3a7   : > { %2032 = vrot.lane.b32.xlu1 %v2006_v35, %s4840_s1  ;;  %2016 = vrot.lane.b32.xlu0 %v1888_v54, %s3423_s26 }
 0x3ab   : > { %1874 = vrot.lane.b32.xlu1 %v1888_v54, %s3416_s2  ;;  %2034 = vrot.lane.b32.xlu0 %v1857_v34, %s4840_s1 }
 0x3af   : > { %1916 = vrot.lane.b32.xlu1 %v1888_v54, %s4835_s20  ;;  %2120 = vperm.xlu0 %2903, %v2117_v8   ;;  %s2323_s20 = sand.u32 1, %s3517_s19  }
 0x3b3   : > { %1956 = vrot.lane.b32.xlu1 %v1888_v54, %s4837_s10  ;;  %1807 = vrot.lane.b32.xlu0 %v4349_v7, %s4797_s12 }
 0x3b4   : > { %v1636_v59 = vpop.permute.xlu0 %1635  ;;  %v1616_v55 = vpop.permute.xlu1 %1615 }
 0x3b7   : > { %1994 = vrot.lane.b32.xlu1 %v1857_v34, %s4839_s3  ;;  %1820 = vrot.lane.b32.xlu0 %v4297_v9, %s4797_s12 }
 0x3b8   : > { %v1676_v52 = vpop.permute.xlu0 %1675  ;;  %v1656_v29 = vpop.permute.xlu1 %1655 }
 0x3bb   : > { %2014 = vrot.lane.b32.xlu1 %v1857_v34, %s3423_s26  ;;  %s4859_s26 = smul.u32 24, %s3749_s11 }
 0x3bc   : > { %v1716_v24 = vpop.permute.xlu0 %1715  ;;  %v1696_v28 = vpop.permute.xlu1 %1695 }
 0x3bd   : > { %s4565_s2 = scalar_lea.vmem [#allocation18], %s4859_s26  ;;  %s4579_s26 = scalar_lea.sflag [#allocation20], %s2323_s20 }
 0x3bf   : > { %2036 = vrot.lane.b32.xlu1 %v1888_v54, %s4840_s1  ;;  %s4577_s1 = scalar_lea.hbm %s4758_s8, %s2745_s25 }
 0x3c0   : > { %v1756_v50 = vpop.permute.xlu0 %1755  ;;  %v1736_v23 = vpop.permute.xlu1 %1735 }
 0x3c3   : > { %1794 = vrot.lane.b32.xlu1 %v1793_v45, %s4797_s12 }
 0x3c4   : > { %v1638_v30 = vpop.permute.xlu0 %1637  ;;  %v1618_v63 = vpop.permute.xlu1 %1617 }
 0x3c5   : > { %v1641_v0 = vsel %vm4841_vm0, %v1636_v59, %v1638_v30  ;;  %v1621_v9 = vsel %vm4842_vm5, %v1616_v55, %v1618_v63  ;;  %vm4847_vm0 = vcmask 752640   ;;  %vm4848_vm5 = vcmask 744448  }
 0x3c6   : > { %v2092_v18 = vpack.c.bf16 %v1621_v9, %v4368_v43 }
 0x3c7   : > { %1805 = vrot.lane.b32.xlu1 %v4347_v31, %s4797_s12 }
 0x3c8   : > { %v1658_v17 = vpop.permute.xlu0 %1657  ;;  %v1758_v5 = vpop.permute.xlu1 %1757 }
 0x3c9   : > { %v1661_v14 = vsel %vm4843_vm15, %v1656_v29, %v1658_v17  ;;  %v4458_v48 = vsel %vm4844_vm11, %v1756_v50, %v1758_v5  ;;  %vm4849_vm15 = vcmask 1039360   ;;  %vm4850_vm11 = vcmask 1031168   ;;  %v4501_v29 = vld [vmem:[#allocation15] sm:$0x3] }
 0x3ca   : > { %v2097_v44 = vpack.c.bf16 %v1661_v14, %v1641_v0  ;;  %v2112_v35 = vpack.c.bf16 %v4458_v48, %v4458_v48 }
 0x3cb   : > { %1809 = vrot.lane.b32.xlu1 %v4364_v57, %s4797_s12  ;;  %s3218_s12 = scalar_lea.vmem %s4570_s23, 96 }
 0x3cc   : > { %v1678_v27 = vpop.permute.xlu0 %1677  ;;  %p3219_p3 = scmp.ne.s32.totalorder %s4570_s23, %s3218_s12 }
 0x3cd   : > { %v1681_v37 = vsel %vm4845_vm8, %v1676_v52, %v1678_v27  ;;  %vm4851_vm8 = vcmask 736256  }
 0x3ce   : > { %p3220_p11 = pnand %p3219_p3, %p4860_p10 }
 0x3d0   : > { %v1698_v16 = vpop.permute.xlu0 %1697  ;;  %p3221_p8 = pneg %p3220_p11 }
 0x3d1   : > { %v1701_v1 = vsel %vm4846_vm7, %v1696_v28, %v1698_v16  ;;  %vm4852_vm7 = vcmask 900096  }
 0x3d2   : > { %v2102_v49 = vpack.c.bf16 %v1701_v1, %v1681_v37 }
 0x3d4   : > { %v1718_v32 = vpop.permute.xlu0 %1717 }
 0x3d5   : > { %v1721_v25 = vsel %vm4847_vm0, %v1716_v24, %v1718_v32  ;;  %vm4853_vm0 = vcmask 891904  }
 0x3d8   : > { %v1738_v19 = vpop.permute.xlu0 %1737 }
 0x3d9   : > { %v1741_v26 = vsel %vm4848_vm5, %v1736_v23, %v1738_v19  ;;  %vm4854_vm5 = vcmask 883712  }
 0x3da   : > { %v2107_v20 = vpack.c.bf16 %v1741_v26, %v1721_v25 }
 0x3e5   : > { %v1620_v31 = vpop.permute.xlu0 %1619  ;;  %v1640_v40 = vpop.permute.xlu1 %1639 }
 0x3e6   : > { %v1622_v6 = vsel %vm4849_vm15, %v1618_v63, %v1620_v31  ;;  %1628 = vst.msk [vmem:[#allocation4 + $0x38] sm:$0xff] %vm704_vm6, %v1620_v31  ;;  %v1642_v7 = vsel %vm4850_vm11, %v1638_v30, %v1640_v40  ;;  %1648 = vst.msk [vmem:[#allocation4 + $0x60] sm:$0xff] %vm704_vm6, %v1640_v40  ;;  %vm4855_vm15 = vcmask 752640   ;;  %vm1884_vm11 = vcmask 523264  }
 0x3e7   : > { %v2093_v13 = vpack.c.bf16 %v1622_v6, %v4379_v62 }
 0x3e9   : > { %v1760_v38 = vpop.permute.xlu0 %1759  ;;  %v1660_v56 = vpop.permute.xlu1 %1659  ;;  %2143 = vmatprep.subr.bf16.mxu1 %v2093_v13 }
 0x3ea   : > { %v1762_v41 = vsel %vm4851_vm8, %v1758_v5, %v1760_v38  ;;  %1768 = vst.msk [vmem:[#allocation4 + $0x150] sm:$0xff] %vm704_vm6, %v1760_v38  ;;  %v1662_v10 = vsel %vm4852_vm7, %v1658_v17, %v1660_v56  ;;  %1668 = vst.msk [vmem:[#allocation4 + $0x88] sm:$0xff] %vm704_vm6, %v1660_v56  ;;  %2144 = vmatpush1.bf16.msra.mxu1 %v2092_v18  ;;  %vm4856_vm8 = vcmask 744448   ;;  %vm1881_vm7 = vcmask 1047808  }
 0x3eb   : > { %v2098_v51 = vpack.c.bf16 %v1662_v10, %v1642_v7  ;;  %v2113_v34 = vpack.c.bf16 %v1762_v41, %v1762_v41 }
 0x3ed   : > { %v4476_v3 = vpop.permute.xlu0 %2012  ;;  %v1680_v22 = vpop.permute.xlu1 %1679  ;;  %2145 = vmatprep.subr.bf16.mxu1 %v2098_v51 }
 0x3ee   : > { %v1682_v33 = vsel %vm4853_vm0, %v1678_v27, %v1680_v22  ;;  %1688 = vst.msk [vmem:[#allocation4 + $0xb0] sm:$0xff] %vm704_vm6, %v1680_v22  ;;  %2146 = vmatpush1.bf16.msra.mxu1 %v2097_v44  ;;  %vm2127_vm0 = vcmask 1043456  }
 0x3ef   : > { %v2129_v55 = vsel %vm2127_vm0, %v2112_v35, 0 }
 0x3f1   : > { %v1700_v47 = vpop.permute.xlu1 %1699  ;;  %v4480_v60 = vpop.permute.xlu0 %1872 }
 0x3f2   : > { %v1702_v46 = vsel %vm4854_vm5, %v1698_v16, %v1700_v47  ;;  %1708 = vst.msk [vmem:[#allocation4 + $0xd8] sm:$0xff] %vm704_vm6, %v1700_v47  ;;  %vm2123_vm5 = vcmask 588800  }
 0x3f3   : > { %v2103_v57 = vpack.c.bf16 %v1702_v46, %v1682_v33 }
 0x3f5   : > { %v1720_v42 = vpop.permute.xlu1 %1719  ;;  %v1895_v43 = vpop.permute.xlu0 %1894  ;;  %2147 = vmatprep.subr.bf16.mxu1 %v2103_v57 }
 0x3f6   : > { %v1722_v61 = vsel %vm4855_vm15, %v1718_v32, %v1720_v42  ;;  %1728 = vst.msk [vmem:[#allocation4 + $0x100] sm:$0xff] %vm704_vm6, %v1720_v42  ;;  %2148 = vmatpush1.bf16.msra.mxu1 %v2102_v49 }
 0x3f9   : > { %v1740_v62 = vpop.permute.xlu1 %1739  ;;  %v1897_v4 = vpop.permute.xlu0 %1896 }
 0x3fa   : > { %v1742_v36 = vsel %vm4856_vm8, %v1738_v19, %v1740_v62  ;;  %1748 = vst.msk [vmem:[#allocation4 + $0x128] sm:$0xff] %vm704_vm6, %v1740_v62  ;;  %v1899_v39 = vsel %vm729_vm12, %v1895_v43, %v1897_v4 }
 0x3fb   : > { %1905 = vst.msk [vmem:[#allocation4 + $0x48] sm:$0xff] %vm1884_vm11, %v1899_v39  ;;  %v2108_v2 = vpack.c.bf16 %v1742_v36, %v1722_v61 }
 0x3fd   : > { %v1871_v11 = vpop.permute.xlu1 %1870  ;;  %v4490_v58 = vpop.permute.xlu0 %1914  ;;  %2149 = vmatprep.subr.bf16.mxu1 %v2108_v2 }
 0x3fe   : > { %v1876_v54 = vsel %vm704_vm6, %v1871_v11, %v4480_v60  ;;  %1882 = vst.msk [vmem:[#allocation4 + $0x10] sm:$0xff] %vm1881_vm7, %v1871_v11  ;;  %2150 = vmatpush1.bf16.msra.mxu1 %v2107_v20 }
 0x3ff   : > { %2682 = vmatprep.subr.msk.bf16.mxu1 %vm2127_vm0, %v2113_v34 }
 0x401   : > { %v1893_v8 = vpop.permute.xlu1 %1892  ;;  %v1935_v59 = vpop.permute.xlu0 %1934 }
 0x402   : > { %v1898_v52 = vsel %vm729_vm12, %v1893_v8, %v1895_v43  ;;  %1903 = vst.msk [vmem:[#allocation4 + $0x38] sm:$0xff] %vm1881_vm7, %v1893_v8  ;;  %2152 = vmatpush1.bf16.msra.mxu1 %v2129_v55  ;;  %v2056_v42 = vld [vmem:[#allocation4 + $0x48] sm:$0xff] }
 0x403   : > { %v2095_v24 = vpack.c.bf16 %v1898_v52, %v1876_v54  ;;  %2725 = vmatprep.subr.bf16.mxu1 %v4316_v53 }
 0x405   : > { %v1913_v28 = vpop.permute.xlu1 %1912  ;;  %v1937_v50 = vpop.permute.xlu0 %1936  ;;  %2184 = vmatprep.subr.bf16.mxu0 %v2095_v24  ;;  %2683 = vmatmul.mubr.msk.bf16.vlgmr.msra.gmra.mrb[0].mxu1 %vm2123_vm5, %v4501_v29  ;;  %v2049_v0 = vld [vmem:[#allocation4 + $0x10] sm:$0xff] }
 0x406   : > { %v1918_v23 = vsel %vm754_vm1, %v1913_v28, %v4490_v58  ;;  %1923 = vst.msk [vmem:[#allocation4 + $0x60] sm:$0xff] %vm1881_vm7, %v1913_v28  ;;  %v1939_v45 = vsel %vm784_vm14, %v1935_v59, %v1937_v50  ;;  %2735 = vmatprep.mubr.msk.bf16.mxu1 %vm3427_vm4, %v4316_v53 }
 0x407   : > { %1945 = vst.msk [vmem:[#allocation4 + $0x98] sm:$0xff] %vm1884_vm11, %v1939_v45 }
 0x409   : > { %v1933_v30 = vpop.permute.xlu1 %1932  ;;  %v1955_v63 = vpop.permute.xlu0 %1954  ;;  %v2054_v9 = vld [vmem:[#allocation4 + $0x38] sm:$0xff] }
 0x40a   : > { %v1938_v17 = vsel %vm784_vm14, %v1933_v30, %v1935_v59  ;;  %1943 = vst.msk [vmem:[#allocation4 + $0x88] sm:$0xff] %vm1881_vm7, %v1933_v30  ;;  %v2094_v5 = vpack.c.bf16 %v2054_v9, %v2049_v0 }
 0x40b   : > { %v2100_v14 = vpack.c.bf16 %v1938_v17, %v1918_v23 }
 0x40c   : > { %2185 = vmatpush1.bf16.msra.mxu0 %v2094_v5 }
 0x40d   : > { %v1953_v48 = vpop.permute.xlu1 %1952  ;;  %v1975_v27 = vpop.permute.xlu0 %1974  ;;  %2186 = vmatprep.subr.bf16.mxu0 %v2100_v14  ;;  %v2059_v32 = vld [vmem:[#allocation4 + $0x60] sm:$0xff] }
 0x40e   : > { %v1958_v37 = vsel %vm807_vm3, %v1953_v48, %v1955_v63  ;;  %1963 = vst.msk [vmem:[#allocation4 + $0xb0] sm:$0xff] %vm1881_vm7, %v1953_v48  ;;  %v2066_v36 = vld [vmem:[#allocation4 + $0x98] sm:$0xff] }
 0x411   : > { %v1973_v16 = vpop.permute.xlu1 %1972  ;;  %v1977_v1 = vpop.permute.xlu0 %1976  ;;  %v2064_v25 = vld [vmem:[#allocation4 + $0x88] sm:$0xff] }
 0x412   : > { %v1978_v19 = vsel %vm832_vm13, %v1973_v16, %v1975_v27  ;;  %1983 = vst.msk [vmem:[#allocation4 + $0xd8] sm:$0xff] %vm1881_vm7, %v1973_v16  ;;  %v1979_v26 = vsel %vm832_vm13, %v1975_v27, %v1977_v1  ;;  %v2099_v31 = vpack.c.bf16 %v2064_v25, %v2059_v32  ;;  %vm4857_vm13 = vcmask 1006592  }
 0x413   : > { %1985 = vst.msk [vmem:[#allocation4 + $0xe8] sm:$0xff] %vm1884_vm11, %v1979_v26  ;;  %v2105_v40 = vpack.c.bf16 %v1978_v19, %v1958_v37  ;;  %vm4858_vm12 = vmmov %vm4857_vm13 }
 0x414   : > { %2187 = vmatpush1.bf16.msra.mxu0 %v2099_v31 }
 0x415   : > { %v1993_v6 = vpop.permute.xlu1 %1992  ;;  %v1997_v7 = vpop.permute.xlu0 %1996  ;;  %2188 = vmatprep.subr.bf16.mxu0 %v2105_v40  ;;  %v2069_v38 = vld [vmem:[#allocation4 + $0xb0] sm:$0xff] }
 0x416   : > { %2005 = vst.msk [vmem:[#allocation4 + $0x110] sm:$0xff] %vm1884_vm11, %v1997_v7 }
 0x419   : > { %v2033_v13 = vpop.permute.xlu1 %2032  ;;  %v2017_v18 = vpop.permute.xlu0 %2016  ;;  %v2074_v56 = vld [vmem:[#allocation4 + $0xd8] sm:$0xff] }
 0x41a   : > { %2025 = vst.msk [vmem:[#allocation4 + $0x138] sm:$0xff] %vm1884_vm11, %v2017_v18  ;;  %v2104_v41 = vpack.c.bf16 %v2074_v56, %v2069_v38  ;;  %v2076_v34 = vld [vmem:[#allocation4 + $0xe8] sm:$0xff] }
 0x41c   : > { %2189 = vmatpush1.bf16.msra.mxu0 %v2104_v41 }
 0x41d   : > { %v1875_v10 = vpop.permute.xlu1 %1874  ;;  %v2035_v51 = vpop.permute.xlu0 %2034 }
 0x41e   : > { %v1877_v44 = vsel %vm704_vm6, %v4480_v60, %v1875_v10  ;;  %v2038_v22 = vsel %vm909_vm10, %v2033_v13, %v2035_v51 }
 0x41f   : > { %1885 = vst.msk [vmem:[#allocation4 + $0x20] sm:$0xff] %vm1884_vm11, %v1877_v44 }
 0x420   : > { %2043 = vst.msk [vmem:[#allocation4 + $0x150] sm:$0xff] %vm1881_vm7, %v2038_v22 }
 0x421   : > { %v1917_v33 = vpop.permute.xlu1 %1916  ;;  %v2086_v8 = vld [vmem:[#allocation4 + $0x138] sm:$0xff] }
 0x422   : > { %v1919_v47 = vsel %vm754_vm1, %v4490_v58, %v1917_v33 }
 0x423   : > { %1925 = vst.msk [vmem:[#allocation4 + $0x70] sm:$0xff] %vm1884_vm11, %v1919_v47 }
 0x425   : > { %v1957_v46 = vpop.permute.xlu1 %1956 }
 0x426   : > { %v1959_v57 = vsel %vm807_vm3, %v1955_v63, %v1957_v46  ;;  %v2051_v49 = vld [vmem:[#allocation4 + $0x20] sm:$0xff] }
 0x427   : > { %1965 = vst.msk [vmem:[#allocation4 + $0xc0] sm:$0xff] %vm1884_vm11, %v1959_v57  ;;  %v2096_v60 = vpack.c.bf16 %v2056_v42, %v2051_v49  ;;  %v2089_v50 = vld [vmem:[#allocation4 + $0x150] sm:$0xff] }
 0x428   : > { %v2114_v17 = vpack.c.bf16 %v2089_v50, %v2089_v50 }
 0x429   : > { %2726 = vmatpush3.bf16.msra.mxu1 %v2096_v60  ;;  %v1995_v43 = vpop.permute.xlu1 %1994 }
 0x42a   : > { %v1998_v61 = vsel %vm862_vm2, %v1993_v6, %v1995_v43  ;;  %v1999_v62 = vsel %vm862_vm2, %v1995_v43, %v1997_v7  ;;  %2727 = vmatprep.subr.bf16.mxu1 %v4316_v53  ;;  %v2061_v4 = vld [vmem:[#allocation4 + $0x70] sm:$0xff]  ;;  %vm1797_vm2 = vcmask 785408   ;;  %v2135_v16 = vsel %vm2127_vm0, %v2114_v17, 0 }
 0x42b   : > { %2003 = vst.msk [vmem:[#allocation4 + $0x100] sm:$0xff] %vm1881_vm7, %v1998_v61  ;;  %v2101_v39 = vpack.c.bf16 %v2066_v36, %v2061_v4 }
 0x42d   : > { %2728 = vmatpush3.bf16.msra.mxu1 %v2101_v39  ;;  %v2015_v2 = vpop.permute.xlu1 %2014 }
 0x42e   : > { %v2018_v20 = vsel %vm4857_vm13, %v4476_v3, %v2015_v2  ;;  %v2019_v11 = vsel %vm4858_vm12, %v2015_v2, %v2017_v18  ;;  %2729 = vmatprep.subr.bf16.mxu1 %v4316_v53  ;;  %v2071_v58 = vld [vmem:[#allocation4 + $0xc0] sm:$0xff]  ;;  %v2081_v3 = vld [vmem:[#allocation4 + $0x110] sm:$0xff]  ;;  %v2121_v52 = vpop.permute.xlu0 %2120 }
 0x42f   : > { %2023 = vst.msk [vmem:[#allocation4 + $0x128] sm:$0xff] %vm1881_vm7, %v2018_v20  ;;  %v2106_v35 = vpack.c.bf16 %v2076_v34, %v2071_v58  ;;  %v2110_v54 = vpack.c.bf16 %v2019_v11, %v1999_v62  ;;  %v2111_v24 = vpack.c.bf16 %v2086_v8, %v2081_v3 }
 0x431   : > { %2730 = vmatpush3.bf16.msra.mxu1 %v2106_v35  ;;  %v2037_v59 = vpop.permute.xlu1 %2036  ;;  %2190 = vmatprep.subr.bf16.mxu0 %v2110_v54 }
 0x432   : > { %v2039_v55 = vsel %vm909_vm10, %v2035_v51, %v2037_v59  ;;  %2045 = vst.msk [vmem:[#allocation4 + $0x160] sm:$0xff] %vm1884_vm11, %v2037_v59  ;;  %2731 = vmatprep.subr.bf16.mxu1 %v4316_v53  ;;  %v2079_v45 = vld [vmem:[#allocation4 + $0x100] sm:$0xff]  ;;  %v1808_v5 = vpop.permute.xlu0 %1807 }
 0x433   : > { %v2115_v9 = vpack.c.bf16 %v2039_v55, %v2039_v55 }
 0x435   : > { %2732 = vmatpush3.bf16.msra.mxu1 %v2111_v24  ;;  %v1795_v28 = vpop.permute.xlu1 %1794 }
 0x436   : > { %v1796_v23 = vrot.slane %v1795_v28, 1  ;;  %v2084_v30 = vld [vmem:[#allocation4 + $0x128] sm:$0xff]  ;;  %2733 = vmatprep.subr.bf16.mxu1 %v4316_v53 }
 0x437   : > { %v2109_v63 = vpack.c.bf16 %v2084_v30, %v2079_v45 }
 0x438   : > { %v1798_v0 = vsel %vm1797_vm2, %v1795_v28, %v1796_v23 }
 0x439   : > { %2675 = vst.msk [vmem:[%s4206_s22 + $0x3] sm:$0x7] %vm4109_vm9, %v1798_v0  ;;  %v1806_v14 = vpop.permute.xlu1 %1805  ;;  %2191 = vmatpush1.bf16.msra.mxu0 %v2109_v63  ;;  %v2091_v48 = vld [vmem:[#allocation4 + $0x160] sm:$0xff]  ;;  %s3432_s22 = smov [#allocation19]  }
 0x43a   : > { %v1811_v27 = vsel %vm1797_vm2, %v1806_v14, %v1808_v5  ;;  %2684 = vmatprep.subr.msk.bf16.mxu0 %vm2127_vm0, %v2115_v9  ;;  %v2116_v37 = vpack.c.bf16 %v2091_v48, %v2091_v48  ;;  %s3222_s27 = sshll.u32 %s3432_s22, 4  ;;  %s3223_s27 = int_to_ptr.vmem [resolvable:$false] %s3222_s27 }
 0x43b   : > { %2676 = vst [vmem:[%s4169_s28 + $0x18] sm:$0xff] %v1811_v27  ;;  %s3224_s0 = scalar_lea.vmem %s3223_s27, 192  ;;  %p3225_p0 = scmp.lt.s32.totalorder %s4570_s23, %s3223_s27 }
 0x43c   : > { %v2141_v53 = vsel %vm2127_vm0, %v2116_v37, 0  ;;  %p3226_p2 = scmp.lt.s32.totalorder %s3224_s0, %s3218_s12 }
 0x43d   : > { %2734 = vmatpush3.bf16.msra.mxu1 %v2141_v53  ;;  %v1810_v1 = vpop.permute.xlu1 %1809  ;;  %2193 = vmatpush1.bf16.msra.mxu0 %v2135_v16 }
 0x43e   : > { %v1812_v21 = vsel %vm1797_vm2, %v1808_v5, %v1810_v1  ;;  %2678 = vst.msk [vmem:[%s4169_s28 + $0x28] sm:$0xff] %vm704_vm6, %v1810_v1  ;;  %p3227_p5 = por %p3226_p2, %p3225_p0 }
 0x43f   : > { %2677 = vst [vmem:[%s4169_s28 + $0x20] sm:$0xff] %v1812_v21 }
 0x440   : > { %2736 = vmatmul.mubr.msk.bf16.vlgmr.msra.gmra.mrb[4].mxu1 %vm2123_vm5, %v4501_v29  ;;  %2685 = vmatmul.mubr.msk.bf16.vlgmr.msra.gmra.mrb[12].mxu0 %vm2123_vm5, %v4501_v29  ;;  %p3228_p1 = pnand %p3227_p5, %p3221_p8 }
 0x4d8   : > { %v2177_v32 = vpop.f32.mrb[0].mxu1 }
 0x4d9   : > { %v2178_v25 = vadd.f32 %v2177_v32, %v2121_v52  ;;  %v2179_v19 = vpop.f32.mrb[1].mxu1 }
 0x4da   : > { %v2180_v26 = vadd.f32 %v2179_v19, %v2121_v52  ;;  %v2181_v31 = vpop.f32.mrb[2].mxu1 }
 0x4db   : > { %v2687_v40 = vmul.f32 -1.442695, %v2178_v25  ;;  %v2182_v6 = vpop.f32.mrb[3].mxu1 }
 0x4dc   : > { %v2688_v7 = vmul.f32 -1.442695, %v2180_v26 }
 0x4dd   : > { %3014 = vpow2.f32 %v2687_v40 }
 0x4de   : > { %3016 = vpow2.f32 %v2688_v7 }
 0x4e7   : > { %v3015_v13 = vpop.eup %3014 }
 0x4e8   : > { %v3017_v18 = vpop.eup %3016  ;;  %v2280_v38 = vadd.f32 1.0, %v3015_v13 }
 0x4e9   : > { %v2281_v56 = vadd.f32 1.0, %v3017_v18 }
 0x4ea   : > { %3018 = vrcp.f32 %v2280_v38 }
 0x4eb   : > { %3020 = vrcp.f32 %v2281_v56 }
 0x4f4   : > { %v3019_v41 = vpop.eup %3018 }
 0x4f5   : > { %v3021_v10 = vpop.eup %3020 }
 0x4f6   : > { %v2298_v29 = vcombine.low %v3019_v41, %v3021_v10 }
 0x4f8   : > { %2300 = vst [vmem:[%s4565_s2] sm:$0x77] %v2298_v29 }
 0x513   : > { %v2259_v51 = vpop.f32.mrb[4].mxu1  ;;  %v2218_v44 = vpop.f32.mrb[12].mxu0 }
 0x514   : > { %v2260_v22 = vadd.f32 %v2259_v51, %v2121_v52  ;;  %v2219_v33 = vadd.f32 %v2218_v44, %v2121_v52  ;;  %v2220_v47 = vpop.f32.mrb[13].mxu0  ;;  %v2737_v46 = vpop.f32.mrb[5].mxu1 }
 0x515   : > { %v2221_v57 = vadd.f32 %v2220_v47, %v2121_v52  ;;  %v2222_v49 = vpop.f32.mrb[14].mxu0  ;;  %v2262_v42 = vpop.f32.mrb[6].mxu1 }
 0x516   : > { %v2691_v60 = vmul.f32 -1.442695, %v2260_v22  ;;  %v2689_v43 = vmul.f32 -1.442695, %v2219_v33  ;;  %v2223_v61 = vpop.f32.mrb[15].mxu0  ;;  %v2738_v62 = vpop.f32.mrb[7].mxu1 }
 0x517   : > { %v2690_v4 = vmul.f32 -1.442695, %v2221_v57 }
 0x518   : > { %3022 = vpow2.f32 %v2691_v60 }
 0x519   : > { %3024 = vpow2.f32 %v2689_v43 }
 0x51a   : > { %3026 = vpow2.f32 %v2690_v4 }
 0x522   : > { %v3023_v36 = vpop.eup %3022 }
 0x523   : > { %v3025_v39 = vpop.eup %3024  ;;  %v2284_v2 = vadd.f32 1.0, %v3023_v36 }
 0x524   : > { %v3027_v20 = vpop.eup %3026  ;;  %v2282_v11 = vadd.f32 1.0, %v3025_v39 }
 0x525   : > { %3028 = vrcp.f32 %v2284_v2  ;;  %v2283_v58 = vadd.f32 1.0, %v3027_v20 }
 0x526   : > { %3030 = vrcp.f32 %v2282_v11 }
 0x527   : > { %3032 = vrcp.f32 %v2283_v58 }
 0x52f   : > { %v3029_v34 = vpop.eup %3028 }
 0x530   : > { %3231 = shalt.err (!%p3228_p1)
}
 0x531   : > { %s3232_s20 = scalar_lea.hbm %s4577_s1, 96  ;;  %s3236_s3 = scalar_lea.hbm %s4758_s8, 192 }
 0x532   : > { %p3233_p6 = scmp.ne.s32.totalorder %s4577_s1, %s3232_s20  ;;  %p3237_p13 = scmp.lt.u32.totalorder %s4577_s1, %s4758_s8 }
 0x533   : > { %p3238_p7 = scmp.lt.u32.totalorder %s3236_s3, %s3232_s20  ;;  %p3240_p3 = scmp.lt.u32.totalorder %s3232_s20, %s4577_s1 }
 0x534   : > { %p3234_p4 = pnand %p3233_p6, %p4860_p10 }
 0x535   : > { %p3239_p9 = por %p3238_p7, %p3237_p13 }
 0x536   : > { %p3235_p12 = pneg %p3234_p4 }
 0x537   : > { %p3241_p11 = por %p3240_p3, %p3239_p9 }
 0x539   : > { %p3242_p8 = pnand %p3241_p11, %p3235_p12 }
 0x53b   : > { %3245 = shalt.err (!%p3242_p8)
}
 0x53c   : > { %s3433_s0 = smov 48   ;;  %s3434_s12 = smov 3   ;;  %v3031_v35 = vpop.eup %3030  ;;  %vm4862_vm1 = vcmask 256000  }
 0x53d   : > { %2775 = dma.vmem_to_hbm [thread:$0]  (%p4860_p10), %s4570_s23, 96, %s4577_s1, %s4579_s26, %s3433_s0, %s3433_s0, %s3434_s12   ;;  %v3033_v54 = vpop.eup %3032 }
 0x53e   : > { %s4861_s25 = smov 96   ;;  %2301 = vst.msk [vmem:[%s4565_s2 + $0x8] sm:$0x7] %vm4862_vm1, %v3031_v35  ;;  %s4799_s20 = smul.u32 768, %s3517_s19  ;;  %v2304_v8 = vcombine.low %v3031_v35, %v3033_v54 }
 0x53f   : > { %2307 = vrot.lane.b32.xlu0 %v3029_v34, %s4861_s25  ;;  %s4863_s10 = sshll.u32 %s4169_s28, 4  ;;  %s3435_s28 = smov [#allocation21]   ;;  %s4609_s10 = int_to_ptr.vmem [resolvable:$true] %s4863_s10 }
 0x540   : > { %s4616_s27 = scalar_lea.hbm %s4759_s9, %s4799_s20  ;;  %2305 = vrot.lane.b32.xlu1 %v2304_v8, %s4861_s25  ;;  %s3246_s23 = scalar_lea.vmem %s4609_s10, 768 }
 0x541   : > { %p3247_p0 = scmp.ne.s32.totalorder %s4609_s10, %s3246_s23  ;;  %s3250_s1 = sshll.u32 %s3435_s28, 4  ;;  %s3251_s1 = int_to_ptr.vmem [resolvable:$false] %s3250_s1 }
 0x542   : > { %s3252_s0 = scalar_lea.vmem %s3251_s1, 1536  ;;  %p3253_p1 = scmp.lt.s32.totalorder %s4609_s10, %s3251_s1 }
 0x543   : > { %1824 = vrot.lane.b32.xlu0 %v4336_v12, %s4861_s25  ;;  %p3248_p2 = pnand %p3247_p0, %p4860_p10  ;;  %p3254_p6 = scmp.lt.s32.totalorder %s3252_s0, %s3246_s23 }
 0x545   : > { %p3249_p5 = pneg %p3248_p2  ;;  %p3255_p4 = por %p3254_p6, %p3253_p1 }
 0x547   : > { %p3256_p12 = pnand %p3255_p4, %p3249_p5 }
 0x549   : > { %3259 = shalt.err (!%p3256_p12)
}
 0x54a   : > { %s3260_s12 = scalar_lea.hbm %s4616_s27, 768  ;;  %s3264_s28 = scalar_lea.hbm %s4759_s9, 1536 }
 0x54b   : > { %p3261_p13 = scmp.ne.s32.totalorder %s4616_s27, %s3260_s12  ;;  %p3265_p3 = scmp.lt.u32.totalorder %s4616_s27, %s4759_s9 }
 0x54c   : > { %p3266_p11 = scmp.lt.u32.totalorder %s3264_s28, %s3260_s12  ;;  %p3268_p0 = scmp.lt.u32.totalorder %s3260_s12, %s4616_s27 }
 0x54d   : > { %p3262_p7 = pnand %p3261_p13, %p4860_p10 }
 0x54e   : > { %p3267_p8 = por %p3266_p11, %p3265_p3 }
 0x54f   : > { %p3263_p9 = pneg %p3262_p7 }
 0x550   : > { %p3269_p2 = por %p3268_p0, %p3267_p8 }
 0x552   : > { %p3270_p5 = pnand %p3269_p2, %p3263_p9 }
 0x554   : > { %3273 = shalt.err (!%p3270_p5)
}
 0x555   : > { %s4800_s23 = smov 384   ;;  %s3437_s0 = smov 24   ;;  %1822 = vrot.lane.b32.xlu1 %v4344_v15, %s4861_s25  ;;  %v1821_v12 = vpop.permute.xlu0 %1820  ;;  %vm4864_vm14 = vmmov %vm4862_vm1 }
 0x556   : > { %2776 = dma.vmem_to_hbm [thread:$0]  (%p4860_p10), %s4609_s10, 768, %s4616_s27, %s4579_s26, %s4800_s23, %s4800_s23, %s3437_s0  }
 0x557   : > { %s2348_s20 = sshll.u32 %s4565_s2, 4  ;;  %s2744_s12 = smul.u32 384, %s3517_s19  ;;  %s4652_s20 = int_to_ptr.vmem [resolvable:$true] %s2348_s20 }
 0x558   : > { %s2399_s26 = sshll.u32 %s4055_s24, 4  ;;  %s4865_s3 = smul.u32 768, %s3517_s19  ;;  %s4671_s26 = int_to_ptr.vmem [resolvable:$true] %s2399_s26 }
 0x559   : > { %s4661_s27 = scalar_lea.hbm %s4757_s7, %s2744_s12  ;;  %s4866_s1 = sld [smem:[#allocation37_spill]] }
 0x55a   : > { %s2319_s12 = scalar_lea.sflag [#allocation7], %s3749_s11  ;;  %s3274_s25 = scalar_lea.vmem %s4652_s20, 384 }
 0x55b   : > { %p3275_p1 = scmp.ne.s32.totalorder %s4652_s20, %s3274_s25  ;;  %s3438_s19 = smov [#allocation18]  }
 0x55c   : > { %s3278_s10 = sshll.u32 %s3438_s19, 4  ;;  %s3279_s10 = int_to_ptr.vmem [resolvable:$false] %s3278_s10 }
 0x55d   : > { %p3276_p6 = pnand %p3275_p1, %p4860_p10  ;;  %p3281_p12 = scmp.lt.s32.totalorder %s4652_s20, %s3279_s10 }
 0x55f   : > { %s4669_s23 = scalar_lea.hbm %s4866_s1, %s4865_s3  ;;  %p3277_p4 = pneg %p3276_p6 }
 0x560   : > { %s3280_s3 = scalar_lea.vmem %s3279_s10, 768 }
 0x561   : > { %p3282_p13 = scmp.lt.s32.totalorder %s3280_s3, %s3274_s25 }
 0x563   : > { %p3283_p7 = por %p3282_p13, %p3281_p12 }
 0x565   : > { %p3284_p9 = pnand %p3283_p7, %p3277_p4 }
 0x5b1   : > { %v2308_v59 = vpop.permute.xlu0 %2307 }
 0x5b2   : > { %2693 = vst.msk [vmem:[%s4565_s2 + $0x14] sm:$0x7] %vm4864_vm14, %v2308_v59  ;;  %v2306_v3 = vpop.permute.xlu1 %2305  ;;  %v2310_v52 = vrot.slane %v2308_v59, 4 }
 0x5b3   : > { %v2309_v15 = vrot.slane %v2306_v3, 4 }
 0x5b5   : > { %v1825_v55 = vpop.permute.xlu0 %1824  ;;  %v2311_v24 = vsel %vm2127_vm0, %v2309_v15, %v2310_v52 }
 0x5b6   : > { %2681 = vst.msk [vmem:[%s4055_s24 + $0x28] sm:$0xff] %vm704_vm6, %v1825_v55  ;;  %v2312_v28 = vsel %vm1797_vm2, %v2306_v3, %v2311_v24 }
 0x5b7   : > { %2692 = vst [vmem:[%s4565_s2 + $0xc] sm:$0x77] %v2312_v28 }
 0x5c7   : > { %v1823_v50 = vpop.permute.xlu1 %1822 }
 0x5c8   : > { %v1826_v23 = vsel %vm1797_vm2, %v1821_v12, %v1823_v50  ;;  %v1827_v45 = vsel %vm1797_vm2, %v1823_v50, %v1825_v55 }
 0x5c9   : > { %2679 = vst [vmem:[%s4055_s24 + $0x18] sm:$0xff] %v1826_v23  ;;  %2680 = vst [vmem:[%s4055_s24 + $0x20] sm:$0xff] %v1827_v45 }
 0x5ca   : > { %3287 = shalt.err (!%p3284_p9)
}
 0x5cb   : > { %s3288_s24 = scalar_lea.hbm %s4661_s27, 384  ;;  %s3292_s28 = scalar_lea.hbm %s4757_s7, 768 }
 0x5cc   : > { %p3289_p3 = scmp.ne.s32.totalorder %s4661_s27, %s3288_s24  ;;  %p3293_p0 = scmp.lt.u32.totalorder %s4661_s27, %s4757_s7 }
 0x5cd   : > { %p3294_p2 = scmp.lt.u32.totalorder %s3292_s28, %s3288_s24  ;;  %p3296_p1 = scmp.lt.u32.totalorder %s3288_s24, %s4661_s27 }
 0x5ce   : > { %p3290_p11 = pnand %p3289_p3, %p4860_p10 }
 0x5cf   : > { %p3295_p5 = por %p3294_p2, %p3293_p0 }
 0x5d0   : > { %p3291_p8 = pneg %p3290_p11 }
 0x5d1   : > { %p3297_p6 = por %p3296_p1, %p3295_p5 }
 0x5d3   : > { %p3298_p4 = pnand %p3297_p6, %p3291_p8 }
 0x5d5   : > { %3301 = shalt.err (!%p3298_p4)
}
 0x5d6   : > { %s3439_s25 = smov 192   ;;  %s2334_s3 = scalar_lea.sflag [#allocation23], %s3749_s11 }
 0x5d7   : > { %2774 = dma.vmem_to_hbm [thread:$0]  (%p4860_p10), %s4652_s20, 384, %s4661_s27, %s2319_s12, %s3439_s25, %s3439_s25, %s4838_s21  }
 0x5d8   : > { %s3302_s2 = scalar_lea.vmem %s4671_s26, 768  ;;  %s3440_s24 = smov [#allocation22]  }
 0x5d9   : > { %p3303_p12 = scmp.ne.s32.totalorder %s4671_s26, %s3302_s2  ;;  %s3306_s22 = sshll.u32 %s3440_s24, 4  ;;  %s3307_s22 = int_to_ptr.vmem [resolvable:$false] %s3306_s22 }
 0x5da   : > { %s3308_s28 = scalar_lea.vmem %s3307_s22, 1536  ;;  %p3309_p9 = scmp.lt.s32.totalorder %s4671_s26, %s3307_s22 }
 0x5db   : > { %p3304_p13 = pnand %p3303_p12, %p4860_p10  ;;  %p3310_p3 = scmp.lt.s32.totalorder %s3308_s28, %s3302_s2 }
 0x5dd   : > { %p3305_p7 = pneg %p3304_p13  ;;  %p3311_p11 = por %p3310_p3, %p3309_p9 }
 0x5df   : > { %p3312_p8 = pnand %p3311_p11, %p3305_p7 }
 0x5e1   : > { %3315 = shalt.err (!%p3312_p8)
}
 0x5e2   : > { %s3316_s21 = scalar_lea.hbm %s4669_s23, 768  ;;  %s3320_s12 = scalar_lea.hbm %s4866_s1, 1536 }
 0x5e3   : > { %p3317_p0 = scmp.ne.s32.totalorder %s4669_s23, %s3316_s21  ;;  %p3321_p1 = scmp.lt.u32.totalorder %s4669_s23, %s4866_s1 }
 0x5e4   : > { %p3322_p6 = scmp.lt.u32.totalorder %s3320_s12, %s3316_s21  ;;  %p3324_p12 = scmp.lt.u32.totalorder %s3316_s21, %s4669_s23 }
 0x5e5   : > { %p3318_p2 = pnand %p3317_p0, %p4860_p10 }
 0x5e6   : > { %p3323_p4 = por %p3322_p6, %p3321_p1 }
 0x5e7   : > { %p3319_p5 = pneg %p3318_p2 }
 0x5e8   : > { %p3325_p13 = por %p3324_p12, %p3323_p4 }
 0x5ea   : > { %p3326_p7 = pnand %p3325_p13, %p3319_p5 }
 0x5ec   : > { %3329 = shalt.err (!%p3326_p7)
}
 0x5ed   : > { %s4867_s25 = smov 384  }
 0x5ee   : > { %2777 = dma.vmem_to_hbm [thread:$0]  (%p4860_p10), %s4671_s26, 768, %s4669_s23, %s2334_s3, %s4867_s25, %s4867_s25, %s3437_s0  }
 0x5ef PF: > { %s2414_s2 = sand.u32 1, %s3384_s13   ;;  %p4868_p9 = scmp.ne.s32.totalorder %s4815_s30, 0 }
 0x5f0   : > { %p4869_p3 = scmp.ge.s32.totalorder %s3396_s16, 2  ;;  %s2415_s24 = scalar_lea.sflag [#allocation7], %s2414_s2 }
 0x5f2   : > { %p2806_p11 = pnand %p4869_p3, %p4868_p9 }
 0x5f4   : > { %3371 = dma.done.wait (!%p2806_p11), %s2415_s24, 384  }
 0x5f5   : > { %3373 = vsyncadd (!%p2806_p11), %s2415_s24, 4294966912  ;;  %s4870_s29 = sadd.s32 4294967294, %s3396_s16  }
 0x5f6   : > { %s2423_s22 = sand.u32 1, %s4870_s29  }
 0x5f7   : > { %s2424_s28 = scalar_lea.sflag [#allocation20], %s2423_s22 }
 0x5f8   : > { %3375 = dma.done.wait (!%p2806_p11), %s2424_s28, 864  }
 0x5f9   : > { %3377 = vsyncadd (!%p2806_p11), %s2424_s28, 4294966432  ;;  %s2442_s11 = scalar_lea.sflag [#allocation23], %s2414_s2 }
 0x5fa   : > { %3379 = dma.done.wait (!%p2806_p11), %s2442_s11, 768  }
 0x5fb   : > { %3381 = vsyncadd (!%p2806_p11), %s2442_s11, 4294966528  ;;  %p34_p10 = scmp.ge.s32.totalorder %s3674_s17, 4   ;;  %s4871_s13 = smov %s3388_s14 }
 0x5fc   : > { %s4872_s14 = smov %s3392_s15  ;;  %s4873_s15 = smov %s3685_s18 }
 0x5fd   : > { %s4874_s16 = smov %s3674_s17  ;;  %36 = sbr.rel (!%p34_p10) target bundleno = 19 (0x13), region = 172 }
 0x604   :  { %2447 = vsyncpa [#allocation6], 1 }
 0x605   :  { %2449 = vsyncpa [#allocation6 + $0x1], 1 }
 0x606   :  { %2450 = vsyncpa [#allocation10], 1 }
 0x607   :  { %2451 = vsyncpa [#allocation13], 1 }
 0x608   :  { %2452 = vsyncpa [#allocation17], 1 }
 0x609   :  { %2453 = vsyncpa [#allocation7], 1 }
 0x60a   :  { %2455 = vsyncpa [#allocation7 + $0x1], 1 }
 0x60b   :  { %2456 = vsyncpa [#allocation20], 1 }
 0x60c   :  { %2458 = vsyncpa [#allocation20 + $0x1], 1 }
 0x60d   :  { %2459 = vsyncpa [#allocation23], 1 }
 0x60e   :  { %2461 = vsyncpa [#allocation23 + $0x1], 1 }
 0x60f   :  { %2462 = vsyncpa [#allocation8], 1 }
 0x610   :  { %2464 = vsyncpa [#allocation8 + $0x1], 1 }

// kernel: side_information_autoencoder_forward.5
= control target key start
LH: loop header
LB: loop body
LE: loop exit
PB: predicated region body
PF: predicated region fallthrough
CT: control target
= control target key end

     0   :  { %s3535_s0 = inlined_call_operand.hbm [shape: f32[2,6,342], index: 0, kind: input, shape index: {}]   ;;  %s3536_s1 = inlined_call_operand.hbm [shape: f32[1,288], index: 1, kind: input, shape index: {}]   ;;  %s3537_s2 = inlined_call_operand.hbm [shape: bf16[16,54], index: 2, kind: input, shape index: {}]   ;;  %s3538_s3 = inlined_call_operand.hbm [shape: f32[16,1], index: 3, kind: input, shape index: {}]   ;;  %s3539_s4 = inlined_call_operand.hbm [shape: bf16[16,144], index: 4, kind: input, shape index: {}]   ;;  %s3540_s5 = inlined_call_operand.hbm [shape: f32[16,1], index: 5, kind: input, shape index: {}]   ;;  %s3541_s6 = inlined_call_operand.hbm [shape: bf16[3,144], index: 6, kind: input, shape index: {}]   ;;  %s3542_s7 = inlined_call_operand.hbm [shape: f32[3,1], index: 7, kind: input, shape index: {}]   ;;  %s3543_s8 = inlined_call_operand.hbm [shape: f32[2,3,288], index: 8, kind: output, shape index: {}]  }
   0x1   :  { %3549 = sst [smem:[#allocation26_spill]] %s3536_s1 }
   0x2   :  { %3550 = sst [smem:[#allocation27_spill]] %s3537_s2 }
   0x3   :  { %13 = vsyncpa [#allocation6], 0 }
   0x4   :  { %15 = vsyncpa [#allocation6 + $0x1], 0 }
   0x5   :  { %16 = vsyncpa [#allocation9], 0 }
   0x6   :  { %17 = vsyncpa [#allocation12], 0 }
   0x7   :  { %18 = vsyncpa [#allocation15], 0 }
   0x8   :  { %19 = vsyncpa [#allocation18], 0 }
   0x9   :  { %20 = vsyncpa [#allocation7], 0 }
   0xa   :  { %22 = vsyncpa [#allocation7 + $0x1], 0  ;;  %s2670_s27 = smov 0   ;;  %s2672_s28 = smov 0  }
   0xb   :  { %s2674_s29 = smov 0   ;;  %s2676_s30 = smov 0  }
   0xc LB: > { %s2600_s9 = smov [#allocation8]   ;;  %s2691_s11 = sadd.s32 4294967295, %s2598_s30   ;;  %s2598_s30 = sphi %s2676_s30, %s3578_s30   ;;  %s2594_s29 = sphi %s2674_s29, %s3577_s29   ;;  %s2590_s28 = sphi %s2672_s28, %s3576_s28   ;;  %s2586_s27 = sphi %s2670_s27, %s3575_s27  }
   0xd   : > { %s245_s10 = sshll.u32 %s2600_s9, 4  ;;  %p2097_p0 = scmp.ge.s32.totalorder %s2598_s30, 1  ;;  %s2696_s10 = int_to_ptr.vmem [resolvable:$true] %s245_s10 }
   0xe   : > { %p3544_p1 = scmp.eq.s32.totalorder %s2691_s11, 0  ;;  %p232_p2 = scmp.lt.s32.totalorder %s2598_s30, 3 }
   0xf   : > { %s2601_s13 = smov [#allocation11]   ;;  %s2602_s16 = smov [#allocation14]  }
  0x10   : > { %p2698_p3 = pnand %p2097_p0, %p232_p2  ;;  %s268_s14 = sshll.u32 %s2601_s13, 4  ;;  %s2705_s14 = int_to_ptr.vmem [resolvable:$true] %s268_s14 }
  0x11   : > { %s294_s17 = sshll.u32 %s2602_s16, 4  ;;  %s3553_s1 = sld [smem:[#allocation26_spill]]  ;;  %s2713_s17 = int_to_ptr.vmem [resolvable:$true] %s294_s17 }
  0x12   : > { %s3551_s12 = scalar_select %p2698_p3, 1, 0 }
  0x13   : > { %p2183_p5 = pneg %p2698_p3 }
  0x15   : > { %p2709_p6 = pnand %p2183_p5, %p3544_p1 }
  0x17   : > { %s2290_s20 = scalar_lea.hbm %s3553_s1, 48  ;;  %p2723_p8 = pneg %p2709_p6 }
  0x18   : > { %p2291_p7 = scmp.ne.s32.totalorder %s3553_s1, %s2290_s20  ;;  %p2297_p11 = scmp.lt.u32.totalorder %s2290_s20, %s3553_s1 }
  0x1a   : > { %p2293_p9 = pnand %p2723_p8, %p2291_p7 }
  0x1c   : > { %p2294_p10 = pneg %p2293_p9 }
  0x1e   : > { %p2299_p12 = pnand %p2297_p11, %p2294_p10 }
  0x20   : > { %2302 = shalt.err (!%p2299_p12)
}
  0x21   : > { %s2303_s26 = scalar_lea.vmem %s2696_s10, 48  ;;  %s2310_s9 = scalar_lea.vmem %s2696_s10, 64 }
  0x22   : > { %p2304_p13 = scmp.ne.s32.totalorder %s2696_s10, %s2303_s26  ;;  %p2311_p5 = scmp.lt.s32.totalorder %s2696_s10, %s2696_s10 }
  0x23   : > { %p2312_p7 = scmp.lt.s32.totalorder %s2310_s9, %s2303_s26 }
  0x24   : > { %p2306_p0 = pnand %p2304_p13, %p2723_p8 }
  0x25   : > { %p2313_p9 = por %p2312_p7, %p2311_p5 }
  0x26   : > { %p2307_p2 = pneg %p2306_p0 }
  0x28   : > { %p2314_p4 = pnand %p2313_p9, %p2307_p2 }
  0x2a   : > { %2317 = shalt.err (!%p2314_p4)
}
  0x2b   : > { %2186 = dma.hbm_to_vmem [thread:$0]  (!%p2709_p6), %s3553_s1, 48, %s2696_s10, [#allocation9]  }
  0x2c   : > { %s2318_s20 = scalar_lea.hbm %s3538_s3, 256 }
  0x2d   : > { %p2319_p10 = scmp.ne.s32.totalorder %s3538_s3, %s2318_s20  ;;  %p2325_p4 = scmp.lt.u32.totalorder %s2318_s20, %s3538_s3 }
  0x2f   : > { %p2321_p11 = pnand %p2319_p10, %p2723_p8 }
  0x31   : > { %p2322_p12 = pneg %p2321_p11 }
  0x33   : > { %p2327_p13 = pnand %p2325_p4, %p2322_p12 }
  0x35   : > { %2330 = shalt.err (!%p2327_p13)
}
  0x36   : > { %s2331_s10 = scalar_lea.vmem %s2705_s14, 256  ;;  %p2339_p7 = scmp.lt.s32.totalorder %s2705_s14, %s2705_s14 }
  0x37   : > { %p2332_p0 = scmp.ne.s32.totalorder %s2705_s14, %s2331_s10  ;;  %p2340_p9 = scmp.lt.s32.totalorder %s2331_s10, %s2331_s10 }
  0x39   : > { %p2334_p2 = pnand %p2332_p0, %p2723_p8  ;;  %p2341_p10 = por %p2340_p9, %p2339_p7 }
  0x3b   : > { %p2335_p5 = pneg %p2334_p2 }
  0x3d   : > { %p2342_p11 = pnand %p2341_p10, %p2335_p5 }
  0x3f   : > { %2345 = shalt.err (!%p2342_p11)
}
  0x40   : > { %s3546_s26 = smov 128   ;;  %s3547_s9 = smov 8  }
  0x41   : > { %2192 = dma.hbm_to_vmem [thread:$0]  (!%p2709_p6), %s3538_s3, 256, %s2705_s14, [#allocation12], %s3546_s26, %s3546_s26, %s3547_s9  }
  0x42   : > { %s2346_s20 = scalar_lea.hbm %s3540_s5, 256 }
  0x43   : > { %p2347_p12 = scmp.ne.s32.totalorder %s3540_s5, %s2346_s20  ;;  %p2353_p0 = scmp.lt.u32.totalorder %s2346_s20, %s3540_s5 }
  0x45   : > { %p2349_p4 = pnand %p2347_p12, %p2723_p8 }
  0x47   : > { %p2350_p13 = pneg %p2349_p4 }
  0x49   : > { %p2355_p2 = pnand %p2353_p0, %p2350_p13 }
  0x4b   : > { %2358 = shalt.err (!%p2355_p2)
}
  0x4c   : > { %s2359_s14 = scalar_lea.vmem %s2713_s17, 256  ;;  %p2367_p10 = scmp.lt.s32.totalorder %s2713_s17, %s2713_s17 }
  0x4d   : > { %p2360_p5 = scmp.ne.s32.totalorder %s2713_s17, %s2359_s14  ;;  %p2368_p11 = scmp.lt.s32.totalorder %s2359_s14, %s2359_s14 }
  0x4f   : > { %p2362_p7 = pnand %p2360_p5, %p2723_p8  ;;  %p2369_p12 = por %p2368_p11, %p2367_p10 }
  0x51   : > { %p2363_p9 = pneg %p2362_p7 }
  0x53   : > { %p2370_p4 = pnand %p2369_p12, %p2363_p9 }
  0x55   : > { %2373 = shalt.err (!%p2370_p4)
}
  0x56   : > { %2198 = dma.hbm_to_vmem [thread:$0]  (!%p2709_p6), %s3540_s5, 256, %s2713_s17, [#allocation15], %s3546_s26, %s3546_s26, %s3547_s9  }
  0x57   : > { %s2605_s16 = smov [#allocation10]   ;;  %s3555_s2 = sld [smem:[#allocation27_spill]] }
  0x58   : > { %s255_s18 = sshll.u32 %s2605_s16, 4  ;;  %s256_s18 = int_to_ptr.vmem [resolvable:$true] %s255_s18 }
  0x5d   : > { %s2374_s21 = scalar_lea.hbm %s3555_s2, 128 }
  0x5e   : > { %p2375_p13 = scmp.ne.s32.totalorder %s3555_s2, %s2374_s21  ;;  %p2381_p5 = scmp.lt.u32.totalorder %s2374_s21, %s3555_s2 }
  0x60   : > { %p2377_p0 = pnand %p2375_p13, %p2723_p8 }
  0x62   : > { %p2378_p2 = pneg %p2377_p0 }
  0x64   : > { %p2383_p7 = pnand %p2381_p5, %p2378_p2 }
  0x66   : > { %2386 = shalt.err (!%p2383_p7)
}
  0x67   : > { %s2387_s17 = scalar_lea.vmem %s256_s18, 128  ;;  %p2395_p12 = scmp.lt.s32.totalorder %s256_s18, %s256_s18 }
  0x68   : > { %p2388_p9 = scmp.ne.s32.totalorder %s256_s18, %s2387_s17  ;;  %p2396_p4 = scmp.lt.s32.totalorder %s2387_s17, %s2387_s17 }
  0x6a   : > { %p2390_p10 = pnand %p2388_p9, %p2723_p8  ;;  %p2397_p1 = por %p2396_p4, %p2395_p12 }
  0x6c   : > { %p2391_p11 = pneg %p2390_p10 }
  0x6e   : > { %p2398_p3 = pnand %p2397_p1, %p2391_p11 }
  0x70   : > { %2401 = shalt.err (!%p2398_p3)
}
  0x71   : > { %s2606_s10 = smov 64   ;;  %s2607_s13 = smov 4  }
  0x72   : > { %2189 = dma.hbm_to_vmem [thread:$0]  (!%p2709_p6), %s3555_s2, 128, %s256_s18, [#allocation9], %s2606_s10, %s2606_s10, %s2607_s13  }
  0x73   : > { %s2608_s20 = smov [#allocation13]   ;;  %s2609_s22 = smov [#allocation16]  }
  0x74   : > { %s281_s21 = sshll.u32 %s2608_s20, 4  ;;  %s308_s24 = sshll.u32 %s2609_s22, 4  ;;  %s282_s21 = int_to_ptr.vmem [resolvable:$true] %s281_s21  ;;  %s2815_s24 = int_to_ptr.vmem [resolvable:$true] %s308_s24 }
  0x75   : > { %s2402_s17 = scalar_lea.hbm %s3539_s4, 256 }
  0x76   : > { %p2403_p1 = scmp.ne.s32.totalorder %s3539_s4, %s2402_s17  ;;  %p2409_p0 = scmp.lt.u32.totalorder %s2402_s17, %s3539_s4 }
  0x78   : > { %p2405_p3 = pnand %p2403_p1, %p2723_p8 }
  0x7a   : > { %p2406_p13 = pneg %p2405_p3 }
  0x7c   : > { %p2411_p2 = pnand %p2409_p0, %p2406_p13 }
  0x7e   : > { %2414 = shalt.err (!%p2411_p2)
}
  0x7f   : > { %s2415_s10 = scalar_lea.vmem %s282_s21, 256  ;;  %p2423_p10 = scmp.lt.s32.totalorder %s282_s21, %s282_s21 }
  0x80   : > { %p2416_p5 = scmp.ne.s32.totalorder %s282_s21, %s2415_s10  ;;  %p2424_p11 = scmp.lt.s32.totalorder %s2415_s10, %s2415_s10 }
  0x82   : > { %p2418_p7 = pnand %p2416_p5, %p2723_p8  ;;  %p2425_p12 = por %p2424_p11, %p2423_p10 }
  0x84   : > { %p2419_p9 = pneg %p2418_p7 }
  0x86   : > { %p2426_p4 = pnand %p2425_p12, %p2419_p9 }
  0x88   : > { %2429 = shalt.err (!%p2426_p4)
}
  0x89   : > { %s3556_s26 = smov 8   ;;  %s3557_s9 = smov 128  }
  0x8a   : > { %2195 = dma.hbm_to_vmem [thread:$0]  (!%p2709_p6), %s3539_s4, 256, %s282_s21, [#allocation12], %s3557_s9, %s3557_s9, %s3556_s26  }
  0x8b   : > { %s2430_s25 = scalar_lea.hbm %s3541_s6, 64 }
  0x8c   : > { %p2431_p1 = scmp.ne.s32.totalorder %s3541_s6, %s2430_s25  ;;  %p2437_p0 = scmp.lt.u32.totalorder %s2430_s25, %s3541_s6 }
  0x8e   : > { %p2433_p3 = pnand %p2431_p1, %p2723_p8 }
  0x90   : > { %p2434_p13 = pneg %p2433_p3 }
  0x92   : > { %p2439_p2 = pnand %p2437_p0, %p2434_p13 }
  0x94   : > { %2442 = shalt.err (!%p2439_p2)
}
  0x95   : > { %s2443_s21 = scalar_lea.vmem %s2815_s24, 64  ;;  %p2451_p10 = scmp.lt.s32.totalorder %s2815_s24, %s2815_s24 }
  0x96   : > { %p2444_p5 = scmp.ne.s32.totalorder %s2815_s24, %s2443_s21  ;;  %p2452_p11 = scmp.lt.s32.totalorder %s2443_s21, %s2443_s21 }
  0x98   : > { %p2446_p7 = pnand %p2444_p5, %p2723_p8  ;;  %p2453_p12 = por %p2452_p11, %p2451_p10 }
  0x9a   : > { %p2447_p9 = pneg %p2446_p7 }
  0x9c   : > { %p2454_p4 = pnand %p2453_p12, %p2447_p9 }
  0x9e   : > { %2457 = shalt.err (!%p2454_p4)
}
  0x9f   : > { %2201 = dma.hbm_to_vmem [thread:$0]  (!%p2709_p6), %s3541_s6, 64, %s2815_s24, [#allocation15]  }
  0xa0   : > { %s2610_s9 = smov [#allocation17]   ;;  %s2458_s22 = scalar_lea.hbm %s3542_s7, 64 }
  0xa1   : > { %s319_s13 = sshll.u32 %s2610_s9, 4  ;;  %p2459_p1 = scmp.ne.s32.totalorder %s3542_s7, %s2458_s22  ;;  %s320_s13 = int_to_ptr.vmem [resolvable:$true] %s319_s13 }
  0xa2   : > { %p2465_p0 = scmp.lt.u32.totalorder %s2458_s22, %s3542_s7 }
  0xa3   : > { %p2461_p3 = pnand %p2459_p1, %p2723_p8 }
  0xa5   : > { %p2462_p13 = pneg %p2461_p3 }
  0xa7   : > { %p2467_p2 = pnand %p2465_p0, %p2462_p13 }
  0xa9   : > { %2470 = shalt.err (!%p2467_p2)
}
  0xaa   : > { %s2471_s24 = scalar_lea.vmem %s320_s13, 64  ;;  %p2479_p10 = scmp.lt.s32.totalorder %s320_s13, %s320_s13 }
  0xab   : > { %p2472_p5 = scmp.ne.s32.totalorder %s320_s13, %s2471_s24  ;;  %p2480_p11 = scmp.lt.s32.totalorder %s2471_s24, %s2471_s24 }
  0xad   : > { %p2474_p7 = pnand %p2472_p5, %p2723_p8  ;;  %p2481_p12 = por %p2480_p11, %p2479_p10 }
  0xaf   : > { %p2475_p9 = pneg %p2474_p7 }
  0xb1   : > { %p2482_p4 = pnand %p2481_p12, %p2475_p9 }
  0xb3   : > { %2485 = shalt.err (!%p2482_p4)
}
  0xb4   : > { %2204 = dma.hbm_to_vmem [thread:$0]  (!%p2709_p6), %s3542_s7, 64, %s320_s13, [#allocation18]  }
  0xb5   : > { %s2096_s23 = sadd.s32 4294967294, %s2598_s30   ;;  %s2881_s15 = sadd.s32 1, %s2598_s30  }
  0xb6   : > { %s35_s10 = sadd.s32 1, %s2594_s29  ;;  %s32_s26 = ssub.s32 %s2598_s30, %s2881_s15 }
  0xb7   : > { %p42_p8 = scmp.ne.s32.totalorder %s2594_s29, %s2590_s28  ;;  %p33_p1 = scmp.eq.s32.totalorder %s32_s26, 0 }
  0xb8   : > { %p43_p3 = scmp.eq.s32.totalorder %s2598_s30, 0  ;;  %p48_p13 = scmp.ne.s32.totalorder %s2590_s28, %s2586_s27 }
  0xb9   : > { %p219_p0 = scmp.eq.s32.totalorder %s2691_s11, 1  ;;  %p3558_p5 = scmp.eq.s32.totalorder %s2691_s11, 0 }
  0xba   : > { %s2893_s9 = scalar_select %p33_p1, %s2594_s29, %s35_s10  }
  0xbb   : > { %p44_p2 = por %p43_p3, %p42_p8  ;;  %p2897_p7 = por %p3558_p5, %p48_p13 }
  0xbc   : > { %p2901_p6 = por %p219_p0, %p42_p8  ;;  %p225_p9 = scmp.eq.s32.totalorder %s2096_s23, 1 }
  0xbd   : > { %p2220_p10 = scmp.lt.s32.totalorder %s2598_s30, 2  ;;  %s330_s20 = sand.u32 1, %s2594_s29  }
  0xbe   : > { %s3560_s13 = scalar_select %p2901_p6, 1, 0 }
  0xbf   : > { %p2907_p11 = por %p225_p9, %p48_p13  ;;  %s2146_s25 = smul.u32 24, %s330_s20 }
  0xc0   : > { %p2911_p12 = pnand %p2220_p10, %p44_p2  ;;  %s2147_s17 = smul.u32 384, %s2598_s30 }
  0xc1   : > { %s3561_s22 = scalar_select %p2907_p11, 1, 0 }
  0xc2   : > { %s2919_s18 = scalar_lea.hbm %s3535_s0, %s2147_s17  ;;  %s334_s21 = scalar_lea.vmem [#allocation5], %s2146_s25 }
  0xc3   : > { %s342_s23 = sshll.u32 %s334_s21, 4  ;;  %s331_s10 = scalar_lea.sflag [#allocation6], %s330_s20  ;;  %s2921_s23 = int_to_ptr.vmem [resolvable:$true] %s342_s23 }
  0xc4   : > { %s2486_s26 = scalar_lea.hbm %s2919_s18, 384  ;;  %p2488_p8 = pneg %p2911_p12 }
  0xc5   : > { %p2487_p4 = scmp.ne.s32.totalorder %s2919_s18, %s2486_s26  ;;  %s2491_s24 = scalar_lea.hbm %s3535_s0, 768 }
  0xc6   : > { %p2492_p13 = scmp.lt.u32.totalorder %s2919_s18, %s3535_s0  ;;  %p2493_p0 = scmp.lt.u32.totalorder %s2491_s24, %s2486_s26 }
  0xc7   : > { %p2489_p1 = pnand %p2488_p8, %p2487_p4  ;;  %p2495_p5 = scmp.lt.u32.totalorder %s2486_s26, %s2919_s18 }
  0xc8   : > { %p2494_p2 = por %p2493_p0, %p2492_p13 }
  0xc9   : > { %p2490_p3 = pneg %p2489_p1 }
  0xca   : > { %p2496_p9 = por %p2495_p5, %p2494_p2 }
  0xcc   : > { %p2497_p10 = pnand %p2496_p9, %p2490_p3 }
  0xce   : > { %2500 = shalt.err (!%p2497_p10)
}
  0xcf   : > { %s2501_s20 = scalar_lea.vmem %s2921_s23, 384  ;;  %s2611_s25 = smov [#allocation5]  }
  0xd0   : > { %p2502_p4 = scmp.ne.s32.totalorder %s2921_s23, %s2501_s20  ;;  %s2506_s21 = sshll.u32 %s2611_s25, 4  ;;  %s2507_s21 = int_to_ptr.vmem [resolvable:$false] %s2506_s21 }
  0xd1   : > { %s2508_s1 = scalar_lea.vmem %s2507_s21, 768  ;;  %p2509_p6 = scmp.lt.s32.totalorder %s2921_s23, %s2507_s21 }
  0xd2   : > { %p2504_p1 = pnand %p2502_p4, %p2488_p8  ;;  %p2510_p13 = scmp.lt.s32.totalorder %s2508_s1, %s2501_s20 }
  0xd4   : > { %p2505_p11 = pneg %p2504_p1  ;;  %p2511_p0 = por %p2510_p13, %p2509_p6 }
  0xd6   : > { %p2512_p2 = pnand %p2511_p0, %p2505_p11 }
  0xd8   : > { %2515 = shalt.err (!%p2512_p2)
}
  0xd9   : > { %2208 = dma.hbm_to_vmem [thread:$0]  (!%p2911_p12), %s2919_s18, 384, %s2921_s23, %s331_s10  }
  0xda   : > { %p3563_p3 = scmp.ne.s32.totalorder %s3551_s12, 0 }
  0xdb   : > { %s2951_s2 = sand.u32 (!%p3563_p3), 1, %s2590_s28  }
  0xdc   : > { %351 = sbr.rel (%p3563_p3) target bundleno = 1772 (0x6ec), region = 52  ;;  %s354_s16 = scalar_lea.sflag (!%p3563_p3), [#allocation6], %s2951_s2 }
  0xdd   : > { %s2148_s26 = smul.u32 (!%p3563_p3), 24, %s2951_s2 }
  0xdf   : > { %s2955_s17 = scalar_lea.vmem (!%p3563_p3), [#allocation5], %s2148_s26 }
  0xe3   : > { %2561 = dma.done.wait (%p2897_p7), %s354_s16, 384  }
  0xe4   : > { %2563 = vsyncadd (%p2897_p7), %s354_s16, 4294966912  ;;  %p3564_p6 = scmp.eq.s32.totalorder %s2691_s11, 0 }
  0xe6   : > { %2565 = dma.done.wait (%p3564_p6), [#allocation9], 176   ;;  %p3565_p11 = pmov %p3564_p6 }
  0xe7   : > { %p3566_p12 = pmov %p3564_p6 }
  0xe8   : > { %2567 = vsyncadd (%p3565_p11), [#allocation9], 4294967120 }
  0xe9   : > { %2569 = dma.done.wait (%p3566_p12), [#allocation12], 512   ;;  %p3567_p8 = pmov %p3564_p6 }
  0xea   : > { %p3568_p5 = pmov %p3564_p6 }
  0xeb   : > { %2571 = vsyncadd (%p3567_p8), [#allocation12], 4294966784 }
  0xec   : > { %2573 = dma.done.wait (%p3568_p5), [#allocation15], 320   ;;  %p3569_p9 = pmov %p3568_p5 }
  0xed   : > { %p3570_p7 = pmov %p3568_p5 }
  0xee   : > { %2575 = vsyncadd (%p3569_p9), [#allocation15], 4294966976 }
  0xef   : > { %2577 = dma.done.wait (%p3570_p7), [#allocation18], 64   ;;  %p3571_p10 = pmov %p3568_p5 }
  0xf0   : > { %v457_v0 = vld [vmem:[%s2955_s17 + $0x8] sm:$0x3f]  ;;  %v458_v2 = vld [vmem:[%s2955_s17 + $0x10] sm:$0x3f]  ;;  %s2612_s12 = smov 126   ;;  %s2613_s19 = smov 127  }
  0xf1   : > { %2579 = vsyncadd (%p3571_p10), [#allocation18], 4294967232  ;;  %v428_v1 = vld [vmem:[%s2955_s17 + $0x8] sm:$0x3f]  ;;  %v463_v3 = vrot.slane %v457_v0, 4  ;;  %v464_v6 = vrot.slane %v458_v2, 4 }
  0xf2   : > { %v434_v4 = vrot.slane %v428_v1, 2  ;;  %v429_v5 = vld [vmem:[%s2955_s17 + $0x10] sm:$0x3f]  ;;  %v2614_v8 = vmov 0.0   ;;  %v456_v9 = vld [vmem:[%s2955_s17] sm:$0x3f] }
  0xf3   : > { %467 = vrot.lane.b32.xlu1 %v463_v3, %s2612_s12  ;;  %v435_v7 = vrot.slane %v429_v5, 2  ;;  %786 = vst [vmem:[#allocation3] sm:$0xff] %v2614_v8  ;;  %790 = vst [vmem:[#allocation3 + $0x18] sm:$0xff] %v2614_v8  ;;  %v427_v10 = vld [vmem:[%s2955_s17] sm:$0x3f]  ;;  %2134 = vmatprep.subr.bf16.mxu1 %v2614_v8  ;;  %v462_v11 = vrot.slane %v456_v9, 4 }
  0xf4   : > { %438 = vrot.lane.b32.xlu0 %v434_v4, %s2613_s19  ;;  %v433_v12 = vrot.slane %v427_v10, 2  ;;  %v487_v13 = vld [vmem:[%s2955_s17 + $0x10] sm:$0x3f]  ;;  %v486_v14 = vld [vmem:[%s2955_s17 + $0x8] sm:$0x3f]  ;;  %vm425_vm0 = vcmask 259072  }
  0xf5   : > { %v493_v15 = vrot.slane %v487_v13, 6  ;;  %v492_v16 = vrot.slane %v486_v14, 6  ;;  %v422_v17 = vld [vmem:[%s2955_s17 + $0x10] sm:$0x3f]  ;;  %v421_v18 = vld [vmem:[%s2955_s17 + $0x8] sm:$0x3f] }
  0xf6   : > { %426 = vst.msk [vmem:[#allocation2 + $0x10] sm:$0x3f] %vm425_vm0, %v422_v17  ;;  %v420_v19 = vld [vmem:[%s2955_s17] sm:$0x3f]  ;;  %424 = vst [vmem:[#allocation2 + $0x8] sm:$0x3f] %v421_v18 }
  0xf7   : > { %469 = vrot.lane.b32.xlu1 %v464_v6, %s2612_s12  ;;  %423 = vst [vmem:[#allocation2] sm:$0x3f] %v420_v19  ;;  %s2615_s14 = smov 110   ;;  %v512_v20 = vld [vmem:[%s2955_s17 + $0x10] sm:$0x3f]  ;;  %s2616_s18 = smov 109  }
  0xf8   : > { %440 = vrot.lane.b32.xlu0 %v435_v7, %s2613_s19  ;;  %v511_v21 = vld [vmem:[%s2955_s17 + $0x8] sm:$0x3f]  ;;  %v533_v22 = vld [vmem:[%s2955_s17 + $0x10] sm:$0x3f]  ;;  %v485_v26 = vld [vmem:[%s2955_s17] sm:$0x3f] }
  0xf9   : > { %v532_v23 = vld [vmem:[%s2955_s17 + $0x8] sm:$0x3f]  ;;  %v539_v24 = vrot.slane %v533_v22, 2  ;;  %s2617_s23 = smov 108   ;;  %v491_v27 = vrot.slane %v485_v26, 6  ;;  %s2618_s10 = smov 92  }
  0xfa   : > { %v538_v25 = vrot.slane %v532_v23, 2  ;;  %v510_v28 = vld [vmem:[%s2955_s17] sm:$0x3f]  ;;  %v559_v29 = vld [vmem:[%s2955_s17 + $0x8] sm:$0x3f]  ;;  %s2619_s24 = smov 91  }
  0xfb   : > { %465 = vrot.lane.b32.xlu1 %v462_v11, %s2612_s12  ;;  %v531_v30 = vld [vmem:[%s2955_s17] sm:$0x3f]  ;;  %v565_v31 = vrot.slane %v559_v29, 4  ;;  %v586_v33 = vld [vmem:[%s2955_s17 + $0x8] sm:$0x3f]  ;;  %s2620_s20 = smov 90  }
  0xfc   : > { %436 = vrot.lane.b32.xlu0 %v433_v12, %s2613_s19  ;;  %v537_v32 = vrot.slane %v531_v30, 2  ;;  %v560_v34 = vld [vmem:[%s2955_s17 + $0x10] sm:$0x3f]  ;;  %v592_v35 = vrot.slane %v586_v33, 6  ;;  %v558_v37 = vld [vmem:[%s2955_s17] sm:$0x3f] }
  0xfd   : > { %v566_v36 = vrot.slane %v560_v34, 4  ;;  %v587_v38 = vld [vmem:[%s2955_s17 + $0x10] sm:$0x3f]  ;;  %v564_v39 = vrot.slane %v558_v37, 4  ;;  %v585_v41 = vld [vmem:[%s2955_s17] sm:$0x3f] }
  0xfe   : > { %v593_v40 = vrot.slane %v587_v38, 6  ;;  %v591_v42 = vrot.slane %v585_v41, 6  ;;  %v609_v43 = vld [vmem:[%s2955_s17] sm:$0x3f]  ;;  %v611_v44 = vld [vmem:[%s2955_s17 + $0x10] sm:$0x3f] }
  0xff   : > { %498 = vrot.lane.b32.xlu1 %v493_v15, %s2615_s14  ;;  %v610_v45 = vld [vmem:[%s2955_s17 + $0x8] sm:$0x3f]  ;;  %vm2621_vm1 = vmmov 0   ;;  %v2622_v46 = vmov 0   ;;  %vm471_vm2 = vcmask 1031168   ;;  %vm479_vm3 = vcmask 261124  }
 0x100   : > { %496 = vrot.lane.b32.xlu0 %v492_v16, %s2615_s14  ;;  %2142 = vmatprep.mubr.msk.bf16.mxu1 %vm2621_vm1, %v2614_v8  ;;  %v665_v47 = vld [vmem:[#allocation11] sm:$0xff]  ;;  %v666_v48 = vld [vmem:[#allocation11 + $0x8] sm:$0xff]  ;;  %vm483_vm4 = vcmask 254976   ;;  %vm442_vm5 = vcmask 1039360   ;;  %vm450_vm6 = vcmask 261126   ;;  %vm454_vm7 = vcmask 257024  }
 0x101   : > { %728 = vmatprep.mubr.bf16.mxu0 %v2622_v46  ;;  %2284 = vset.pattern.permute.xlu0 %v2622_v46  ;;  %vm508_vm8 = vcmask 261122   ;;  %vm500_vm9 = vcmask 900096   ;;  %vm522_vm10 = vcmask 891904   ;;  %vm546_vm11 = vcmask 883712   ;;  %s2623_s25 = smov 19   ;;  %s2149_s21 = smul.u32 12, %s2951_s2 }
 0x102   : > { %2285 = vset.pattern.permute.xlu1 %v2622_v46  ;;  %vm573_vm12 = vcmask 752640   ;;  %vm600_vm13 = vcmask 744448   ;;  %vm621_vm14 = vcmask 736256   ;;  %vm686_vm15 = vcmask 1042432   ;;  %s2150_s1 = smul.u32 192, %s2691_s11  ;;  %s1945_s11 = scalar_lea.sflag [#allocation7], %s2951_s2 }
 0x103   : > { %520 = vrot.lane.b32.xlu1 %v512_v20, %s2616_s18  ;;  %vm788_vm1 = vcmask 703488   ;;  %s417_s26 = scalar_lea.vmem [#allocation19], %s2149_s21  ;;  %p3572_p1 = scmp.ne.s32.totalorder %s3560_s13, 0 }
 0x104   : > { %518 = vrot.lane.b32.xlu0 %v511_v21, %s2616_s18  ;;  %789 = vst.msk [vmem:[#allocation3 + $0x10] sm:$0xff] %vm788_vm1, %v2614_v8  ;;  %792 = vst.msk [vmem:[#allocation3 + $0x28] sm:$0xff] %vm788_vm1, %v2614_v8  ;;  %s1959_s16 = sshll.u32 %s417_s26, 4  ;;  %s3493_s16 = int_to_ptr.vmem [resolvable:$true] %s1959_s16 }
 0x107   : > { %544 = vrot.lane.b32.xlu1 %v539_v24, %s2617_s23 }
 0x108   : > { %542 = vrot.lane.b32.xlu0 %v538_v25, %s2617_s23 }
 0x10b   : > { %516 = vrot.lane.b32.xlu1 %v510_v28, %s2616_s18 }
 0x10c   : > { %494 = vrot.lane.b32.xlu0 %v491_v27, %s2615_s14 }
 0x10f   : > { %569 = vrot.lane.b32.xlu1 %v565_v31, %s2618_s10 }
 0x110   : > { %540 = vrot.lane.b32.xlu0 %v537_v32, %s2617_s23 }
 0x113   : > { %596 = vrot.lane.b32.xlu1 %v592_v35, %s2619_s24 }
 0x114   : > { %571 = vrot.lane.b32.xlu0 %v566_v36, %s2618_s10 }
 0x117   : > { %567 = vrot.lane.b32.xlu1 %v564_v39, %s2618_s10 }
 0x118   : > { %598 = vrot.lane.b32.xlu0 %v593_v40, %s2619_s24 }
 0x11b   : > { %615 = vrot.lane.b32.xlu1 %v609_v43, %s2620_s20 }
 0x11c   : > { %594 = vrot.lane.b32.xlu0 %v591_v42, %s2619_s24 }
 0x11f   : > { %619 = vrot.lane.b32.xlu1 %v611_v44, %s2620_s20 }
 0x120   : > { %617 = vrot.lane.b32.xlu0 %v610_v45, %s2620_s20 }
 0x123   : > { %674 = vperm.xlu1 %2285, %v666_v48  }
 0x124   : > { %669 = vperm.xlu0 %2284, %v665_v47  }
 0x165   : > { %v468_v49 = vpop.permute.xlu1 %467 }
 0x166   : > { %v439_v50 = vpop.permute.xlu0 %438 }
 0x169   : > { %v470_v51 = vpop.permute.xlu1 %469 }
 0x16a   : > { %v441_v52 = vpop.permute.xlu0 %440  ;;  %v473_v53 = vsel %vm471_vm2, %v468_v49, %v470_v51  ;;  %480 = vst.msk [vmem:[#allocation2 + $0x28] sm:$0xf0] %vm479_vm3, %v470_v51 }
 0x16b   : > { %484 = vst.msk [vmem:[#allocation2 + $0x40] sm:$0x3] %vm483_vm4, %v470_v51  ;;  %v444_v54 = vsel %vm442_vm5, %v439_v50, %v441_v52  ;;  %478 = vst [vmem:[#allocation2 + $0x38] ss:$-20 sps:$4 sm:$0xf3] %v473_v53  }
 0x16c   : > { %451 = vst.msk [vmem:[#allocation2 + $0x10] sm:$0xc0] %vm450_vm6, %v441_v52  ;;  %449 = vst [vmem:[#allocation2 + $0x20] ss:$-20 sps:$4 sm:$0xcf] %v444_v54  }
 0x16d   : > { %455 = vst.msk [vmem:[#allocation2 + $0x28] sm:$0xf] %vm454_vm7, %v441_v52  ;;  %v466_v55 = vpop.permute.xlu1 %465 }
 0x16e   : > { %v437_v56 = vpop.permute.xlu0 %436  ;;  %v472_v57 = vsel %vm471_vm2, %v466_v55, %v468_v49 }
 0x16f   : > { %v443_v58 = vsel %vm442_vm5, %v437_v56, %v439_v50  ;;  %477 = vst [vmem:[#allocation2 + $0x30] ss:$-20 sps:$4 sm:$0xf3] %v472_v57  }
 0x170   : > { %448 = vst [vmem:[#allocation2 + $0x18] ss:$-20 sps:$4 sm:$0xcf] %v443_v58  }
 0x171   : > { %v499_v59 = vpop.permute.xlu1 %498 }
 0x172   : > { %v497_v60 = vpop.permute.xlu0 %496  ;;  %509 = vst.msk [vmem:[#allocation2 + $0x40] sm:$0xfc] %vm508_vm8, %v499_v59 }
 0x173   : > { %v634_v61 = vld [vmem:[#allocation2 + $0x10] sm:$0xff]  ;;  %v502_v63 = vsel %vm500_vm9, %v497_v60, %v499_v59  ;;  %v633_v1 = vld [vmem:[#allocation2 + $0x8] sm:$0xff]  ;;  %v636_v2 = vld [vmem:[#allocation2 + $0x20] sm:$0xff] }
 0x174   : > { %v637_v62 = vld [vmem:[#allocation2 + $0x28] sm:$0xff]  ;;  %507 = vst [vmem:[#allocation2 + $0x38] sm:$0xfc] %v502_v63  ;;  %v654_v3 = vpack.c.bf16 %v636_v2, %v633_v1  ;;  %v794_v63 = vlaneseq }
 0x175   : > { %v655_v0 = vpack.c.bf16 %v637_v62, %v634_v61  ;;  %v521_v4 = vpop.permute.xlu1 %520  ;;  %v2286_v61 = vld [vmem:[#allocation10] sm:$0xff]  }
 0x176   : > { %v519_v5 = vpop.permute.xlu0 %518  ;;  %696 = vmatprep.subr.bf16.mxu0 %v654_v3  ;;  %530 = vst.msk [vmem:[#allocation2 + $0x58] sm:$0x3f] %vm425_vm0, %v521_v4  ;;  %v419_v3 = vld [vmem:[#allocation8] sm:$0x7] }
 0x177   : > { %2135 = vmatpush3.bf16.msra.mxu1 %v655_v0  ;;  %v524_v6 = vsel %vm522_vm10, %v519_v5, %v521_v4  ;;  %v632_v7 = vld [vmem:[#allocation2] sm:$0xff]  ;;  %v635_v9 = vld [vmem:[#allocation2 + $0x18] sm:$0xff]  ;;  %v795_v0 = vshrl.u32 %v794_v63, 7 }
 0x178   : > { %2136 = vmatprep.subr.bf16.mxu1 %v2614_v8  ;;  %529 = vst [vmem:[#allocation2 + $0x50] sm:$0x3f] %v524_v6  ;;  %v653_v10 = vpack.c.bf16 %v635_v9, %v632_v7 }
 0x179   : > { %v545_v11 = vpop.permute.xlu1 %544  ;;  %v640_v20 = vld [vmem:[#allocation2 + $0x40] sm:$0xff]  ;;  %v804_v1 = vsub.s32 2, %v795_v0  ;;  %v796_v4 = vsub.s32 0, %v795_v0  ;;  %v800_v7 = vsub.s32 1, %v795_v0 }
 0x17a   : > { %v543_v12 = vpop.permute.xlu0 %542  ;;  %697 = vmatpush1.bf16.msra.mxu0 %v653_v10  ;;  %554 = vst.msk [vmem:[#allocation2 + $0x58] sm:$0xc0] %vm450_vm6, %v545_v11  ;;  %vm847_vm6 = vcmask 416768  }
 0x17b   : > { %557 = vst.msk [vmem:[#allocation2 + $0x70] sm:$0xf] %vm454_vm7, %v545_v11  ;;  %v548_v13 = vsel %vm546_vm11, %v543_v12, %v545_v11  ;;  %v639_v24 = vld [vmem:[#allocation2 + $0x38] sm:$0xff]  ;;  %v3070_v10 = vrot.slane %v419_v3, %v804_v1  ;;  %vm860_vm7 = vcmask 261120  }
 0x17c   : > { %553 = vst [vmem:[#allocation2 + $0x68] ss:$-20 sps:$4 sm:$0xcf] %v548_v13  }
 0x17d   : > { %v517_v14 = vpop.permute.xlu1 %516 }
 0x17e   : > { %v495_v15 = vpop.permute.xlu0 %494  ;;  %v523_v16 = vsel %vm522_vm10, %v517_v14, %v519_v5 }
 0x17f   : > { %v501_v17 = vsel %vm500_vm9, %v495_v15, %v497_v60  ;;  %528 = vst [vmem:[#allocation2 + $0x48] sm:$0x3f] %v523_v16 }
 0x180   : > { %506 = vst [vmem:[#allocation2 + $0x30] sm:$0xfc] %v501_v17  ;;  %v3072_v17 = vrot.slane %v419_v3, %v796_v4 }
 0x181   : > { %v570_v18 = vpop.permute.xlu1 %569  ;;  %v643_v21 = vld [vmem:[#allocation2 + $0x58] sm:$0xff] }
 0x182   : > { %v541_v19 = vpop.permute.xlu0 %540  ;;  %v658_v23 = vpack.c.bf16 %v643_v21, %v640_v20 }
 0x183   : > { %v547_v22 = vsel %vm546_vm11, %v541_v19, %v543_v12  ;;  %v642_v25 = vld [vmem:[#allocation2 + $0x50] sm:$0xff] }
 0x184   : > { %552 = vst [vmem:[#allocation2 + $0x60] ss:$-20 sps:$4 sm:$0xcf] %v547_v22   ;;  %v657_v26 = vpack.c.bf16 %v642_v25, %v639_v24  ;;  %2137 = vmatpush3.bf16.msra.mxu1 %v658_v23  ;;  %v3074_v23 = vrot.slane %v419_v3, %v800_v7 }
 0x185   : > { %v597_v27 = vpop.permute.xlu1 %596  ;;  %2138 = vmatprep.subr.bf16.mxu1 %v2614_v8 }
 0x186   : > { %v572_v28 = vpop.permute.xlu0 %571  ;;  %698 = vmatprep.subr.bf16.mxu0 %v657_v26 }
 0x187   : > { %v575_v29 = vsel %vm573_vm12, %v570_v18, %v572_v28  ;;  %581 = vst.msk [vmem:[#allocation2 + $0x70] sm:$0xf0] %vm479_vm3, %v572_v28  ;;  %v638_v34 = vld [vmem:[#allocation2 + $0x30] sm:$0xff]  ;;  %vm844_vm3 = vcmask 1047704  }
 0x188   : > { %584 = vst.msk [vmem:[#allocation2 + $0x88] sm:$0x3] %vm483_vm4, %v572_v28  ;;  %580 = vst [vmem:[#allocation2 + $0x80] ss:$-20 sps:$4 sm:$0xf3] %v575_v29   ;;  %vm833_vm4 = vcmask 154624  }
 0x189   : > { %v568_v30 = vpop.permute.xlu1 %567 }
 0x18a   : > { %v599_v31 = vpop.permute.xlu0 %598  ;;  %v574_v32 = vsel %vm573_vm12, %v568_v30, %v570_v18 }
 0x18b   : > { %v602_v33 = vsel %vm600_vm13, %v597_v27, %v599_v31  ;;  %608 = vst.msk [vmem:[#allocation2 + $0x88] sm:$0xfc] %vm508_vm8, %v599_v31  ;;  %v641_v35 = vld [vmem:[#allocation2 + $0x48] sm:$0xff]  ;;  %579 = vst [vmem:[#allocation2 + $0x78] ss:$-20 sps:$4 sm:$0xf3] %v574_v32  }
 0x18c   : > { %607 = vst [vmem:[#allocation2 + $0x80] sm:$0xfc] %v602_v33  ;;  %v656_v36 = vpack.c.bf16 %v641_v35, %v638_v34  ;;  %vm1289_vm8 = vcmask 130048  }
 0x18d   : > { %v616_v37 = vpop.permute.xlu1 %615 }
 0x18e   : > { %v595_v38 = vpop.permute.xlu0 %594  ;;  %699 = vmatpush1.bf16.msra.mxu0 %v656_v36  ;;  %v646_v42 = vld [vmem:[#allocation2 + $0x70] sm:$0xff] }
 0x18f   : > { %v601_v39 = vsel %vm600_vm13, %v595_v38, %v597_v27  ;;  %v645_v48 = vld [vmem:[#allocation2 + $0x68] sm:$0xff] }
 0x190   : > { %606 = vst [vmem:[#allocation2 + $0x78] sm:$0xfc] %v601_v39 }
 0x191   : > { %v620_v40 = vpop.permute.xlu1 %619 }
 0x192   : > { %v618_v41 = vpop.permute.xlu0 %617  ;;  %v649_v43 = vld [vmem:[#allocation2 + $0x88] sm:$0xff]  ;;  %629 = vst.msk [vmem:[#allocation2 + $0xa0] sm:$0x3f] %vm425_vm0, %v620_v40  ;;  %v644_v51 = vld [vmem:[#allocation2 + $0x60] sm:$0xff]  ;;  %vm682_vm0 = vcmask 441344  }
 0x193   : > { %v622_v44 = vsel %vm621_vm14, %v616_v37, %v618_v41  ;;  %v623_v45 = vsel %vm621_vm14, %v618_v41, %v620_v40  ;;  %v661_v47 = vpack.c.bf16 %v649_v43, %v646_v42  ;;  %v648_v49 = vld [vmem:[#allocation2 + $0x80] sm:$0xff] }
 0x194   : > { %627 = vst [vmem:[#allocation2 + $0x90] sm:$0x3f] %v622_v44  ;;  %628 = vst [vmem:[#allocation2 + $0x98] sm:$0x3f] %v623_v45  ;;  %v660_v50 = vpack.c.bf16 %v648_v49, %v645_v48 }
 0x195   : > { %2139 = vmatpush3.bf16.msra.mxu1 %v661_v47 }
 0x196   : > { %700 = vmatprep.subr.bf16.mxu0 %v660_v50  ;;  %2140 = vmatprep.subr.bf16.mxu1 %v2614_v8 }
 0x197   : > { %v647_v52 = vld [vmem:[#allocation2 + $0x78] sm:$0xff] }
 0x198   : > { %v659_v53 = vpack.c.bf16 %v647_v52, %v644_v51 }
 0x199   : > { %v652_v54 = vld [vmem:[#allocation2 + $0xa0] sm:$0x3f] }
 0x19a   : > { %701 = vmatpush1.bf16.msra.mxu0 %v659_v53  ;;  %v664_v56 = vpack.c.bf16 %v652_v54, %v652_v54 }
 0x19b   : > { %v651_v55 = vld [vmem:[#allocation2 + $0x98] sm:$0x3f]  ;;  %v650_v57 = vld [vmem:[#allocation2 + $0x90] sm:$0x3f] }
 0x19c   : > { %v663_v58 = vpack.c.bf16 %v651_v55, %v651_v55  ;;  %v662_v59 = vpack.c.bf16 %v650_v57, %v650_v57  ;;  %v694_v60 = vsel %vm686_vm15, %v664_v56, 0  ;;  %v2287_v56 = vld [vmem:[#allocation13 + $0x4] ss:$8 sps:$4 sm:$0xff]   ;;  %v1268_v57 = vld [vmem:[#allocation14] sm:$0xff] }
 0x19d   : > { %2141 = vmatpush3.bf16.msra.mxu1 %v694_v60 }
 0x19e   : > { %2116 = vmatprep.subr.msk.bf16.mxu0 %vm686_vm15, %v663_v58  ;;  %v688_v62 = vsel %vm686_vm15, %v662_v59, 0  ;;  %1336 = vmatprep.subr.bf16.mxu1 %v2622_v46  ;;  %v1269_v58 = vld [vmem:[#allocation14 + $0x8] sm:$0xff] }
 0x19f   : > { %703 = vmatpush1.bf16.msra.mxu0 %v688_v62 }
 0x1a0   : > { %2143 = vmatmul.mubr.msk.bf16.vlgmr.msra.gmra.mrb[0].mxu1 %vm682_vm0, %v2286_v61 }
 0x1a1   : > { %2122 = vmatprep.mubr.msk.bf16.mxu1 %vm1289_vm8, %v2287_v56 }
 0x1a2   : > { %2117 = vmatmul.mubr.msk.bf16.vlgmr.msra.gmra.mrb[0].mxu0 %vm682_vm0, %v2286_v61  ;;  %v675_v6 = vpop.permute.xlu1 %674 }
 0x1a3   : > { %v670_v2 = vpop.permute.xlu0 %669  ;;  %2121 = vmatprep.mubr.msk.bf16.mxu0 %vm1289_vm8, %v2287_v56 }
 0x273   : > { %v773_v5 = vpop.f32.mrb[0].mxu1 }
 0x274   : > { %v774_v9 = vadd.f32 %v773_v5, %v670_v2  ;;  %v2144_v12 = vpop.f32.mrb[1].mxu1 }
 0x275   : > { %v730_v11 = vpop.f32.mrb[0].mxu0  ;;  %v776_v15 = vpop.f32.mrb[2].mxu1 }
 0x276   : > { %v731_v13 = vadd.f32 %v730_v11, %v670_v2  ;;  %v732_v14 = vpop.f32.mrb[1].mxu0  ;;  %v782_v16 = vmax.f32 %v774_v9, 0.0  ;;  %v777_v19 = vadd.f32 %v776_v15, %v675_v6  ;;  %v2145_v21 = vpop.f32.mrb[3].mxu1 }
 0x277   : > { %v733_v18 = vadd.f32 %v732_v14, %v670_v2  ;;  %v734_v20 = vpop.f32.mrb[2].mxu0 }
 0x278   : > { %v780_v22 = vmax.f32 %v731_v13, 0.0  ;;  %v736_v24 = vpop.f32.mrb[3].mxu0  ;;  %v811_v8 = vmul.f32 %v3070_v10, %v782_v16  ;;  %v785_v26 = vmax.f32 %v777_v19, 0.0  ;;  %v735_v30 = vadd.f32 %v734_v20, %v675_v6 }
 0x279   : > { %v781_v25 = vmax.f32 %v733_v18, 0.0  ;;  %v737_v27 = vadd.f32 %v736_v24, %v675_v6 }
 0x27a   : > { %v809_v28 = vmul.f32 %v3072_v17, %v780_v22  ;;  %v814_v29 = vmul.f32 %v3070_v10, %v785_v26  ;;  %825 = vrot.lane.b32.xlu1 %v811_v8, %s2623_s25  ;;  %v783_v33 = vmax.f32 %v735_v30, 0.0 }
 0x27b   : > { %v810_v31 = vmul.f32 %v3074_v23, %v781_v25  ;;  %v784_v32 = vmax.f32 %v737_v27, 0.0 }
 0x27c   : > { %831 = vrot.lane.b32.xlu0 %v814_v29, %s2623_s25  ;;  %v812_v35 = vmul.f32 %v3072_v17, %v783_v33 }
 0x27d   : > { %v813_v34 = vmul.f32 %v3074_v23, %v784_v32 }
 0x27e   : > { %821 = vrot.lane.b32.xlu1 %v809_v28, %s2623_s25 }
 0x280   : > { %823 = vrot.lane.b32.xlu0 %v810_v31, %s2623_s25 }
 0x282   : > { %829 = vrot.lane.b32.xlu1 %v813_v34, %s2623_s25 }
 0x284   : > { %827 = vrot.lane.b32.xlu0 %v812_v35, %s2623_s25 }
 0x2ec   : > { %v826_v36 = vpop.permute.xlu1 %825 }
 0x2ee   : > { %v832_v37 = vpop.permute.xlu0 %831 }
 0x2f0   : > { %v822_v38 = vpop.permute.xlu1 %821 }
 0x2f1   : > { %845 = vst.msk [vmem:[#allocation3] sm:$0xff] %vm844_vm3, %v822_v38 }
 0x2f2   : > { %v824_v39 = vpop.permute.xlu0 %823 }
 0x2f3   : > { %v835_v40 = vsel %vm833_vm4, %v824_v39, %v826_v36  ;;  %v834_v44 = vsel %vm833_vm4, %v822_v38, %v824_v39 }
 0x2f4   : > { %848 = vst.msk [vmem:[#allocation3 + $0x10] sm:$0xff] %vm847_vm6, %v835_v40  ;;  %v830_v41 = vpop.permute.xlu1 %829 }
 0x2f5   : > { %v837_v42 = vsel %vm833_vm4, %v830_v41, %v832_v37 }
 0x2f6   : > { %851 = vst.msk [vmem:[#allocation3 + $0x28] sm:$0xff] %vm847_vm6, %v837_v42  ;;  %v828_v43 = vpop.permute.xlu0 %827 }
 0x2f7   : > { %v3095_v45 = vsel %vm833_vm4, %v828_v43, %v830_v41  ;;  %849 = vst.msk [vmem:[#allocation3 + $0x18] sm:$0xff] %vm844_vm3, %v828_v43 }
 0x2f8   : > { %v3098_v47 = vld [vmem:[#allocation3] sm:$0xff]  ;;  %v1242_v48 = vpack.c.bf16 %v3095_v45, %v834_v44 }
 0x2f9   : > { %877 = vrot.lane.b32.xlu1 %v3098_v47, %s2613_s19 }
 0x2fa   : > { %1293 = vmatprep.subr.bf16.mxu0 %v1242_v48 }
 0x2fb   : > { %v854_v49 = vld [vmem:[#allocation3 + $0x10] sm:$0xff] }
 0x2fc   : > { %881 = vrot.lane.b32.xlu0 %v854_v49, %s2613_s19  ;;  %861 = vst.msk [vmem:[#allocation4 + $0x10] sm:$0xff] %vm860_vm7, %v854_v49 }
 0x2fd   : > { %v857_v50 = vld [vmem:[#allocation3 + $0x28] sm:$0xff]  ;;  %917 = vrot.lane.b32.xlu1 %v3098_v47, %s2612_s12 }
 0x2fe   : > { %v855_v51 = vld [vmem:[#allocation3 + $0x18] sm:$0xff]  ;;  %864 = vst.msk [vmem:[#allocation4 + $0x28] sm:$0xff] %vm860_vm7, %v857_v50 }
 0x2ff   : > { %v1241_v52 = vpack.c.bf16 %v855_v51, %v3098_v47 }
 0x300   : > { %883 = vrot.lane.b32.xlu0 %v855_v51, %s2613_s19 }
 0x301   : > { %957 = vrot.lane.b32.xlu1 %v3098_v47, %s2615_s14  ;;  %1294 = vmatpush1.bf16.msra.mxu0 %v1241_v52 }
 0x303   : > { %v1189_v53 = vld [vmem:[#allocation4 + $0x10] sm:$0xff] }
 0x304   : > { %921 = vrot.lane.b32.xlu0 %v854_v49, %s2612_s12 }
 0x305   : > { %997 = vrot.lane.b32.xlu1 %v3098_v47, %s2616_s18  ;;  %v1192_v54 = vld [vmem:[#allocation4 + $0x28] sm:$0xff] }
 0x306   : > { %v1243_v55 = vpack.c.bf16 %v1192_v54, %v1189_v53 }
 0x308   : > { %923 = vrot.lane.b32.xlu0 %v855_v51, %s2612_s12  ;;  %1337 = vmatpush1.bf16.msra.mxu1 %v1243_v55 }
 0x309   : > { %1037 = vrot.lane.b32.xlu1 %v3098_v47, %s2617_s23  ;;  %1338 = vmatprep.subr.bf16.mxu1 %v2622_v46 }
 0x30c   : > { %961 = vrot.lane.b32.xlu0 %v854_v49, %s2615_s14 }
 0x30d   : > { %1077 = vrot.lane.b32.xlu1 %v3098_v47, %s2618_s10 }
 0x310   : > { %963 = vrot.lane.b32.xlu0 %v855_v51, %s2615_s14 }
 0x311   : > { %1117 = vrot.lane.b32.xlu1 %v3098_v47, %s2619_s24 }
 0x314   : > { %1001 = vrot.lane.b32.xlu0 %v854_v49, %s2616_s18 }
 0x315   : > { %879 = vrot.lane.b32.xlu1 %v834_v44, %s2613_s19 }
 0x318   : > { %1003 = vrot.lane.b32.xlu0 %v855_v51, %s2616_s18 }
 0x319   : > { %919 = vrot.lane.b32.xlu1 %v834_v44, %s2612_s12 }
 0x31c   : > { %1041 = vrot.lane.b32.xlu0 %v854_v49, %s2617_s23 }
 0x31d   : > { %959 = vrot.lane.b32.xlu1 %v834_v44, %s2615_s14 }
 0x320   : > { %1043 = vrot.lane.b32.xlu0 %v855_v51, %s2617_s23 }
 0x321   : > { %999 = vrot.lane.b32.xlu1 %v834_v44, %s2616_s18 }
 0x324   : > { %1081 = vrot.lane.b32.xlu0 %v854_v49, %s2618_s10 }
 0x325   : > { %1039 = vrot.lane.b32.xlu1 %v834_v44, %s2617_s23 }
 0x328   : > { %1083 = vrot.lane.b32.xlu0 %v855_v51, %s2618_s10 }
 0x329   : > { %1079 = vrot.lane.b32.xlu1 %v834_v44, %s2618_s10 }
 0x32c   : > { %1121 = vrot.lane.b32.xlu0 %v854_v49, %s2619_s24 }
 0x32d   : > { %1119 = vrot.lane.b32.xlu1 %v834_v44, %s2619_s24 }
 0x330   : > { %1123 = vrot.lane.b32.xlu0 %v855_v51, %s2619_s24 }
 0x331   : > { %1159 = vrot.lane.b32.xlu1 %v834_v44, %s2620_s20 }
 0x334   : > { %1161 = vrot.lane.b32.xlu0 %v854_v49, %s2620_s20 }
 0x335   : > { %885 = vrot.lane.b32.xlu1 %v3095_v45, %s2613_s19 }
 0x338   : > { %887 = vrot.lane.b32.xlu0 %v857_v50, %s2613_s19 }
 0x339   : > { %925 = vrot.lane.b32.xlu1 %v3095_v45, %s2612_s12 }
 0x33c   : > { %927 = vrot.lane.b32.xlu0 %v857_v50, %s2612_s12 }
 0x33d   : > { %965 = vrot.lane.b32.xlu1 %v3095_v45, %s2615_s14 }
 0x340   : > { %967 = vrot.lane.b32.xlu0 %v857_v50, %s2615_s14 }
 0x341   : > { %1005 = vrot.lane.b32.xlu1 %v3095_v45, %s2616_s18 }
 0x344   : > { %1007 = vrot.lane.b32.xlu0 %v857_v50, %s2616_s18 }
 0x345   : > { %1045 = vrot.lane.b32.xlu1 %v3095_v45, %s2617_s23 }
 0x348   : > { %1047 = vrot.lane.b32.xlu0 %v857_v50, %s2617_s23 }
 0x349   : > { %1085 = vrot.lane.b32.xlu1 %v3095_v45, %s2618_s10 }
 0x34c   : > { %1087 = vrot.lane.b32.xlu0 %v857_v50, %s2618_s10 }
 0x34d   : > { %1125 = vrot.lane.b32.xlu1 %v3095_v45, %s2619_s24 }
 0x350   : > { %1127 = vrot.lane.b32.xlu0 %v857_v50, %s2619_s24 }
 0x351   : > { %1165 = vrot.lane.b32.xlu1 %v3095_v45, %s2620_s20 }
 0x354   : > { %1167 = vrot.lane.b32.xlu0 %v857_v50, %s2620_s20 }
 0x355   : > { %1157 = vrot.lane.b32.xlu1 %v3098_v47, %s2620_s20 }
 0x358   : > { %1163 = vrot.lane.b32.xlu0 %v855_v51, %s2620_s20 }
 0x359   : > { %1272 = vperm.xlu1 %2285, %v1268_v57  }
 0x35c   : > { %1277 = vperm.xlu0 %2284, %v1269_v58  }
 0x36b   : > { %v878_v59 = vpop.permute.xlu1 %877 }
 0x36e   : > { %v882_v60 = vpop.permute.xlu0 %881 }
 0x36f   : > { %901 = vst.msk [vmem:[#allocation4 + $0x40] sm:$0xff] %vm860_vm7, %v882_v60  ;;  %v918_v61 = vpop.permute.xlu1 %917 }
 0x372   : > { %v884_v62 = vpop.permute.xlu0 %883 }
 0x373   : > { %v3172_v63 = vpop.permute.xlu1 %957 }
 0x376   : > { %v922_v0 = vpop.permute.xlu0 %921  ;;  %v1195_v48 = vld [vmem:[#allocation4 + $0x40] sm:$0xff] }
 0x377   : > { %941 = vst.msk [vmem:[#allocation4 + $0x70] sm:$0xff] %vm860_vm7, %v922_v0  ;;  %v3175_v1 = vpop.permute.xlu1 %997 }
 0x37a   : > { %v924_v2 = vpop.permute.xlu0 %923 }
 0x37b   : > { %v3177_v3 = vpop.permute.xlu1 %1037 }
 0x37e   : > { %v962_v4 = vpop.permute.xlu0 %961 }
 0x37f   : > { %981 = vst.msk [vmem:[#allocation4 + $0xa0] sm:$0xff] %vm860_vm7, %v962_v4  ;;  %v3180_v5 = vpop.permute.xlu1 %1077 }
 0x382   : > { %v964_v6 = vpop.permute.xlu0 %963 }
 0x383   : > { %v3182_v7 = vpop.permute.xlu1 %1117 }
 0x386   : > { %v3184_v9 = vpop.permute.xlu0 %1001 }
 0x387   : > { %1021 = vst.msk [vmem:[#allocation4 + $0xd0] sm:$0xff] %vm860_vm7, %v3184_v9  ;;  %v880_v11 = vpop.permute.xlu1 %879 }
 0x388   : > { %v890_v31 = vsel %vm442_vm5, %v880_v11, %v882_v60  ;;  %v889_v34 = vsel %vm442_vm5, %v878_v59, %v880_v11  ;;  %v1201_v59 = vld [vmem:[#allocation4 + $0x70] sm:$0xff] }
 0x38a   : > { %v1004_v12 = vpop.permute.xlu0 %1003 }
 0x38b   : > { %v920_v13 = vpop.permute.xlu1 %919 }
 0x38c   : > { %v930_v39 = vsel %vm471_vm2, %v920_v13, %v922_v0  ;;  %v929_v42 = vsel %vm471_vm2, %v918_v61, %v920_v13 }
 0x38e   : > { %v3188_v14 = vpop.permute.xlu0 %1041 }
 0x38f   : > { %1061 = vst.msk [vmem:[#allocation4 + $0x100] sm:$0xff] %vm860_vm7, %v3188_v14  ;;  %v960_v15 = vpop.permute.xlu1 %959 }
 0x390   : > { %v970_v50 = vsel %vm500_vm9, %v960_v15, %v962_v4  ;;  %v969_v54 = vsel %vm500_vm9, %v3172_v63, %v960_v15 }
 0x392   : > { %v3192_v16 = vpop.permute.xlu0 %1043 }
 0x393   : > { %v1000_v18 = vpop.permute.xlu1 %999 }
 0x394   : > { %v1010_v61 = vsel %vm522_vm10, %v1000_v18, %v3184_v9  ;;  %v1207_v9 = vld [vmem:[#allocation4 + $0xa0] sm:$0xff] }
 0x396   : > { %v3194_v19 = vpop.permute.xlu0 %1081 }
 0x397   : > { %1101 = vst.msk [vmem:[#allocation4 + $0x130] sm:$0xff] %vm860_vm7, %v3194_v19  ;;  %v3198_v20 = vpop.permute.xlu1 %1039 }
 0x398   : > { %v1050_v15 = vsel %vm546_vm11, %v3198_v20, %v3188_v14  ;;  %v1213_v14 = vld [vmem:[#allocation4 + $0xd0] sm:$0xff] }
 0x39a   : > { %v3200_v21 = vpop.permute.xlu0 %1083 }
 0x39b   : > { %v3202_v22 = vpop.permute.xlu1 %1079 }
 0x39e   : > { %v3204_v24 = vpop.permute.xlu0 %1121 }
 0x39f   : > { %1141 = vst.msk [vmem:[#allocation4 + $0x160] sm:$0xff] %vm860_vm7, %v3204_v24  ;;  %v3208_v8 = vpop.permute.xlu1 %1119 }
 0x3a2   : > { %v3210_v25 = vpop.permute.xlu0 %1123 }
 0x3a3   : > { %v3212_v26 = vpop.permute.xlu1 %1159 }
 0x3a6   : > { %v3214_v27 = vpop.permute.xlu0 %1161 }
 0x3a7   : > { %1181 = vst.msk [vmem:[#allocation4 + $0x190] sm:$0xff] %vm860_vm7, %v3214_v27  ;;  %v886_v28 = vpop.permute.xlu1 %885 }
 0x3a8   : > { %v891_v29 = vsel %vm442_vm5, %v884_v62, %v886_v28 }
 0x3a9   : > { %v1244_v36 = vpack.c.bf16 %v891_v29, %v889_v34  ;;  %v1090_v34 = vsel %vm573_vm12, %v3202_v22, %v3194_v19  ;;  %v1219_v19 = vld [vmem:[#allocation4 + $0x100] sm:$0xff] }
 0x3aa   : > { %v888_v30 = vpop.permute.xlu0 %887 }
 0x3ab   : > { %v892_v32 = vsel %vm442_vm5, %v886_v28, %v888_v30  ;;  %904 = vst.msk [vmem:[#allocation4 + $0x58] sm:$0xff] %vm860_vm7, %v888_v30  ;;  %v926_v33 = vpop.permute.xlu1 %925 }
 0x3ac   : > { %v1245_v35 = vpack.c.bf16 %v892_v32, %v890_v31  ;;  %v931_v37 = vsel %vm471_vm2, %v924_v2, %v926_v33  ;;  %v1009_v2 = vsel %vm522_vm10, %v3175_v1, %v1000_v18 }
 0x3ad   : > { %v1247_v44 = vpack.c.bf16 %v931_v37, %v929_v42 }
 0x3ae   : > { %v928_v38 = vpop.permute.xlu0 %927  ;;  %1295 = vmatprep.subr.bf16.mxu0 %v1245_v35 }
 0x3af   : > { %v932_v40 = vsel %vm471_vm2, %v926_v33, %v928_v38  ;;  %944 = vst.msk [vmem:[#allocation4 + $0x88] sm:$0xff] %vm860_vm7, %v928_v38  ;;  %v966_v41 = vpop.permute.xlu1 %965  ;;  %1296 = vmatpush1.bf16.msra.mxu0 %v1244_v36 }
 0x3b0   : > { %v1248_v43 = vpack.c.bf16 %v932_v40, %v930_v39  ;;  %v971_v45 = vsel %vm500_vm9, %v964_v6, %v966_v41 }
 0x3b1   : > { %v1250_v56 = vpack.c.bf16 %v971_v45, %v969_v54 }
 0x3b2   : > { %v968_v47 = vpop.permute.xlu0 %967  ;;  %v1198_v49 = vld [vmem:[#allocation4 + $0x58] sm:$0xff]  ;;  %1297 = vmatprep.subr.bf16.mxu0 %v1248_v43 }
 0x3b3   : > { %v972_v51 = vsel %vm500_vm9, %v966_v41, %v968_v47  ;;  %984 = vst.msk [vmem:[#allocation4 + $0xb8] sm:$0xff] %vm860_vm7, %v968_v47  ;;  %v1006_v52 = vpop.permute.xlu1 %1005  ;;  %v1246_v53 = vpack.c.bf16 %v1198_v49, %v1195_v48  ;;  %1298 = vmatpush1.bf16.msra.mxu0 %v1247_v44  ;;  %v1130_v41 = vsel %vm600_vm13, %v3208_v8, %v3204_v24  ;;  %v1225_v47 = vld [vmem:[#allocation4 + $0x130] sm:$0xff] }
 0x3b4   : > { %v1251_v55 = vpack.c.bf16 %v972_v51, %v970_v50  ;;  %v1011_v57 = vsel %vm522_vm10, %v1004_v12, %v1006_v52  ;;  %v1170_v24 = vsel %vm621_vm14, %v3212_v26, %v3214_v27 }
 0x3b5   : > { %1339 = vmatpush1.bf16.msra.mxu1 %v1246_v53  ;;  %v1253_v6 = vpack.c.bf16 %v1011_v57, %v1009_v2  ;;  %v2289_v57 = vld [vmem:[#allocation13] ss:$8 sps:$4 sm:$0xff]  }
 0x3b6   : > { %v1008_v58 = vpop.permute.xlu0 %1007  ;;  %1340 = vmatprep.subr.bf16.mxu1 %v2622_v46  ;;  %v1204_v60 = vld [vmem:[#allocation4 + $0x88] sm:$0xff]  ;;  %1299 = vmatprep.subr.bf16.mxu0 %v1251_v55 }
 0x3b7   : > { %v1012_v62 = vsel %vm522_vm10, %v1006_v52, %v1008_v58  ;;  %1024 = vst.msk [vmem:[#allocation4 + $0xe8] sm:$0xff] %vm860_vm7, %v1008_v58  ;;  %v1046_v0 = vpop.permute.xlu1 %1045  ;;  %v1249_v63 = vpack.c.bf16 %v1204_v60, %v1201_v59  ;;  %1300 = vmatpush1.bf16.msra.mxu0 %v1250_v56  ;;  %v1231_v52 = vld [vmem:[#allocation4 + $0x160] sm:$0xff]  ;;  %v1237_v58 = vld [vmem:[#allocation4 + $0x190] sm:$0xff] }
 0x3b8   : > { %v1254_v4 = vpack.c.bf16 %v1012_v62, %v1010_v61  ;;  %v1051_v11 = vsel %vm546_vm11, %v3192_v16, %v1046_v0  ;;  %v1049_v16 = vsel %vm546_vm11, %v3177_v3, %v3198_v20 }
 0x3b9   : > { %1341 = vmatpush1.bf16.msra.mxu1 %v1249_v63  ;;  %v1256_v30 = vpack.c.bf16 %v1051_v11, %v1049_v16 }
 0x3ba   : > { %v1048_v12 = vpop.permute.xlu0 %1047  ;;  %1342 = vmatprep.subr.bf16.mxu1 %v2622_v46  ;;  %v1210_v13 = vld [vmem:[#allocation4 + $0xb8] sm:$0xff]  ;;  %1301 = vmatprep.subr.bf16.mxu0 %v1254_v4 }
 0x3bb   : > { %v1052_v28 = vsel %vm546_vm11, %v1046_v0, %v1048_v12  ;;  %1064 = vst.msk [vmem:[#allocation4 + $0x118] sm:$0xff] %vm860_vm7, %v1048_v12  ;;  %v1086_v1 = vpop.permute.xlu1 %1085  ;;  %v1252_v18 = vpack.c.bf16 %v1210_v13, %v1207_v9  ;;  %1302 = vmatpush1.bf16.msra.mxu0 %v1253_v6 }
 0x3bc   : > { %v1257_v29 = vpack.c.bf16 %v1052_v28, %v1050_v15  ;;  %v1091_v31 = vsel %vm573_vm12, %v3200_v21, %v1086_v1  ;;  %v1089_v21 = vsel %vm573_vm12, %v3180_v5, %v3202_v22 }
 0x3bd   : > { %1343 = vmatpush1.bf16.msra.mxu1 %v1252_v18  ;;  %v1259_v37 = vpack.c.bf16 %v1091_v31, %v1089_v21 }
 0x3be   : > { %v1088_v32 = vpop.permute.xlu0 %1087  ;;  %1344 = vmatprep.subr.bf16.mxu1 %v2622_v46  ;;  %v1216_v33 = vld [vmem:[#allocation4 + $0xe8] sm:$0xff]  ;;  %1303 = vmatprep.subr.bf16.mxu0 %v1257_v29 }
 0x3bf   : > { %v1092_v35 = vsel %vm573_vm12, %v1086_v1, %v1088_v32  ;;  %1104 = vst.msk [vmem:[#allocation4 + $0x148] sm:$0xff] %vm860_vm7, %v1088_v32  ;;  %v1126_v3 = vpop.permute.xlu1 %1125  ;;  %v1255_v20 = vpack.c.bf16 %v1216_v33, %v1213_v14  ;;  %1304 = vmatpush1.bf16.msra.mxu0 %v1256_v30 }
 0x3c0   : > { %v1260_v36 = vpack.c.bf16 %v1092_v35, %v1090_v34  ;;  %v1131_v38 = vsel %vm600_vm13, %v3210_v25, %v1126_v3  ;;  %v1129_v25 = vsel %vm600_vm13, %v3182_v7, %v3208_v8 }
 0x3c1   : > { %1345 = vmatpush1.bf16.msra.mxu1 %v1255_v20  ;;  %v1262_v44 = vpack.c.bf16 %v1131_v38, %v1129_v25 }
 0x3c2   : > { %v1128_v39 = vpop.permute.xlu0 %1127  ;;  %1346 = vmatprep.subr.bf16.mxu1 %v2622_v46  ;;  %v1222_v40 = vld [vmem:[#allocation4 + $0x118] sm:$0xff]  ;;  %1305 = vmatprep.subr.bf16.mxu0 %v1260_v36 }
 0x3c3   : > { %v1132_v42 = vsel %vm600_vm13, %v1126_v3, %v1128_v39  ;;  %1144 = vst.msk [vmem:[#allocation4 + $0x178] sm:$0xff] %vm860_vm7, %v1128_v39  ;;  %v1166_v5 = vpop.permute.xlu1 %1165  ;;  %v1258_v22 = vpack.c.bf16 %v1222_v40, %v1219_v19  ;;  %1306 = vmatpush1.bf16.msra.mxu0 %v1259_v37 }
 0x3c4   : > { %v1263_v43 = vpack.c.bf16 %v1132_v42, %v1130_v41 }
 0x3c5   : > { %1347 = vmatpush1.bf16.msra.mxu1 %v1258_v22 }
 0x3c6   : > { %v1168_v45 = vpop.permute.xlu0 %1167  ;;  %1348 = vmatprep.subr.bf16.mxu1 %v2622_v46  ;;  %v1228_v48 = vld [vmem:[#allocation4 + $0x148] sm:$0xff]  ;;  %1307 = vmatprep.subr.bf16.mxu0 %v1263_v43 }
 0x3c7   : > { %v1172_v49 = vsel %vm621_vm14, %v1166_v5, %v1168_v45  ;;  %1184 = vst.msk [vmem:[#allocation4 + $0x1a8] sm:$0xff] %vm860_vm7, %v1168_v45  ;;  %v1261_v50 = vpack.c.bf16 %v1228_v48, %v1225_v47  ;;  %1308 = vmatpush1.bf16.msra.mxu0 %v1262_v44  ;;  %v1158_v7 = vpop.permute.xlu1 %1157 }
 0x3c8   : > { %v1266_v8 = vpack.c.bf16 %v1172_v49, %v1170_v24  ;;  %v1169_v54 = vsel %vm621_vm14, %v1158_v7, %v3212_v26  ;;  %v3373_v24 = vld.sshfl [vmem:[#allocation16] sm:$0x33 pattern:$0x76325410] }
 0x3c9   : > { %1349 = vmatpush1.bf16.msra.mxu1 %v1261_v50  ;;  %v1851_v49 = vcombine.high %v3373_v24, %v3373_v24  ;;  %v1837_v50 = vld [vmem:[#allocation17] sm:$0x7] }
 0x3ca   : > { %v1164_v51 = vpop.permute.xlu0 %1163  ;;  %1350 = vmatprep.subr.bf16.mxu1 %v2622_v46  ;;  %v1234_v53 = vld [vmem:[#allocation4 + $0x178] sm:$0xff]  ;;  %1309 = vmatprep.subr.bf16.mxu0 %v1266_v8 }
 0x3cb   : > { %v1171_v27 = vsel %vm621_vm14, %v1164_v51, %v1166_v5  ;;  %v1264_v55 = vpack.c.bf16 %v1234_v53, %v1231_v52 }
 0x3cc   : > { %v1265_v56 = vpack.c.bf16 %v1171_v27, %v1169_v54 }
 0x3cd   : > { %1351 = vmatpush1.bf16.msra.mxu1 %v1264_v55 }
 0x3ce   : > { %1352 = vmatprep.subr.bf16.mxu1 %v2622_v46  ;;  %v1240_v59 = vld [vmem:[#allocation4 + $0x1a8] sm:$0xff]  ;;  %1310 = vmatpush1.bf16.msra.mxu0 %v1265_v56 }
 0x3cf   : > { %v1267_v60 = vpack.c.bf16 %v1240_v59, %v1237_v58 }
 0x3d1   : > { %1353 = vmatpush1.bf16.msra.mxu1 %v1267_v60  ;;  %1326 = vmatmul.mubr.bf16.vlgmr.msra.gmra.mrb[4].mxu0 %v2289_v57 }
 0x3d2   : > { %1897 = vmatprep.subr.bf16.mxu1 %v2622_v46  ;;  %2124 = vmatprep.mubr.msk.bf16.mxu0 %vm1289_vm8, %v1851_v49 }
 0x3d4   : > { %1369 = vmatmul.mubr.bf16.vlgmr.msra.gmra.mrb[4].mxu1 %v2289_v57 }
 0x3d5   : > { %2125 = vmatprep.mubr.msk.bf16.mxu1 %vm1289_vm8, %v1851_v49 }
 0x3d8   : > { %v1273_v26 = vpop.permute.xlu1 %1272 }
 0x3db   : > { %v1278_v12 = vpop.permute.xlu0 %1277 }
 0x4a4   : > { %v1327_v61 = vpop.f32.mrb[4].mxu0 }
 0x4a5   : > { %v1329_v62 = vpop.f32.mrb[5].mxu0  ;;  %v1328_v11 = vadd.f32 %v1327_v61, %v1273_v26 }
 0x4a6   : > { %v1331_v0 = vpop.f32.mrb[6].mxu0  ;;  %v1330_v1 = vadd.f32 %v1329_v62, %v1273_v26 }
 0x4a7   : > { %v1370_v63 = vpop.f32.mrb[4].mxu1  ;;  %v1333_v2 = vpop.f32.mrb[7].mxu0  ;;  %v1377_v29 = vmax.f32 %v1328_v11, 0.0  ;;  %v1332_v14 = vadd.f32 %v1331_v0, %v1278_v12 }
 0x4a8   : > { %v1371_v4 = vadd.f32 %v1370_v63, %v1273_v26  ;;  %v1372_v6 = vpop.f32.mrb[5].mxu1  ;;  %v1334_v30 = vadd.f32 %v1333_v2, %v1278_v12  ;;  %v1378_v32 = vmax.f32 %v1330_v1, 0.0 }
 0x4a9   : > { %v1373_v9 = vpop.f32.mrb[6].mxu1  ;;  %v1383_v33 = vmul.f32 %v1377_v29, %v3072_v17  ;;  %v1380_v3 = vmax.f32 %v1332_v14, 0.0 }
 0x4aa   : > { %v1379_v13 = vmax.f32 %v1371_v4, 0.0  ;;  %v1374_v15 = vadd.f32 %v1373_v9, %v1278_v12  ;;  %v1375_v28 = vpop.f32.mrb[7].mxu1  ;;  %v1381_v34 = vmax.f32 %v1334_v30, 0.0  ;;  %v1384_v35 = vmul.f32 %v1378_v32, %v3074_v23 }
 0x4ac   : > { %v1385_v18 = vmul.f32 %v1379_v13, %v3070_v10  ;;  %v1382_v16 = vmax.f32 %v1374_v15, 0.0  ;;  %v1387_v20 = vmul.f32 %v1381_v34, %v3074_v23 }
 0x4ae   : > { %v1388_v31 = vmul.f32 %v1382_v16, %v3070_v10  ;;  %1399 = vrot.lane.b32.xlu1 %v1385_v18, %s2623_s25  ;;  %v1386_v10 = vmul.f32 %v1380_v3, %v3072_v17 }
 0x4b0   : > { %1405 = vrot.lane.b32.xlu0 %v1388_v31, %s2623_s25 }
 0x4b2   : > { %1395 = vrot.lane.b32.xlu1 %v1383_v33, %s2623_s25 }
 0x4b4   : > { %1397 = vrot.lane.b32.xlu0 %v1384_v35, %s2623_s25 }
 0x4b6   : > { %1403 = vrot.lane.b32.xlu1 %v1387_v20, %s2623_s25 }
 0x4b8   : > { %1401 = vrot.lane.b32.xlu0 %v1386_v10, %s2623_s25 }
 0x520   : > { %v1400_v21 = vpop.permute.xlu1 %1399 }
 0x522   : > { %v1406_v36 = vpop.permute.xlu0 %1405 }
 0x524   : > { %v1396_v37 = vpop.permute.xlu1 %1395 }
 0x525   : > { %1417 = vst.msk [vmem:[#allocation3] sm:$0xff] %vm844_vm3, %v1396_v37 }
 0x526   : > { %v1398_v38 = vpop.permute.xlu0 %1397 }
 0x527   : > { %v1407_v39 = vsel %vm833_vm4, %v1396_v37, %v1398_v38  ;;  %v1408_v19 = vsel %vm833_vm4, %v1398_v38, %v1400_v21 }
 0x528   : > { %1419 = vst.msk [vmem:[#allocation3 + $0x10] sm:$0xff] %vm847_vm6, %v1408_v19  ;;  %v1404_v23 = vpop.permute.xlu1 %1403 }
 0x529   : > { %v1410_v40 = vsel %vm833_vm4, %v1404_v23, %v1406_v36 }
 0x52a   : > { %1422 = vst.msk [vmem:[#allocation3 + $0x28] sm:$0xff] %vm847_vm6, %v1410_v40  ;;  %v1402_v17 = vpop.permute.xlu0 %1401 }
 0x52b   : > { %v3306_v41 = vsel %vm833_vm4, %v1402_v17, %v1404_v23  ;;  %1420 = vst.msk [vmem:[#allocation3 + $0x18] sm:$0xff] %vm844_vm3, %v1402_v17 }
 0x52c   : > { %v3309_v42 = vld [vmem:[#allocation3] sm:$0xff]  ;;  %v1811_v5 = vpack.c.bf16 %v3306_v41, %v1407_v39 }
 0x52d   : > { %1447 = vrot.lane.b32.xlu1 %v3309_v42, %s2613_s19 }
 0x52e   : > { %1856 = vmatprep.subr.bf16.mxu0 %v1811_v5 }
 0x52f   : > { %v1437_v22 = vld [vmem:[#allocation3 + $0x10] sm:$0xff] }
 0x530   : > { %1451 = vrot.lane.b32.xlu0 %v1437_v22, %s2613_s19  ;;  %1431 = vst.msk [vmem:[#allocation4 + $0x10] sm:$0xff] %vm860_vm7, %v1437_v22 }
 0x531   : > { %1487 = vrot.lane.b32.xlu1 %v3309_v42, %s2612_s12  ;;  %v1428_v25 = vld [vmem:[#allocation3 + $0x28] sm:$0xff] }
 0x532   : > { %v1438_v43 = vld [vmem:[#allocation3 + $0x18] sm:$0xff]  ;;  %1434 = vst.msk [vmem:[#allocation4 + $0x28] sm:$0xff] %vm860_vm7, %v1428_v25 }
 0x533   : > { %v1810_v44 = vpack.c.bf16 %v1438_v43, %v3309_v42 }
 0x534   : > { %1453 = vrot.lane.b32.xlu0 %v1438_v43, %s2613_s19 }
 0x535   : > { %1527 = vrot.lane.b32.xlu1 %v3309_v42, %s2615_s14  ;;  %1857 = vmatpush1.bf16.msra.mxu0 %v1810_v44 }
 0x537   : > { %v1758_v45 = vld [vmem:[#allocation4 + $0x10] sm:$0xff] }
 0x538   : > { %1491 = vrot.lane.b32.xlu0 %v1437_v22, %s2612_s12 }
 0x539   : > { %1567 = vrot.lane.b32.xlu1 %v3309_v42, %s2616_s18  ;;  %v1761_v47 = vld [vmem:[#allocation4 + $0x28] sm:$0xff] }
 0x53a   : > { %v1812_v48 = vpack.c.bf16 %v1761_v47, %v1758_v45 }
 0x53c   : > { %1493 = vrot.lane.b32.xlu0 %v1438_v43, %s2612_s12  ;;  %1898 = vmatpush1.bf16.msra.mxu1 %v1812_v48 }
 0x53d   : > { %1607 = vrot.lane.b32.xlu1 %v3309_v42, %s2617_s23  ;;  %1899 = vmatprep.subr.bf16.mxu1 %v2622_v46 }
 0x540   : > { %1531 = vrot.lane.b32.xlu0 %v1437_v22, %s2615_s14 }
 0x541   : > { %1647 = vrot.lane.b32.xlu1 %v3309_v42, %s2618_s10 }
 0x544   : > { %1533 = vrot.lane.b32.xlu0 %v1438_v43, %s2615_s14 }
 0x545   : > { %1687 = vrot.lane.b32.xlu1 %v3309_v42, %s2619_s24 }
 0x548   : > { %1571 = vrot.lane.b32.xlu0 %v1437_v22, %s2616_s18 }
 0x549   : > { %1449 = vrot.lane.b32.xlu1 %v1407_v39, %s2613_s19 }
 0x54c   : > { %1573 = vrot.lane.b32.xlu0 %v1438_v43, %s2616_s18 }
 0x54d   : > { %1489 = vrot.lane.b32.xlu1 %v1407_v39, %s2612_s12 }
 0x550   : > { %1611 = vrot.lane.b32.xlu0 %v1437_v22, %s2617_s23 }
 0x551   : > { %1529 = vrot.lane.b32.xlu1 %v1407_v39, %s2615_s14 }
 0x554   : > { %1613 = vrot.lane.b32.xlu0 %v1438_v43, %s2617_s23 }
 0x555   : > { %1569 = vrot.lane.b32.xlu1 %v1407_v39, %s2616_s18 }
 0x558   : > { %1651 = vrot.lane.b32.xlu0 %v1437_v22, %s2618_s10 }
 0x559   : > { %1609 = vrot.lane.b32.xlu1 %v1407_v39, %s2617_s23 }
 0x55c   : > { %1653 = vrot.lane.b32.xlu0 %v1438_v43, %s2618_s10 }
 0x55d   : > { %1649 = vrot.lane.b32.xlu1 %v1407_v39, %s2618_s10 }
 0x560   : > { %1691 = vrot.lane.b32.xlu0 %v1437_v22, %s2619_s24 }
 0x561   : > { %1689 = vrot.lane.b32.xlu1 %v1407_v39, %s2619_s24 }
 0x564   : > { %1693 = vrot.lane.b32.xlu0 %v1438_v43, %s2619_s24 }
 0x565   : > { %1729 = vrot.lane.b32.xlu1 %v1407_v39, %s2620_s20 }
 0x568   : > { %1731 = vrot.lane.b32.xlu0 %v1437_v22, %s2620_s20 }
 0x569   : > { %1455 = vrot.lane.b32.xlu1 %v3306_v41, %s2613_s19 }
 0x56c   : > { %1457 = vrot.lane.b32.xlu0 %v1428_v25, %s2613_s19  ;;  %s3491_s19 = scalar_lea.hbm %s3543_s8, %s2150_s1 }
 0x56d   : > { %1495 = vrot.lane.b32.xlu1 %v3306_v41, %s2612_s12 }
 0x570   : > { %1497 = vrot.lane.b32.xlu0 %v1428_v25, %s2612_s12 }
 0x571   : > { %1535 = vrot.lane.b32.xlu1 %v3306_v41, %s2615_s14 }
 0x574   : > { %1537 = vrot.lane.b32.xlu0 %v1428_v25, %s2615_s14  ;;  %s2516_s14 = scalar_lea.vmem %s3493_s16, 192 }
 0x575   : > { %1575 = vrot.lane.b32.xlu1 %v3306_v41, %s2616_s18  ;;  %p2517_p4 = scmp.ne.s32.totalorder %s3493_s16, %s2516_s14 }
 0x577   : > { %p2518_p13 = pnand %p2517_p4, %p3572_p1 }
 0x578   : > { %1577 = vrot.lane.b32.xlu0 %v1428_v25, %s2616_s18  ;;  %s2624_s18 = smov [#allocation19]  }
 0x579   : > { %1615 = vrot.lane.b32.xlu1 %v3306_v41, %s2617_s23  ;;  %p2519_p0 = pneg %p2518_p13 }
 0x57c   : > { %1617 = vrot.lane.b32.xlu0 %v1428_v25, %s2617_s23  ;;  %s2520_s23 = sshll.u32 %s2624_s18, 4  ;;  %s2521_s23 = int_to_ptr.vmem [resolvable:$false] %s2520_s23 }
 0x57d   : > { %1655 = vrot.lane.b32.xlu1 %v3306_v41, %s2618_s10  ;;  %p2523_p2 = scmp.lt.s32.totalorder %s3493_s16, %s2521_s23 }
 0x580   : > { %1657 = vrot.lane.b32.xlu0 %v1428_v25, %s2618_s10  ;;  %s2522_s10 = scalar_lea.vmem %s2521_s23, 384 }
 0x581   : > { %1695 = vrot.lane.b32.xlu1 %v3306_v41, %s2619_s24  ;;  %p2524_p3 = scmp.lt.s32.totalorder %s2522_s10, %s2516_s14 }
 0x583   : > { %p2525_p6 = por %p2524_p3, %p2523_p2 }
 0x584   : > { %1697 = vrot.lane.b32.xlu0 %v1428_v25, %s2619_s24 }
 0x585   : > { %1735 = vrot.lane.b32.xlu1 %v3306_v41, %s2620_s20  ;;  %p2526_p11 = pnand %p2525_p6, %p2519_p0 }
 0x588   : > { %1737 = vrot.lane.b32.xlu0 %v1428_v25, %s2620_s20 }
 0x589   : > { %1727 = vrot.lane.b32.xlu1 %v3309_v42, %s2620_s20 }
 0x58c   : > { %1733 = vrot.lane.b32.xlu0 %v1438_v43, %s2620_s20 }
 0x58d   : > { %1840 = vperm.xlu1 %2285, %v1837_v50  }
 0x59f   : > { %v1448_v7 = vpop.permute.xlu1 %1447 }
 0x5a2   : > { %v1452_v8 = vpop.permute.xlu0 %1451 }
 0x5a3   : > { %1471 = vst.msk [vmem:[#allocation4 + $0x40] sm:$0xff] %vm860_vm7, %v1452_v8  ;;  %v1488_v51 = vpop.permute.xlu1 %1487 }
 0x5a6   : > { %v1454_v52 = vpop.permute.xlu0 %1453 }
 0x5a7   : > { %v1528_v53 = vpop.permute.xlu1 %1527 }
 0x5aa   : > { %v1492_v54 = vpop.permute.xlu0 %1491  ;;  %v1764_v49 = vld [vmem:[#allocation4 + $0x40] sm:$0xff] }
 0x5ab   : > { %1511 = vst.msk [vmem:[#allocation4 + $0x70] sm:$0xff] %vm860_vm7, %v1492_v54  ;;  %v1568_v27 = vpop.permute.xlu1 %1567 }
 0x5ae   : > { %v1494_v55 = vpop.permute.xlu0 %1493 }
 0x5af   : > { %v1608_v56 = vpop.permute.xlu1 %1607 }
 0x5b2   : > { %v1532_v57 = vpop.permute.xlu0 %1531 }
 0x5b3   : > { %1551 = vst.msk [vmem:[#allocation4 + $0xa0] sm:$0xff] %vm860_vm7, %v1532_v57  ;;  %v1648_v58 = vpop.permute.xlu1 %1647 }
 0x5b6   : > { %v1534_v59 = vpop.permute.xlu0 %1533 }
 0x5b7   : > { %v1688_v60 = vpop.permute.xlu1 %1687 }
 0x5ba   : > { %v1572_v61 = vpop.permute.xlu0 %1571 }
 0x5bb   : > { %1591 = vst.msk [vmem:[#allocation4 + $0xd0] sm:$0xff] %vm860_vm7, %v1572_v61  ;;  %v1450_v62 = vpop.permute.xlu1 %1449 }
 0x5bc   : > { %v1459_v26 = vsel %vm442_vm5, %v1448_v7, %v1450_v62  ;;  %v1460_v0 = vsel %vm442_vm5, %v1450_v62, %v1452_v8 }
 0x5be   : > { %v1574_v63 = vpop.permute.xlu0 %1573 }
 0x5bf   : > { %v1490_v2 = vpop.permute.xlu1 %1489 }
 0x5c0   : > { %v1499_v4 = vsel %vm471_vm2, %v1488_v51, %v1490_v2  ;;  %v1500_v6 = vsel %vm471_vm2, %v1490_v2, %v1492_v54 }
 0x5c2   : > { %v1612_v11 = vpop.permute.xlu0 %1611 }
 0x5c3   : > { %1631 = vst.msk [vmem:[#allocation4 + $0x100] sm:$0xff] %vm860_vm7, %v1612_v11  ;;  %v1530_v12 = vpop.permute.xlu1 %1529 }
 0x5c4   : > { %v3396_v9 = vsel %vm500_vm9, %v1528_v53, %v1530_v12  ;;  %v1540_v13 = vsel %vm500_vm9, %v1530_v12, %v1532_v57 }
 0x5c6   : > { %v3399_v15 = vpop.permute.xlu0 %1613 }
 0x5c7   : > { %v1570_v28 = vpop.permute.xlu1 %1569 }
 0x5c8   : > { %v3402_v1 = vsel %vm522_vm10, %v1568_v27, %v1570_v28  ;;  %v3405_v18 = vsel %vm522_vm10, %v1570_v28, %v1572_v61 }
 0x5ca   : > { %v1652_v16 = vpop.permute.xlu0 %1651 }
 0x5cb   : > { %1671 = vst.msk [vmem:[#allocation4 + $0x130] sm:$0xff] %vm860_vm7, %v1652_v16  ;;  %v1610_v29 = vpop.permute.xlu1 %1609 }
 0x5cc   : > { %v3409_v30 = vsel %vm546_vm11, %v1608_v56, %v1610_v29  ;;  %v3412_v31 = vsel %vm546_vm11, %v1610_v29, %v1612_v11 }
 0x5ce   : > { %v3414_v32 = vpop.permute.xlu0 %1653 }
 0x5cf   : > { %v1650_v14 = vpop.permute.xlu1 %1649 }
 0x5d0   : > { %v3417_v33 = vsel %vm573_vm12, %v1648_v58, %v1650_v14  ;;  %v3420_v34 = vsel %vm573_vm12, %v1650_v14, %v1652_v16  ;;  %v1788_v14 = vld [vmem:[#allocation4 + $0x100] sm:$0xff] }
 0x5d2   : > { %v1692_v35 = vpop.permute.xlu0 %1691 }
 0x5d3   : > { %1711 = vst.msk [vmem:[#allocation4 + $0x160] sm:$0xff] %vm860_vm7, %v1692_v35  ;;  %v1690_v3 = vpop.permute.xlu1 %1689 }
 0x5d4   : > { %v3424_v20 = vsel %vm600_vm13, %v1688_v60, %v1690_v3  ;;  %v3427_v10 = vsel %vm600_vm13, %v1690_v3, %v1692_v35 }
 0x5d6   : > { %v3429_v21 = vpop.permute.xlu0 %1693 }
 0x5d7   : > { %v3431_v36 = vpop.permute.xlu1 %1729 }
 0x5da   : > { %v1732_v37 = vpop.permute.xlu0 %1731 }
 0x5db   : > { %v3435_v38 = vsel %vm621_vm14, %v3431_v36, %v1732_v37  ;;  %1751 = vst.msk [vmem:[#allocation4 + $0x190] sm:$0xff] %vm860_vm7, %v1732_v37  ;;  %v1456_v39 = vpop.permute.xlu1 %1455 }
 0x5dc   : > { %v1461_v19 = vsel %vm442_vm5, %v1454_v52, %v1456_v39 }
 0x5dd   : > { %v1813_v5 = vpack.c.bf16 %v1461_v19, %v1459_v26 }
 0x5de   : > { %v1458_v23 = vpop.permute.xlu0 %1457 }
 0x5df   : > { %v1462_v40 = vsel %vm442_vm5, %v1456_v39, %v1458_v23  ;;  %1474 = vst.msk [vmem:[#allocation4 + $0x58] sm:$0xff] %vm860_vm7, %v1458_v23  ;;  %v1496_v17 = vpop.permute.xlu1 %1495 }
 0x5e0   : > { %v1501_v41 = vsel %vm471_vm2, %v1494_v55, %v1496_v17  ;;  %v1814_v42 = vpack.c.bf16 %v1462_v40, %v1460_v0  ;;  %v1770_v55 = vld [vmem:[#allocation4 + $0x70] sm:$0xff]  ;;  %v1776_v0 = vld [vmem:[#allocation4 + $0xa0] sm:$0xff] }
 0x5e1   : > { %v1816_v47 = vpack.c.bf16 %v1501_v41, %v1499_v4 }
 0x5e2   : > { %v1498_v22 = vpop.permute.xlu0 %1497  ;;  %1858 = vmatprep.subr.bf16.mxu0 %v1814_v42 }
 0x5e3   : > { %v1502_v25 = vsel %vm471_vm2, %v1496_v17, %v1498_v22  ;;  %1514 = vst.msk [vmem:[#allocation4 + $0x88] sm:$0xff] %vm860_vm7, %v1498_v22  ;;  %v1536_v43 = vpop.permute.xlu1 %1535  ;;  %1859 = vmatpush1.bf16.msra.mxu0 %v1813_v5  ;;  %v1800_v5 = vld [vmem:[#allocation4 + $0x160] sm:$0xff]  ;;  %vm1942_vm2 = vcmask 256000  }
 0x5e4   : > { %v1541_v44 = vsel %vm500_vm9, %v1534_v59, %v1536_v43  ;;  %v1817_v45 = vpack.c.bf16 %v1502_v25, %v1500_v6 }
 0x5e5   : > { %v1819_v54 = vpack.c.bf16 %v1541_v44, %v3396_v9 }
 0x5e6   : > { %v1538_v48 = vpop.permute.xlu0 %1537  ;;  %v1767_v50 = vld [vmem:[#allocation4 + $0x58] sm:$0xff]  ;;  %1860 = vmatprep.subr.bf16.mxu0 %v1817_v45  ;;  %v1806_v45 = vld [vmem:[#allocation4 + $0x190] sm:$0xff] }
 0x5e7   : > { %v1542_v7 = vsel %vm500_vm9, %v1536_v43, %v1538_v48  ;;  %1554 = vst.msk [vmem:[#allocation4 + $0xb8] sm:$0xff] %vm860_vm7, %v1538_v48  ;;  %v1576_v8 = vpop.permute.xlu1 %1575  ;;  %v1815_v51 = vpack.c.bf16 %v1767_v50, %v1764_v49  ;;  %1861 = vmatpush1.bf16.msra.mxu0 %v1816_v47 }
 0x5e8   : > { %v1581_v52 = vsel %vm522_vm10, %v1574_v63, %v1576_v8  ;;  %v1820_v53 = vpack.c.bf16 %v1542_v7, %v1540_v13 }
 0x5e9   : > { %1900 = vmatpush1.bf16.msra.mxu1 %v1815_v51  ;;  %v1822_v62 = vpack.c.bf16 %v1581_v52, %v3402_v1 }
 0x5ea   : > { %v1578_v27 = vpop.permute.xlu0 %1577  ;;  %1901 = vmatprep.subr.bf16.mxu1 %v2622_v46  ;;  %v1773_v56 = vld [vmem:[#allocation4 + $0x88] sm:$0xff]  ;;  %1862 = vmatprep.subr.bf16.mxu0 %v1820_v53 }
 0x5eb   : > { %v1582_v57 = vsel %vm522_vm10, %v1576_v8, %v1578_v27  ;;  %1594 = vst.msk [vmem:[#allocation4 + $0xe8] sm:$0xff] %vm860_vm7, %v1578_v27  ;;  %v1616_v58 = vpop.permute.xlu1 %1615  ;;  %v1818_v59 = vpack.c.bf16 %v1773_v56, %v1770_v55  ;;  %1863 = vmatpush1.bf16.msra.mxu0 %v1819_v54 }
 0x5ec   : > { %v1621_v60 = vsel %vm546_vm11, %v3399_v15, %v1616_v58  ;;  %v1823_v61 = vpack.c.bf16 %v1582_v57, %v3405_v18  ;;  %v1782_v15 = vld [vmem:[#allocation4 + $0xd0] sm:$0xff] }
 0x5ed   : > { %1902 = vmatpush1.bf16.msra.mxu1 %v1818_v59  ;;  %v1825_v9 = vpack.c.bf16 %v1621_v60, %v3409_v30 }
 0x5ee   : > { %v1618_v26 = vpop.permute.xlu0 %1617  ;;  %1903 = vmatprep.subr.bf16.mxu1 %v2622_v46  ;;  %v1779_v63 = vld [vmem:[#allocation4 + $0xb8] sm:$0xff]  ;;  %1864 = vmatprep.subr.bf16.mxu0 %v1823_v61 }
 0x5ef   : > { %v1622_v2 = vsel %vm546_vm11, %v1616_v58, %v1618_v26  ;;  %1634 = vst.msk [vmem:[#allocation4 + $0x118] sm:$0xff] %vm860_vm7, %v1618_v26  ;;  %v1656_v4 = vpop.permute.xlu1 %1655  ;;  %v1821_v6 = vpack.c.bf16 %v1779_v63, %v1776_v0  ;;  %1865 = vmatpush1.bf16.msra.mxu0 %v1822_v62 }
 0x5f0   : > { %v1661_v11 = vsel %vm573_vm12, %v3414_v32, %v1656_v4  ;;  %v1826_v12 = vpack.c.bf16 %v1622_v2, %v3412_v31 }
 0x5f1   : > { %1904 = vmatpush1.bf16.msra.mxu1 %v1821_v6  ;;  %v1828_v30 = vpack.c.bf16 %v1661_v11, %v3417_v33  ;;  %v1794_v33 = vld [vmem:[#allocation4 + $0x130] sm:$0xff] }
 0x5f2   : > { %v1658_v13 = vpop.permute.xlu0 %1657  ;;  %1905 = vmatprep.subr.bf16.mxu1 %v2622_v46  ;;  %v1785_v28 = vld [vmem:[#allocation4 + $0xe8] sm:$0xff]  ;;  %1866 = vmatprep.subr.bf16.mxu0 %v1826_v12 }
 0x5f3   : > { %v1662_v1 = vsel %vm573_vm12, %v1656_v4, %v1658_v13  ;;  %1674 = vst.msk [vmem:[#allocation4 + $0x148] sm:$0xff] %vm860_vm7, %v1658_v13  ;;  %v1696_v18 = vpop.permute.xlu1 %1695  ;;  %v1824_v16 = vpack.c.bf16 %v1785_v28, %v1782_v15  ;;  %1867 = vmatpush1.bf16.msra.mxu0 %v1825_v9 }
 0x5f4   : > { %v1701_v29 = vsel %vm600_vm13, %v3429_v21, %v1696_v18  ;;  %v1829_v31 = vpack.c.bf16 %v1662_v1, %v3420_v34 }
 0x5f5   : > { %1906 = vmatpush1.bf16.msra.mxu1 %v1824_v16  ;;  %v1831_v34 = vpack.c.bf16 %v1701_v29, %v3424_v20 }
 0x5f6   : > { %v1698_v32 = vpop.permute.xlu0 %1697  ;;  %1907 = vmatprep.subr.bf16.mxu1 %v2622_v46  ;;  %v1791_v35 = vld [vmem:[#allocation4 + $0x118] sm:$0xff]  ;;  %1868 = vmatprep.subr.bf16.mxu0 %v1829_v31 }
 0x5f7   : > { %v1702_v3 = vsel %vm600_vm13, %v1696_v18, %v1698_v32  ;;  %1714 = vst.msk [vmem:[#allocation4 + $0x178] sm:$0xff] %vm860_vm7, %v1698_v32  ;;  %v1736_v37 = vpop.permute.xlu1 %1735  ;;  %v1827_v39 = vpack.c.bf16 %v1791_v35, %v1788_v14  ;;  %1869 = vmatpush1.bf16.msra.mxu0 %v1828_v30 }
 0x5f8   : > { %v1832_v21 = vpack.c.bf16 %v1702_v3, %v3427_v10 }
 0x5f9   : > { %1908 = vmatpush1.bf16.msra.mxu1 %v1827_v39 }
 0x5fa   : > { %v1738_v19 = vpop.permute.xlu0 %1737  ;;  %1909 = vmatprep.subr.bf16.mxu1 %v2622_v46  ;;  %v1797_v23 = vld [vmem:[#allocation4 + $0x148] sm:$0xff]  ;;  %1870 = vmatprep.subr.bf16.mxu0 %v1832_v21 }
 0x5fb   : > { %v1742_v40 = vsel %vm621_vm14, %v1736_v37, %v1738_v19  ;;  %1754 = vst.msk [vmem:[#allocation4 + $0x1a8] sm:$0xff] %vm860_vm7, %v1738_v19  ;;  %v1728_v17 = vpop.permute.xlu1 %1727  ;;  %v1830_v41 = vpack.c.bf16 %v1797_v23, %v1794_v33  ;;  %1871 = vmatpush1.bf16.msra.mxu0 %v1831_v34 }
 0x5fc   : > { %v1739_v42 = vsel %vm621_vm14, %v1728_v17, %v3431_v36  ;;  %v1835_v10 = vpack.c.bf16 %v1742_v40, %v3435_v38 }
 0x5fd   : > { %1910 = vmatpush1.bf16.msra.mxu1 %v1830_v41 }
 0x5fe   : > { %v1734_v20 = vpop.permute.xlu0 %1733  ;;  %1911 = vmatprep.subr.bf16.mxu1 %v2622_v46  ;;  %v1803_v22 = vld [vmem:[#allocation4 + $0x178] sm:$0xff]  ;;  %1872 = vmatprep.subr.bf16.mxu0 %v1835_v10 }
 0x5ff   : > { %v1741_v25 = vsel %vm621_vm14, %v1734_v20, %v1736_v37  ;;  %v1833_v43 = vpack.c.bf16 %v1803_v22, %v1800_v5 }
 0x600   : > { %v1834_v44 = vpack.c.bf16 %v1741_v25, %v1739_v42 }
 0x601   : > { %1912 = vmatpush1.bf16.msra.mxu1 %v1833_v43 }
 0x602   : > { %1913 = vmatprep.subr.bf16.mxu1 %v2622_v46  ;;  %v1809_v36 = vld [vmem:[#allocation4 + $0x1a8] sm:$0xff]  ;;  %1873 = vmatpush1.bf16.msra.mxu0 %v1834_v44 }
 0x603   : > { %v1836_v38 = vpack.c.bf16 %v1809_v36, %v1806_v45 }
 0x605   : > { %1914 = vmatpush1.bf16.msra.mxu1 %v1836_v38  ;;  %1889 = vmatmul.mubr.bf16.vlgmr.msra.gmra.mrb[8].mxu0 %v3373_v24 }
 0x608   : > { %1930 = vmatmul.mubr.bf16.vlgmr.msra.gmra.mrb[8].mxu1 %v3373_v24 }
 0x60c   : > { %v1841_v47 = vpop.permute.xlu1 %1840 }
 0x6d8   : > { %v1890_v48 = vpop.f32.mrb[8].mxu0 }
 0x6d9   : > { %v1891_v49 = vadd.f32 %v1890_v48, %v1841_v47  ;;  %v1892_v50 = vpop.f32.mrb[9].mxu0 }
 0x6da   : > { %v1893_v7 = vadd.f32 %v1892_v50, %v1841_v47  ;;  %v1894_v46 = vpop.f32.mrb[10].mxu0 }
 0x6db   : > { %v1931_v8 = vpop.f32.mrb[8].mxu1  ;;  %v1895_v51 = vpop.f32.mrb[11].mxu0 }
 0x6dc   : > { %v1932_v52 = vadd.f32 %v1931_v8, %v1841_v47  ;;  %v1939_v53 = vcombine.low %v1891_v49, %v1893_v7  ;;  %v1933_v54 = vpop.f32.mrb[9].mxu1 }
 0x6dd   : > { %v1934_v24 = vpop.f32.mrb[10].mxu1 }
 0x6de   : > { %1941 = vst [vmem:[%s417_s26] sm:$0x77] %v1939_v53  ;;  %v1935_v27 = vpop.f32.mrb[11].mxu1  ;;  %1943 = vst.msk [vmem:[%s417_s26 + $0x8] sm:$0x7] %vm1942_vm2, %v1932_v52 }
 0x6df   : > { %2529 = shalt.err (!%p2526_p11)
}
 0x6e0   : > { %s2530_s2 = scalar_lea.hbm %s3491_s19, 192  ;;  %s2534_s25 = scalar_lea.hbm %s3543_s8, 384 }
 0x6e1   : > { %p2531_p12 = scmp.ne.s32.totalorder %s3491_s19, %s2530_s2  ;;  %p2535_p9 = scmp.lt.u32.totalorder %s3491_s19, %s3543_s8 }
 0x6e2   : > { %p2536_p7 = scmp.lt.u32.totalorder %s2534_s25, %s2530_s2  ;;  %p2538_p4 = scmp.lt.u32.totalorder %s2530_s2, %s3491_s19 }
 0x6e3   : > { %p2532_p8 = pnand %p2531_p12, %p3572_p1 }
 0x6e4   : > { %p2537_p10 = por %p2536_p7, %p2535_p9 }
 0x6e5   : > { %p2533_p5 = pneg %p2532_p8 }
 0x6e6   : > { %p2539_p13 = por %p2538_p4, %p2537_p10 }
 0x6e8   : > { %p2540_p0 = pnand %p2539_p13, %p2533_p5 }
 0x6ea   : > { %2543 = shalt.err (!%p2540_p0)
}
 0x6eb   : > { %2181 = dma.vmem_to_hbm [thread:$0]  (%p3572_p1), %s3493_s16, 192, %s3491_s19, %s1945_s11  }
 0x6ec PF: > { %s1971_s26 = sand.u32 1, %s2586_s27   ;;  %p3573_p2 = scmp.ne.s32.totalorder %s3561_s22, 0 }
 0x6ed   : > { %p3574_p3 = scmp.ge.s32.totalorder %s2598_s30, 2  ;;  %s1972_s17 = scalar_lea.sflag [#allocation7], %s1971_s26 }
 0x6ef   : > { %p2210_p6 = pnand %p3574_p3, %p3573_p2 }
 0x6f1   : > { %2581 = dma.done.wait (!%p2210_p6), %s1972_s17, 192  }
 0x6f2   : > { %2583 = vsyncadd (!%p2210_p6), %s1972_s17, 4294967104  ;;  %p25_p11 = scmp.ge.s32.totalorder %s2881_s15, 4   ;;  %s3575_s27 = smov %s2590_s28 }
 0x6f3   : > { %s3576_s28 = smov %s2594_s29  ;;  %s3577_s29 = smov %s2893_s9 }
 0x6f4   : > { %s3578_s30 = smov %s2881_s15  ;;  %27 = sbr.rel (!%p25_p11) target bundleno = 12 (0xc), region = 125 }
 0x6fb   :  { %1977 = vsyncpa [#allocation6], 1 }
 0x6fc   :  { %1979 = vsyncpa [#allocation6 + $0x1], 1 }
 0x6fd   :  { %1980 = vsyncpa [#allocation9], 1 }
 0x6fe   :  { %1981 = vsyncpa [#allocation12], 1 }
 0x6ff   :  { %1982 = vsyncpa [#allocation15], 1 }
 0x700   :  { %1983 = vsyncpa [#allocation18], 1 }
 0x701   :  { %1984 = vsyncpa [#allocation7], 1 }
 0x702   :  { %1986 = vsyncpa [#allocation7 + $0x1], 1 }

</bundles_post_ra>
